<compile_context>
chip_gen: v7x
topology: tpu7x:2x2x1
jax: 0.10.0
libtpu: 0.0.40
codegen_flags: <defaults>
</compile_context>

<pallas_src>
import jax
import jax.numpy as jnp
from jax.experimental import pallas as pl
from jax.experimental.pallas import tpu as pltpu

B = 2                      # batch
C, H, W = 2, 256, 256      # channels / spatial implied by fc in_features=131072
K = C * H * W              # 131072
N_OUT = 3
LANES = 512                # dense lane dim   (multiple of 128)
SUBLANES = K // LANES      # 256              (multiple of 8)


def fc_kernel(x_ref, w_ref, b_ref, o_ref):
    """out[b, n] = sum_k x[b, k] * w[n, k] + bias[n], VPU multiply + XLU reduce.

    x_ref: (B, SUBLANES, LANES)    w_ref: (N_OUT, SUBLANES, LANES)
    b_ref: (1, 1, N_OUT)           o_ref: (B, 1, N_OUT)
    """
    x = x_ref[...]                                          # (B, S, L) f32
    cols = []
    for n in range(N_OUT):                                  # static: 3 outputs
        w_n = w_ref[n]                                      # (S, L), lane-dense
        prod = x * w_n[None, :, :]                          # (B, S, L)   VPU
        part = jnp.sum(prod, axis=2, keepdims=True)         # (B, S, 1)   lane reduce
        cols.append(jnp.sum(part, axis=1, keepdims=True))   # (B, 1, 1)   sublane reduce
    out = jnp.concatenate(cols, axis=2)                     # (B, 1, N_OUT)
    o_ref[...] = (out + b_ref[...]).astype(o_ref.dtype)


def _fc_pallas(x_flat, w, bias):
    """x_flat: (B, K) f32, w: (N_OUT, K) f32 (native layout), bias: (N_OUT,)."""
    batch, k_dim = x_flat.shape
    n_out = w.shape[0]
    assert k_dim == SUBLANES * LANES
    # Free, contiguous reshapes done in HBM by XLA — dense (sublane, lane) slabs.
    x3 = x_flat.reshape(batch, SUBLANES, LANES)
    w3 = w.reshape(n_out, SUBLANES, LANES)
    b3 = bias.reshape(1, 1, n_out)
    out = pl.pallas_call(
        fc_kernel,
        out_shape=jax.ShapeDtypeStruct((batch, 1, n_out), jnp.float32),
        grid_spec=pltpu.PrefetchScalarGridSpec(
            num_scalar_prefetch=0,
            grid=(1,),
            in_specs=[
                pl.BlockSpec((batch, SUBLANES, LANES), lambda i: (0, 0, 0)),  # x
                pl.BlockSpec((n_out, SUBLANES, LANES), lambda i: (0, 0, 0)),  # W
                pl.BlockSpec((1, 1, n_out), lambda i: (0, 0, 0)),             # bias
            ],
            out_specs=pl.BlockSpec((batch, 1, n_out), lambda i: (0, 0, 0)),
        ),
        compiler_params=pltpu.CompilerParams(
            # Single step, HBM-bound: no megacore benefit.
            dimension_semantics=("arbitrary",)
        ),
    )(x3, w3, b3)
    return out.reshape(batch, n_out)


def square_net_forward(input_net, fc_w, fc_b, n_iterations=1):
    """JAX/Pallas port of SquareNet.forward (compute path only)."""
    batch = input_net.shape[0]
    x = input_net.reshape(batch, -1)              # torch.reshape(x, (B, -1))
    # TODO(synk): nn.Dropout(0.5) in train mode is stochastic (mask + 2x scale);
    # eval-mode (identity) semantics are used here.
    w = jnp.asarray(fc_w)                         # (N_OUT, K), NOT transposed
    b = jnp.asarray(fc_b)

    # The fc output does not depend on transfo_input, and input_images is not
    # re-rendered between iterations (see TODO below), so the matmul is
    # loop-invariant: run the Pallas kernel once and hoist it out of the loop.
    model_output = _fc_pallas(x, w, b)

    transfo_input = jnp.zeros((batch, N_OUT), jnp.float32)
    outputs = {}
    for i in range(n_iterations):
        transfo_output = model_output + transfo_input     # trivial (B, 3) add
        outputs[f"iteration={i + 1}"] = {
            "transfo_input": transfo_input,
            "transfo_output": transfo_output,
            "model_output": model_output,
        }
        # TODO(synk): SquareNet.render() re-draws squares with host-side numpy
        # (generate_square is not defined in the module); no Pallas equivalent,
        # so input_images is not re-rendered and model_output stays fixed.
        transfo_input = transfo_output
    return outputs


if __name__ == "__main__":
    key = jax.random.PRNGKey(0)
    k_in, k_w, k_b = jax.random.split(key, 3)

    # Input implied by fc in_features = 2*256*256 = 131072.
    input_net = jax.random.normal(k_in, (B, C, H, W), dtype=jnp.float32)

    # Deterministic parameter init for self.fc = nn.Linear(131072, 3).
    bound = 1.0 / (K ** 0.5)
    fc_w = jax.random.uniform(k_w, (N_OUT, K), jnp.float32, -bound, bound)
    fc_b = jax.random.uniform(k_b, (N_OUT,), jnp.float32, -bound, bound)

    outs = square_net_forward(input_net, fc_w, fc_b, n_iterations=2)
    jax.block_until_ready(outs)

    # Sanity check against a plain-JAX reference of the hot path.
    ref = input_net.reshape(B, -1) @ fc_w.T + fc_b
    assert jnp.allclose(outs["iteration=1"]["model_output"], ref,
                        rtol=1e-4, atol=1e-3)
    assert jnp.allclose(outs["iteration=1"]["transfo_output"], ref,
                        rtol=1e-4, atol=1e-3)
    assert jnp.allclose(outs["iteration=2"]["transfo_output"], 2.0 * ref,
                        rtol=1e-4, atol=2e-3)

    print("KERNEL_OK")
</pallas_src>

<mosaic_0001>
module attributes {stable_mosaic.version = 11 : i64} {
  func.func @fc_kernel(%arg0: i32, %arg1: memref<2x256x512xf32, #tpu.memory_space<vmem>>, %arg2: memref<3x256x512xf32, #tpu.memory_space<vmem>>, %arg3: memref<1x1x3xf32, #tpu.memory_space<vmem>>, %arg4: memref<2x1x3xf32, #tpu.memory_space<vmem>>) attributes {dimension_semantics = [#tpu.dimension_semantics<arbitrary>], iteration_bounds = array<i64: 1>, scalar_prefetch = 0 : i64, scratch_operands = 0 : i64, tpu.core_type = #tpu.core_type<tc>, window_params = [{pipeline_mode = #tpu.pipeline_mode<synchronous>, transform_indices = @transform_0, window_bounds = array<i64: 2, 256, 512>}, {pipeline_mode = #tpu.pipeline_mode<synchronous>, transform_indices = @transform_1, window_bounds = array<i64: 3, 256, 512>}, {pipeline_mode = #tpu.pipeline_mode<synchronous>, transform_indices = @transform_2, window_bounds = array<i64: 1, 1, 3>}, {pipeline_mode = #tpu.pipeline_mode<synchronous>, transform_indices = @transform_3, window_bounds = array<i64: 2, 1, 3>}]} {
    %c0 = arith.constant 0 : index
    %c0_0 = arith.constant 0 : index
    %c0_1 = arith.constant 0 : index
    %0 = vector.load %arg1[%c0, %c0_0, %c0_1] : memref<2x256x512xf32, #tpu.memory_space<vmem>>, vector<2x256x512xf32>
    %c0_2 = arith.constant 0 : index
    %c0_3 = arith.constant 0 : index
    %c0_4 = arith.constant 0 : index
    %1 = vector.load %arg2[%c0_2, %c0_3, %c0_4] : memref<3x256x512xf32, #tpu.memory_space<vmem>>, vector<1x256x512xf32>
    %2 = vector.shape_cast %1 : vector<1x256x512xf32> to vector<256x512xf32>
    %3 = vector.shape_cast %2 : vector<256x512xf32> to vector<1x256x512xf32>
    %4 = vector.broadcast %3 : vector<1x256x512xf32> to vector<2x256x512xf32>
    %5 = arith.mulf %0, %4 : vector<2x256x512xf32>
    %cst = arith.constant dense<0.000000e+00> : vector<2x256xf32>
    %6 = vector.multi_reduction <add>, %5, %cst [2] : vector<2x256x512xf32> to vector<2x256xf32>
    %7 = vector.shape_cast %6 : vector<2x256xf32> to vector<2x256x1xf32>
    %cst_5 = arith.constant dense<0.000000e+00> : vector<2x1xf32>
    %8 = vector.multi_reduction <add>, %7, %cst_5 [1] : vector<2x256x1xf32> to vector<2x1xf32>
    %9 = vector.shape_cast %8 : vector<2x1xf32> to vector<2x1x1xf32>
    %c1 = arith.constant 1 : index
    %c0_6 = arith.constant 0 : index
    %c0_7 = arith.constant 0 : index
    %10 = vector.load %arg2[%c1, %c0_6, %c0_7] : memref<3x256x512xf32, #tpu.memory_space<vmem>>, vector<1x256x512xf32>
    %11 = vector.shape_cast %10 : vector<1x256x512xf32> to vector<256x512xf32>
    %12 = vector.shape_cast %11 : vector<256x512xf32> to vector<1x256x512xf32>
    %13 = vector.broadcast %12 : vector<1x256x512xf32> to vector<2x256x512xf32>
    %14 = arith.mulf %0, %13 : vector<2x256x512xf32>
    %cst_8 = arith.constant dense<0.000000e+00> : vector<2x256xf32>
    %15 = vector.multi_reduction <add>, %14, %cst_8 [2] : vector<2x256x512xf32> to vector<2x256xf32>
    %16 = vector.shape_cast %15 : vector<2x256xf32> to vector<2x256x1xf32>
    %cst_9 = arith.constant dense<0.000000e+00> : vector<2x1xf32>
    %17 = vector.multi_reduction <add>, %16, %cst_9 [1] : vector<2x256x1xf32> to vector<2x1xf32>
    %18 = vector.shape_cast %17 : vector<2x1xf32> to vector<2x1x1xf32>
    %c2 = arith.constant 2 : index
    %c0_10 = arith.constant 0 : index
    %c0_11 = arith.constant 0 : index
    %19 = vector.load %arg2[%c2, %c0_10, %c0_11] : memref<3x256x512xf32, #tpu.memory_space<vmem>>, vector<1x256x512xf32>
    %20 = vector.shape_cast %19 : vector<1x256x512xf32> to vector<256x512xf32>
    %21 = vector.shape_cast %20 : vector<256x512xf32> to vector<1x256x512xf32>
    %22 = vector.broadcast %21 : vector<1x256x512xf32> to vector<2x256x512xf32>
    %23 = arith.mulf %0, %22 : vector<2x256x512xf32>
    %cst_12 = arith.constant dense<0.000000e+00> : vector<2x256xf32>
    %24 = vector.multi_reduction <add>, %23, %cst_12 [2] : vector<2x256x512xf32> to vector<2x256xf32>
    %25 = vector.shape_cast %24 : vector<2x256xf32> to vector<2x256x1xf32>
    %cst_13 = arith.constant dense<0.000000e+00> : vector<2x1xf32>
    %26 = vector.multi_reduction <add>, %25, %cst_13 [1] : vector<2x256x1xf32> to vector<2x1xf32>
    %27 = vector.shape_cast %26 : vector<2x1xf32> to vector<2x1x1xf32>
    %28 = tpu.concatenate %9, %18, %27 in 2 : vector<2x1x1xf32>, vector<2x1x1xf32>, vector<2x1x1xf32> -> vector<2x1x3xf32>
    %c0_14 = arith.constant 0 : index
    %c0_15 = arith.constant 0 : index
    %c0_16 = arith.constant 0 : index
    %29 = vector.load %arg3[%c0_14, %c0_15, %c0_16] : memref<1x1x3xf32, #tpu.memory_space<vmem>>, vector<1x1x3xf32>
    %30 = vector.broadcast %29 : vector<1x1x3xf32> to vector<2x1x3xf32>
    %31 = arith.addf %28, %30 : vector<2x1x3xf32>
    %c0_17 = arith.constant 0 : index
    %c0_18 = arith.constant 0 : index
    %c0_19 = arith.constant 0 : index
    %32 = vector.load %arg4[%c0_17, %c0_18, %c0_19] : memref<2x1x3xf32, #tpu.memory_space<vmem>>, vector<2x1x3xf32>
    tpu.vector_store %arg4[%c0_17, %c0_18, %c0_19], %31 {strides = array<i32>} : memref<2x1x3xf32, #tpu.memory_space<vmem>>, vector<2x1x3xf32>,
    return
  }
  func.func @transform_0(%arg0: i32) -> (i32, i32, i32) {
    %c0_i32 = arith.constant 0 : i32
    %c0_i32_0 = arith.constant 0 : i32
    %c0_i32_1 = arith.constant 0 : i32
    %c0_i32_2 = arith.constant 0 : i32
    return %c0_i32, %c0_i32_0, %c0_i32_1 : i32, i32, i32
  }
  func.func @transform_1(%arg0: i32) -> (i32, i32, i32) {
    %c0_i32 = arith.constant 0 : i32
    %c0_i32_0 = arith.constant 0 : i32
    %c0_i32_1 = arith.constant 0 : i32
    %c0_i32_2 = arith.constant 0 : i32
    return %c0_i32, %c0_i32_0, %c0_i32_1 : i32, i32, i32
  }
  func.func @transform_2(%arg0: i32) -> (i32, i32, i32) {
    %c0_i32 = arith.constant 0 : i32
    %c0_i32_0 = arith.constant 0 : i32
    %c0_i32_1 = arith.constant 0 : i32
    %c0_i32_2 = arith.constant 0 : i32
    return %c0_i32, %c0_i32_0, %c0_i32_1 : i32, i32, i32
  }
  func.func @transform_3(%arg0: i32) -> (i32, i32, i32) {
    %c0_i32 = arith.constant 0 : i32
    %c0_i32_0 = arith.constant 0 : i32
    %c0_i32_1 = arith.constant 0 : i32
    %c0_i32_2 = arith.constant 0 : i32
    return %c0_i32, %c0_i32_0, %c0_i32_1 : i32, i32, i32
  }
}

</mosaic_0001>

<bundles_post_ra>
// kernel: tpu_custom_call.1
= control target key start
LH: loop header
LB: loop body
LE: loop exit
PB: predicated region body
PF: predicated region fallthrough
CT: control target
= control target key end

     0   :  { %8 = vsyncpa [#allocation3], 0  ;;  %s5365_s0 = inlined_call_operand.hbm [shape: f32[2,256,512], index: 0, kind: input, shape index: {}]   ;;  %s5366_s1 = inlined_call_operand.hbm [shape: f32[3,256,512], index: 1, kind: input, shape index: {}]   ;;  %s5367_s2 = inlined_call_operand.hbm [shape: f32[1,1,3], index: 2, kind: input, shape index: {}]   ;;  %s5368_s3 = inlined_call_operand.hbm [shape: f32[2,1,3], index: 3, kind: output, shape index: {}]  }
   0x1   :  { %9 = vsyncpa [#allocation6], 0 }
   0x2   :  { %10 = vsyncpa [#allocation4], 0  ;;  %s3220_s12 = smov [#allocation5]   ;;  %s3221_s14 = smov [#allocation2]  }
   0x3   :  { %s28_s13 = sshll.u32 %s3220_s12, 4  ;;  %s16_s15 = sshll.u32 %s3221_s14, 4  ;;  %s29_s13 = int_to_ptr.vmem [resolvable:$true] %s28_s13  ;;  %s3248_s15 = int_to_ptr.vmem [resolvable:$true] %s16_s15 }
   0x4   :  { %s3126_s18 = scalar_lea.hbm %s5366_s1, 49152 }
   0x5   :  { %p3127_p0 = scmp.ne.s32.totalorder %s5366_s1, %s3126_s18  ;;  %p3130_p1 = scmp.lt.u32.totalorder %s3126_s18, %s5366_s1 }
   0x7   :  { %p3132_p2 = pnand %p3130_p1, %p3127_p0 }
   0x9   :  { %3135 = shalt.err (!%p3132_p2)
}
   0xa   :  { %s3136_s23 = scalar_lea.vmem %s29_s13, 49152  ;;  %p3141_p4 = scmp.lt.s32.totalorder %s29_s13, %s29_s13 }
   0xb   :  { %p3137_p3 = scmp.ne.s32.totalorder %s29_s13, %s3136_s23  ;;  %p3142_p5 = scmp.lt.s32.totalorder %s3136_s23, %s3136_s23 }
   0xd   :  { %p3143_p6 = por %p3142_p5, %p3141_p4 }
   0xf   :  { %p3144_p7 = pnand %p3143_p6, %p3137_p3 }
  0x11   :  { %3147 = shalt.err (!%p3144_p7)
}
  0x12   :  { %s3222_s24 = smov 512   ;;  %s3223_s25 = smov 32  }
  0x13   :  { %34 = dma.hbm_to_vmem [thread:$0]  %s5366_s1, 49152, %s29_s13, [#allocation6], %s3222_s24, %s3222_s24, %s3223_s25  }
  0x14   :  { %s3148_s30 = scalar_lea.hbm %s5365_s0, 32768 }
  0x15   :  { %p3149_p8 = scmp.ne.s32.totalorder %s5365_s0, %s3148_s30  ;;  %p3152_p9 = scmp.lt.u32.totalorder %s3148_s30, %s5365_s0 }
  0x17   :  { %p3154_p10 = pnand %p3152_p9, %p3149_p8 }
  0x19   :  { %3157 = shalt.err (!%p3154_p10)
}
  0x1a   :  { %s3158_s8 = scalar_lea.vmem %s3248_s15, 32768  ;;  %p3163_p12 = scmp.lt.s32.totalorder %s3248_s15, %s3248_s15 }
  0x1b   :  { %p3159_p11 = scmp.ne.s32.totalorder %s3248_s15, %s3158_s8  ;;  %p3164_p13 = scmp.lt.s32.totalorder %s3158_s8, %s3158_s8 }
  0x1d   :  { %p3165_p0 = por %p3164_p13, %p3163_p12 }
  0x1f   :  { %p3166_p1 = pnand %p3165_p0, %p3159_p11 }
  0x21   :  { %3169 = shalt.err (!%p3166_p1)
}
  0x22   :  { %22 = dma.hbm_to_vmem [thread:$0]  %s5365_s0, 32768, %s3248_s15, [#allocation3], %s3222_s24, %s3222_s24, %s3223_s25  }
  0x23   :  { %s3224_s10 = smov [#allocation7]   ;;  %s3170_s14 = scalar_lea.hbm %s5367_s2, 16 }
  0x24   :  { %s41_s11 = sshll.u32 %s3224_s10, 4  ;;  %p3171_p2 = scmp.ne.s32.totalorder %s5367_s2, %s3170_s14  ;;  %s42_s11 = int_to_ptr.vmem [resolvable:$true] %s41_s11 }
  0x25   :  { %p3174_p3 = scmp.lt.u32.totalorder %s3170_s14, %s5367_s2 }
  0x27   :  { %p3176_p4 = pnand %p3174_p3, %p3171_p2 }
  0x29   :  { %3179 = shalt.err (!%p3176_p4)
}
  0x2a   :  { %s3180_s20 = scalar_lea.vmem %s42_s11, 16  ;;  %s3184_s0 = scalar_lea.vmem %s42_s11, 32 }
  0x2b   :  { %p3181_p5 = scmp.ne.s32.totalorder %s42_s11, %s3180_s20  ;;  %p3185_p6 = scmp.lt.s32.totalorder %s42_s11, %s42_s11 }
  0x2c   :  { %p3186_p7 = scmp.lt.s32.totalorder %s3184_s0, %s3180_s20 }
  0x2e   :  { %p3187_p8 = por %p3186_p7, %p3185_p6 }
  0x30   :  { %p3188_p9 = pnand %p3187_p8, %p3181_p5 }
  0x32   :  { %3191 = shalt.err (!%p3188_p9)
}
  0x33   :  { %44 = dma.hbm_to_vmem [thread:$0]  %s5367_s2, 16, %s42_s11, [#allocation6]  }
  0x34   :  { %3214 = dma.done.wait [#allocation3], 32768  }
  0x35   :  { %3215 = vsyncadd [#allocation3], 4294934528 }
  0x36   :  { %3216 = dma.done.wait [#allocation6], 49168  }
  0x37   :  { %3217 = vsyncadd [#allocation6], 4294918128  ;;  %v62_v0 = vld [vmem:[#allocation2 + $0x40] sm:$0xff]  ;;  %v63_v1 = vld [vmem:[#allocation2 + $0x48] sm:$0xff]  ;;  %vm2646_vm0 = vcmask 7168   ;;  %vm2649_vm1 = vcmask 15360  }
  0x38   :  { %v64_v2 = vld [vmem:[#allocation2 + $0x50] sm:$0xff]  ;;  %v65_v3 = vld [vmem:[#allocation2 + $0x58] sm:$0xff]  ;;  %v318_v4 = vld [vmem:[#allocation5 + $0x40] sm:$0xff]  ;;  %s3225_s2 = smov [#allocation8]   ;;  %vm2655_vm2 = vcmask 16384  }
  0x39   :  { %v319_v5 = vld [vmem:[#allocation5 + $0x48] sm:$0xff]  ;;  %v320_v6 = vld [vmem:[#allocation5 + $0x50] sm:$0xff]  ;;  %v321_v7 = vld [vmem:[#allocation5 + $0x58] sm:$0xff]  ;;  %v446_v8 = vmul.f32 %v318_v4, %v62_v0  ;;  %s2663_s22 = sshll.u32 %s3225_s2, 4  ;;  %s2664_s22 = int_to_ptr.vmem [resolvable:$true] %s2663_s22 }
  0x3a   :  { %v447_v9 = vmul.f32 %v319_v5, %v63_v1  ;;  %v54_v10 = vld [vmem:[#allocation2] sm:$0xff]  ;;  %v448_v11 = vmul.f32 %v320_v6, %v64_v2  ;;  %v55_v12 = vld [vmem:[#allocation2 + $0x8] sm:$0xff]  ;;  %v56_v13 = vld [vmem:[#allocation2 + $0x10] sm:$0xff]  ;;  %v449_v15 = vmul.f32 %v321_v7, %v65_v3  ;;  %s3192_s23 = scalar_lea.vmem %s2664_s22, 32  ;;  %p3197_p11 = scmp.lt.s32.totalorder %s2664_s22, %s2664_s22 }
  0x3b   :  { %v57_v14 = vld [vmem:[#allocation2 + $0x18] sm:$0xff]  ;;  %v3291_v17 = vld [vmem:[#allocation5] sm:$0xff]  ;;  %v3293_v18 = vld [vmem:[#allocation5 + $0x8] sm:$0xff]  ;;  %p3193_p10 = scmp.ne.s32.totalorder %s2664_s22, %s3192_s23  ;;  %p3198_p12 = scmp.lt.s32.totalorder %s3192_s23, %s3192_s23 }
  0x3c   :  { %v704_v16 = vadd.f32 %v447_v9, %v446_v8  ;;  %v3295_v19 = vld [vmem:[#allocation5 + $0x10] sm:$0xff]  ;;  %v3297_v20 = vld [vmem:[#allocation5 + $0x18] sm:$0xff]  ;;  %v438_v21 = vmul.f32 %v3291_v17, %v54_v10  ;;  %v439_v22 = vmul.f32 %v3293_v18, %v55_v12  ;;  %v66_v24 = vld [vmem:[#allocation2 + $0x60] sm:$0xff] }
  0x3d   :  { %v440_v23 = vmul.f32 %v3295_v19, %v56_v13  ;;  %v67_v25 = vld [vmem:[#allocation2 + $0x68] sm:$0xff]  ;;  %v68_v27 = vld [vmem:[#allocation2 + $0x70] sm:$0xff]  ;;  %v69_v28 = vld [vmem:[#allocation2 + $0x78] sm:$0xff]  ;;  %v441_v30 = vmul.f32 %v3297_v20, %v57_v14  ;;  %p3199_p13 = por %p3198_p12, %p3197_p11 }
  0x3e   :  { %v705_v26 = vadd.f32 %v704_v16, %v448_v11  ;;  %v3302_v29 = vld [vmem:[#allocation5 + $0x60] sm:$0xff]  ;;  %v694_v31 = vadd.f32 %v439_v22, %v438_v21  ;;  %v3305_v32 = vld [vmem:[#allocation5 + $0x68] sm:$0xff]  ;;  %v3307_v33 = vld [vmem:[#allocation5 + $0x70] sm:$0xff] }
  0x3f   :  { %v3309_v34 = vld [vmem:[#allocation5 + $0x78] sm:$0xff]  ;;  %v450_v35 = vmul.f32 %v3302_v29, %v66_v24  ;;  %v451_v37 = vmul.f32 %v3305_v32, %v67_v25  ;;  %v452_v38 = vmul.f32 %v3307_v33, %v68_v27  ;;  %v58_v39 = vld [vmem:[#allocation2 + $0x20] sm:$0xff]  ;;  %v59_v40 = vld [vmem:[#allocation2 + $0x28] sm:$0xff]  ;;  %p3200_p0 = pnand %p3199_p13, %p3193_p10 }
  0x40   :  { %v706_v36 = vadd.f32 %v705_v26, %v449_v15  ;;  %v60_v41 = vld [vmem:[#allocation2 + $0x30] sm:$0xff]  ;;  %v695_v42 = vadd.f32 %v694_v31, %v440_v23  ;;  %v61_v43 = vld [vmem:[#allocation2 + $0x38] sm:$0xff]  ;;  %v3314_v44 = vld [vmem:[#allocation5 + $0x20] sm:$0xff]  ;;  %v453_v46 = vmul.f32 %v3309_v34, %v69_v28 }
  0x41   :  { %v3316_v45 = vld [vmem:[#allocation5 + $0x28] sm:$0xff]  ;;  %v709_v47 = vadd.f32 %v451_v37, %v450_v35  ;;  %v3319_v48 = vld [vmem:[#allocation5 + $0x30] sm:$0xff]  ;;  %v3321_v49 = vld [vmem:[#allocation5 + $0x38] sm:$0xff]  ;;  %v442_v50 = vmul.f32 %v3314_v44, %v58_v39 }
  0x42   :  { %707 = vadd.xlane.f32.xlu1 %v706_v36  ;;  %v443_v51 = vmul.f32 %v3316_v45, %v59_v40  ;;  %v74_v52 = vld [vmem:[#allocation2 + $0xa0] sm:$0xff]  ;;  %v696_v53 = vadd.f32 %v695_v42, %v441_v30  ;;  %v444_v54 = vmul.f32 %v3319_v48, %v60_v41  ;;  %v75_v55 = vld [vmem:[#allocation2 + $0xa8] sm:$0xff]  ;;  %v76_v56 = vld [vmem:[#allocation2 + $0xb0] sm:$0xff]  ;;  %v445_v59 = vmul.f32 %v3321_v49, %v61_v43 }
  0x43   :  { %v77_v57 = vld [vmem:[#allocation2 + $0xb8] sm:$0xff]  ;;  %v710_v58 = vadd.f32 %v709_v47, %v452_v38  ;;  %v3327_v61 = vld [vmem:[#allocation5 + $0xa0] sm:$0xff]  ;;  %v3329_v62 = vld [vmem:[#allocation5 + $0xa8] sm:$0xff] }
  0x44   :  { %v699_v60 = vadd.f32 %v443_v51, %v442_v50  ;;  %v3331_v63 = vld [vmem:[#allocation5 + $0xb0] sm:$0xff]  ;;  %697 = vadd.xlane.f32.xlu0 %v696_v53  ;;  %v3333_v0 = vld [vmem:[#allocation5 + $0xb8] sm:$0xff]  ;;  %v458_v1 = vmul.f32 %v3327_v61, %v74_v52  ;;  %v459_v2 = vmul.f32 %v3329_v62, %v75_v55  ;;  %v70_v4 = vld [vmem:[#allocation2 + $0x80] sm:$0xff] }
  0x45   :  { %v460_v3 = vmul.f32 %v3331_v63, %v76_v56  ;;  %v71_v5 = vld [vmem:[#allocation2 + $0x88] sm:$0xff]  ;;  %v711_v6 = vadd.f32 %v710_v58, %v453_v46  ;;  %v72_v8 = vld [vmem:[#allocation2 + $0x90] sm:$0xff]  ;;  %v73_v9 = vld [vmem:[#allocation2 + $0x98] sm:$0xff]  ;;  %v461_v11 = vmul.f32 %v3333_v0, %v77_v57 }
  0x46   :  { %v700_v7 = vadd.f32 %v699_v60, %v444_v54  ;;  %v3338_v10 = vld [vmem:[#allocation5 + $0x80] sm:$0xff]  ;;  %v719_v12 = vadd.f32 %v459_v2, %v458_v1  ;;  %v3341_v13 = vld [vmem:[#allocation5 + $0x88] sm:$0xff]  ;;  %v3343_v14 = vld [vmem:[#allocation5 + $0x90] sm:$0xff] }
  0x47   :  { %v3345_v15 = vld [vmem:[#allocation5 + $0x98] sm:$0xff]  ;;  %v454_v16 = vmul.f32 %v3338_v10, %v70_v4  ;;  %712 = vadd.xlane.f32.xlu1 %v711_v6  ;;  %v455_v22 = vmul.f32 %v3341_v13, %v71_v5  ;;  %v456_v23 = vmul.f32 %v3343_v14, %v72_v8  ;;  %v82_v24 = vld [vmem:[#allocation2 + $0xe0] sm:$0xff]  ;;  %v83_v25 = vld [vmem:[#allocation2 + $0xe8] sm:$0xff] }
  0x48   :  { %v701_v21 = vadd.f32 %v700_v7, %v445_v59  ;;  %v84_v26 = vld [vmem:[#allocation2 + $0xf0] sm:$0xff]  ;;  %v720_v27 = vadd.f32 %v719_v12, %v460_v3  ;;  %v85_v28 = vld [vmem:[#allocation2 + $0xf8] sm:$0xff]  ;;  %v3350_v30 = vld [vmem:[#allocation5 + $0xe0] sm:$0xff]  ;;  %v457_v35 = vmul.f32 %v3345_v15, %v73_v9 }
  0x49   :  { %v3352_v31 = vld [vmem:[#allocation5 + $0xe8] sm:$0xff]  ;;  %v714_v36 = vadd.f32 %v455_v22, %v454_v16  ;;  %v3355_v37 = vld [vmem:[#allocation5 + $0xf0] sm:$0xff]  ;;  %v3357_v38 = vld [vmem:[#allocation5 + $0xf8] sm:$0xff]  ;;  %v466_v39 = vmul.f32 %v3350_v30, %v82_v24 }
  0x4a   :  { %702 = vadd.xlane.f32.xlu0 %v701_v21  ;;  %v467_v40 = vmul.f32 %v3352_v31, %v83_v25  ;;  %v78_v41 = vld [vmem:[#allocation2 + $0xc0] sm:$0xff]  ;;  %v721_v42 = vadd.f32 %v720_v27, %v461_v11  ;;  %v468_v43 = vmul.f32 %v3355_v37, %v84_v26  ;;  %v79_v46 = vld [vmem:[#allocation2 + $0xc8] sm:$0xff]  ;;  %v80_v47 = vld [vmem:[#allocation2 + $0xd0] sm:$0xff]  ;;  %v469_v52 = vmul.f32 %v3357_v38, %v85_v28 }
  0x4b   :  { %v81_v50 = vld [vmem:[#allocation2 + $0xd8] sm:$0xff]  ;;  %v715_v51 = vadd.f32 %v714_v36, %v456_v23  ;;  %v3363_v54 = vld [vmem:[#allocation5 + $0xc0] sm:$0xff]  ;;  %v3365_v55 = vld [vmem:[#allocation5 + $0xc8] sm:$0xff] }
  0x4c   :  { %v729_v53 = vadd.f32 %v467_v40, %v466_v39  ;;  %v3367_v56 = vld [vmem:[#allocation5 + $0xd0] sm:$0xff]  ;;  %722 = vadd.xlane.f32.xlu1 %v721_v42  ;;  %v3369_v57 = vld [vmem:[#allocation5 + $0xd8] sm:$0xff]  ;;  %v462_v58 = vmul.f32 %v3363_v54, %v78_v41  ;;  %v463_v59 = vmul.f32 %v3365_v55, %v79_v46  ;;  %v90_v1 = vld [vmem:[#allocation2 + $0x120] sm:$0xff] }
  0x4d   :  { %v464_v60 = vmul.f32 %v3367_v56, %v80_v47  ;;  %v91_v2 = vld [vmem:[#allocation2 + $0x128] sm:$0xff]  ;;  %v716_v3 = vadd.f32 %v715_v51, %v457_v35  ;;  %v92_v5 = vld [vmem:[#allocation2 + $0x130] sm:$0xff]  ;;  %v93_v6 = vld [vmem:[#allocation2 + $0x138] sm:$0xff]  ;;  %v465_v8 = vmul.f32 %v3369_v57, %v81_v50 }
  0x4e   :  { %v730_v4 = vadd.f32 %v729_v53, %v468_v43  ;;  %v3374_v7 = vld [vmem:[#allocation5 + $0x120] sm:$0xff]  ;;  %v724_v9 = vadd.f32 %v463_v59, %v462_v58  ;;  %v3377_v11 = vld [vmem:[#allocation5 + $0x128] sm:$0xff]  ;;  %v3379_v12 = vld [vmem:[#allocation5 + $0x130] sm:$0xff] }
  0x4f   :  { %v3381_v16 = vld [vmem:[#allocation5 + $0x138] sm:$0xff]  ;;  %v474_v21 = vmul.f32 %v3374_v7, %v90_v1  ;;  %717 = vadd.xlane.f32.xlu0 %v716_v3  ;;  %v475_v23 = vmul.f32 %v3377_v11, %v91_v2  ;;  %v476_v24 = vmul.f32 %v3379_v12, %v92_v5  ;;  %v86_v25 = vld [vmem:[#allocation2 + $0x100] sm:$0xff]  ;;  %v87_v26 = vld [vmem:[#allocation2 + $0x108] sm:$0xff] }
  0x50   :  { %v731_v22 = vadd.f32 %v730_v4, %v469_v52  ;;  %v88_v27 = vld [vmem:[#allocation2 + $0x110] sm:$0xff]  ;;  %v725_v28 = vadd.f32 %v724_v9, %v464_v60  ;;  %v89_v35 = vld [vmem:[#allocation2 + $0x118] sm:$0xff]  ;;  %v3386_v36 = vld [vmem:[#allocation5 + $0x100] sm:$0xff]  ;;  %v477_v40 = vmul.f32 %v3381_v16, %v93_v6 }
  0x51   :  { %v3388_v39 = vld [vmem:[#allocation5 + $0x108] sm:$0xff]  ;;  %v739_v41 = vadd.f32 %v475_v23, %v474_v21  ;;  %v3391_v42 = vld [vmem:[#allocation5 + $0x110] sm:$0xff]  ;;  %v3393_v43 = vld [vmem:[#allocation5 + $0x118] sm:$0xff]  ;;  %v470_v46 = vmul.f32 %v3386_v36, %v86_v25 }
  0x52   :  { %732 = vadd.xlane.f32.xlu1 %v731_v22  ;;  %v471_v47 = vmul.f32 %v3388_v39, %v87_v26  ;;  %v98_v50 = vld [vmem:[#allocation2 + $0x160] sm:$0xff]  ;;  %v726_v51 = vadd.f32 %v725_v28, %v465_v8  ;;  %v472_v52 = vmul.f32 %v3391_v42, %v88_v27  ;;  %v99_v53 = vld [vmem:[#allocation2 + $0x168] sm:$0xff]  ;;  %v100_v58 = vld [vmem:[#allocation2 + $0x170] sm:$0xff]  ;;  %v473_v1 = vmul.f32 %v3393_v43, %v89_v35 }
  0x53   :  { %v101_v59 = vld [vmem:[#allocation2 + $0x178] sm:$0xff]  ;;  %v740_v60 = vadd.f32 %v739_v41, %v476_v24  ;;  %v3399_v3 = vld [vmem:[#allocation5 + $0x160] sm:$0xff]  ;;  %v3401_v4 = vld [vmem:[#allocation5 + $0x168] sm:$0xff] }
  0x54   :  { %v734_v2 = vadd.f32 %v471_v47, %v470_v46  ;;  %5585 = vst [vmem:[#allocation12_spill] sm:$0xff] %v3401_v4  ;;  %v3403_v5 = vld [vmem:[#allocation5 + $0x170] sm:$0xff]  ;;  %727 = vadd.xlane.f32.xlu0 %v726_v51  ;;  %v3405_v6 = vld [vmem:[#allocation5 + $0x178] sm:$0xff]  ;;  %v482_v8 = vmul.f32 %v3399_v3, %v98_v50  ;;  %v483_v9 = vmul.f32 %v3401_v4, %v99_v53  ;;  %v94_v22 = vld [vmem:[#allocation2 + $0x140] sm:$0xff] }
  0x55   :  { %5586 = vst [vmem:[#allocation13_spill] sm:$0xff] %v3403_v5  ;;  %5587 = vst [vmem:[#allocation14_spill] sm:$0xff] %v3405_v6  ;;  %v484_v21 = vmul.f32 %v3403_v5, %v100_v58  ;;  %v95_v23 = vld [vmem:[#allocation2 + $0x148] sm:$0xff]  ;;  %v741_v24 = vadd.f32 %v740_v60, %v477_v40  ;;  %v96_v26 = vld [vmem:[#allocation2 + $0x150] sm:$0xff]  ;;  %v485_v35 = vmul.f32 %v3405_v6, %v101_v59 }
  0x56   :  { %v735_v25 = vadd.f32 %v734_v2, %v472_v52  ;;  %v97_v27 = vld [vmem:[#allocation2 + $0x158] sm:$0xff]  ;;  %v3410_v28 = vld [vmem:[#allocation5 + $0x140] sm:$0xff]  ;;  %v749_v41 = vadd.f32 %v483_v9, %v482_v8  ;;  %v3413_v46 = vld [vmem:[#allocation5 + $0x148] sm:$0xff] }
  0x57   :  { %5588 = vst [vmem:[#allocation15_spill] sm:$0xff] %v3410_v28  ;;  %5589 = vst [vmem:[#allocation16_spill] sm:$0xff] %v3413_v46  ;;  %v3415_v47 = vld [vmem:[#allocation5 + $0x150] sm:$0xff]  ;;  %v3417_v50 = vld [vmem:[#allocation5 + $0x158] sm:$0xff]  ;;  %v478_v51 = vmul.f32 %v3410_v28, %v94_v22  ;;  %742 = vadd.xlane.f32.xlu1 %v741_v24  ;;  %v479_v40 = vmul.f32 %v3413_v46, %v95_v23 }
  0x58   :  { %5590 = vst [vmem:[#allocation17_spill] sm:$0xff] %v3415_v47  ;;  %5591 = vst [vmem:[#allocation18_spill] sm:$0xff] %v3417_v50  ;;  %v736_v53 = vadd.f32 %v735_v25, %v473_v1  ;;  %v480_v52 = vmul.f32 %v3415_v47, %v96_v26  ;;  %v106_v58 = vld [vmem:[#allocation2 + $0x1a0] sm:$0xff]  ;;  %v107_v60 = vld [vmem:[#allocation2 + $0x1a8] sm:$0xff]  ;;  %v750_v5 = vadd.f32 %v749_v41, %v484_v21 }
  0x59   :  { %v108_v2 = vld [vmem:[#allocation2 + $0x1b0] sm:$0xff]  ;;  %v109_v59 = vld [vmem:[#allocation2 + $0x1b8] sm:$0xff]  ;;  %v3422_v8 = vld [vmem:[#allocation5 + $0x1a0] sm:$0xff]  ;;  %v481_v6 = vmul.f32 %v3417_v50, %v97_v27  ;;  %v744_v4 = vadd.f32 %v479_v40, %v478_v51 }
  0x5a   :  { %5592 = vst [vmem:[#allocation19_spill] sm:$0xff] %v3422_v8  ;;  %v3424_v9 = vld [vmem:[#allocation5 + $0x1a8] sm:$0xff]  ;;  %737 = vadd.xlane.f32.xlu0 %v736_v53  ;;  %v3427_v22 = vld [vmem:[#allocation5 + $0x1b0] sm:$0xff]  ;;  %v3429_v1 = vld [vmem:[#allocation5 + $0x1b8] sm:$0xff]  ;;  %v490_v23 = vmul.f32 %v3422_v8, %v106_v58  ;;  %v751_v26 = vadd.f32 %v750_v5, %v485_v35 }
  0x5b   :  { %5593 = vst [vmem:[#allocation20_spill] sm:$0xff] %v3424_v9  ;;  %5594 = vst [vmem:[#allocation21_spill] sm:$0xff] %v3427_v22  ;;  %v491_v24 = vmul.f32 %v3424_v9, %v107_v60  ;;  %v102_v25 = vld [vmem:[#allocation2 + $0x180] sm:$0xff]  ;;  %v492_v21 = vmul.f32 %v3427_v22, %v108_v2  ;;  %v103_v41 = vld [vmem:[#allocation2 + $0x188] sm:$0xff]  ;;  %v745_v28 = vadd.f32 %v744_v4, %v480_v52 }
  0x5c   :  { %5595 = vst [vmem:[#allocation22_spill] sm:$0xff] %v3429_v1  ;;  %v104_v47 = vld [vmem:[#allocation2 + $0x190] sm:$0xff]  ;;  %v105_v46 = vld [vmem:[#allocation2 + $0x198] sm:$0xff]  ;;  %v493_v53 = vmul.f32 %v3429_v1, %v109_v59  ;;  %v3435_v51 = vld [vmem:[#allocation5 + $0x180] sm:$0xff]  ;;  %752 = vadd.xlane.f32.xlu1 %v751_v26 }
  0x5d   :  { %v759_v27 = vadd.f32 %v491_v24, %v490_v23  ;;  %5596 = vst [vmem:[#allocation23_spill] sm:$0xff] %v3435_v51  ;;  %v3437_v40 = vld [vmem:[#allocation5 + $0x188] sm:$0xff]  ;;  %v3439_v50 = vld [vmem:[#allocation5 + $0x190] sm:$0xff]  ;;  %v3441_v58 = vld [vmem:[#allocation5 + $0x198] sm:$0xff]  ;;  %v486_v5 = vmul.f32 %v3435_v51, %v102_v25  ;;  %v746_v52 = vadd.f32 %v745_v28, %v481_v6 }
  0x5e   :  { %5597 = vst [vmem:[#allocation24_spill] sm:$0xff] %v3437_v40  ;;  %5598 = vst [vmem:[#allocation25_spill] sm:$0xff] %v3439_v50  ;;  %v487_v35 = vmul.f32 %v3437_v40, %v103_v41  ;;  %v488_v60 = vmul.f32 %v3439_v50, %v104_v47  ;;  %v114_v2 = vld [vmem:[#allocation2 + $0x1e0] sm:$0xff]  ;;  %v115_v4 = vld [vmem:[#allocation2 + $0x1e8] sm:$0xff]  ;;  %v489_v22 = vmul.f32 %v3441_v58, %v105_v46 }
  0x5f   :  { %5599 = vst [vmem:[#allocation26_spill] sm:$0xff] %v3441_v58  ;;  %v760_v59 = vadd.f32 %v759_v27, %v492_v21  ;;  %v116_v23 = vld [vmem:[#allocation2 + $0x1f0] sm:$0xff]  ;;  %v117_v24 = vld [vmem:[#allocation2 + $0x1f8] sm:$0xff]  ;;  %v3446_v1 = vld [vmem:[#allocation5 + $0x1e0] sm:$0xff]  ;;  %747 = vadd.xlane.f32.xlu0 %v746_v52 }
  0x60   :  { %5600 = vst [vmem:[#allocation27_spill] sm:$0xff] %v3446_v1  ;;  %v754_v9 = vadd.f32 %v487_v35, %v486_v5  ;;  %v3449_v26 = vld [vmem:[#allocation5 + $0x1e8] sm:$0xff]  ;;  %v3451_v8 = vld [vmem:[#allocation5 + $0x1f0] sm:$0xff]  ;;  %v3453_v25 = vld [vmem:[#allocation5 + $0x1f8] sm:$0xff]  ;;  %v498_v41 = vmul.f32 %v3446_v1, %v114_v2 }
  0x61   :  { %5601 = vst [vmem:[#allocation28_spill] sm:$0xff] %v3449_v26  ;;  %5602 = vst [vmem:[#allocation29_spill] sm:$0xff] %v3451_v8  ;;  %v761_v47 = vadd.f32 %v760_v59, %v493_v53  ;;  %v499_v6 = vmul.f32 %v3449_v26, %v115_v4  ;;  %v500_v28 = vmul.f32 %v3451_v8, %v116_v23  ;;  %v110_v21 = vld [vmem:[#allocation2 + $0x1c0] sm:$0xff]  ;;  %v111_v27 = vld [vmem:[#allocation2 + $0x1c8] sm:$0xff] }
  0x62   :  { %5603 = vst [vmem:[#allocation30_spill] sm:$0xff] %v3453_v25  ;;  %v112_v50 = vld [vmem:[#allocation2 + $0x1d0] sm:$0xff]  ;;  %v755_v40 = vadd.f32 %v754_v9, %v488_v60  ;;  %v113_v46 = vld [vmem:[#allocation2 + $0x1d8] sm:$0xff]  ;;  %v3458_v5 = vld [vmem:[#allocation5 + $0x1c0] sm:$0xff]  ;;  %v501_v58 = vmul.f32 %v3453_v25, %v117_v24 }
  0x63   :  { %5604 = vst [vmem:[#allocation31_spill] sm:$0xff] %v3458_v5  ;;  %v3460_v35 = vld [vmem:[#allocation5 + $0x1c8] sm:$0xff]  ;;  %762 = vadd.xlane.f32.xlu1 %v761_v47  ;;  %v769_v51 = vadd.f32 %v499_v6, %v498_v41  ;;  %v3463_v2 = vld [vmem:[#allocation5 + $0x1d0] sm:$0xff]  ;;  %v3465_v53 = vld [vmem:[#allocation5 + $0x1d8] sm:$0xff]  ;;  %v494_v4 = vmul.f32 %v3458_v5, %v110_v21 }
  0x64   :  { %5605 = vst [vmem:[#allocation32_spill] sm:$0xff] %v3460_v35  ;;  %5606 = vst [vmem:[#allocation33_spill] sm:$0xff] %v3463_v2  ;;  %v495_v52 = vmul.f32 %v3460_v35, %v111_v27  ;;  %v122_v59 = vld [vmem:[#allocation2 + $0x220] sm:$0xff]  ;;  %v756_v23 = vadd.f32 %v755_v40, %v489_v22  ;;  %v496_v9 = vmul.f32 %v3463_v2, %v112_v50  ;;  %v123_v60 = vld [vmem:[#allocation2 + $0x228] sm:$0xff] }
  0x65   :  { %5607 = vst [vmem:[#allocation34_spill] sm:$0xff] %v3465_v53  ;;  %v124_v8 = vld [vmem:[#allocation2 + $0x230] sm:$0xff]  ;;  %v125_v26 = vld [vmem:[#allocation2 + $0x238] sm:$0xff]  ;;  %v770_v1 = vadd.f32 %v769_v51, %v500_v28  ;;  %v497_v47 = vmul.f32 %v3465_v53, %v113_v46  ;;  %v3471_v41 = vld [vmem:[#allocation5 + $0x220] sm:$0xff] }
  0x66   :  { %v764_v24 = vadd.f32 %v495_v52, %v494_v4  ;;  %5608 = vst [vmem:[#allocation35_spill] sm:$0xff] %v3471_v41  ;;  %v3473_v6 = vld [vmem:[#allocation5 + $0x228] sm:$0xff]  ;;  %v3475_v25 = vld [vmem:[#allocation5 + $0x230] sm:$0xff]  ;;  %757 = vadd.xlane.f32.xlu0 %v756_v23  ;;  %v3477_v21 = vld [vmem:[#allocation5 + $0x238] sm:$0xff]  ;;  %v506_v22 = vmul.f32 %v3471_v41, %v122_v59 }
  0x67   :  { %5609 = vst [vmem:[#allocation36_spill] sm:$0xff] %v3473_v6  ;;  %5610 = vst [vmem:[#allocation37_spill] sm:$0xff] %v3475_v25  ;;  %v507_v50 = vmul.f32 %v3473_v6, %v123_v60  ;;  %v508_v40 = vmul.f32 %v3475_v25, %v124_v8  ;;  %v118_v27 = vld [vmem:[#allocation2 + $0x200] sm:$0xff]  ;;  %v119_v51 = vld [vmem:[#allocation2 + $0x208] sm:$0xff]  ;;  %v771_v28 = vadd.f32 %v770_v1, %v501_v58 }
  0x68   :  { %5611 = vst [vmem:[#allocation38_spill] sm:$0xff] %v3477_v21  ;;  %v765_v46 = vadd.f32 %v764_v24, %v496_v9  ;;  %v120_v4 = vld [vmem:[#allocation2 + $0x210] sm:$0xff]  ;;  %v121_v52 = vld [vmem:[#allocation2 + $0x218] sm:$0xff]  ;;  %v3482_v53 = vld [vmem:[#allocation5 + $0x200] sm:$0xff]  ;;  %v509_v2 = vmul.f32 %v3477_v21, %v125_v26 }
  0x69   :  { %5612 = vst [vmem:[#allocation39_spill] sm:$0xff] %v3482_v53  ;;  %v779_v35 = vadd.f32 %v507_v50, %v506_v22  ;;  %v3485_v23 = vld [vmem:[#allocation5 + $0x208] sm:$0xff]  ;;  %v3487_v5 = vld [vmem:[#allocation5 + $0x210] sm:$0xff]  ;;  %v3489_v59 = vld [vmem:[#allocation5 + $0x218] sm:$0xff]  ;;  %v502_v60 = vmul.f32 %v3482_v53, %v118_v27  ;;  %772 = vadd.xlane.f32.xlu1 %v771_v28 }
  0x6a   :  { %5613 = vst [vmem:[#allocation40_spill] sm:$0xff] %v3485_v23  ;;  %5614 = vst [vmem:[#allocation41_spill] sm:$0xff] %v3487_v5  ;;  %v766_v8 = vadd.f32 %v765_v46, %v497_v47  ;;  %v503_v1 = vmul.f32 %v3485_v23, %v119_v51  ;;  %v504_v58 = vmul.f32 %v3487_v5, %v120_v4  ;;  %v130_v9 = vld [vmem:[#allocation2 + $0x260] sm:$0xff]  ;;  %v131_v24 = vld [vmem:[#allocation2 + $0x268] sm:$0xff] }
  0x6b   :  { %5615 = vst [vmem:[#allocation42_spill] sm:$0xff] %v3489_v59  ;;  %v132_v25 = vld [vmem:[#allocation2 + $0x270] sm:$0xff]  ;;  %v780_v6 = vadd.f32 %v779_v35, %v508_v40  ;;  %v133_v26 = vld [vmem:[#allocation2 + $0x278] sm:$0xff]  ;;  %v3494_v22 = vld [vmem:[#allocation5 + $0x260] sm:$0xff]  ;;  %v505_v21 = vmul.f32 %v3489_v59, %v121_v52 }
  0x6c   :  { %5616 = vst [vmem:[#allocation43_spill] sm:$0xff] %v3494_v22  ;;  %v3496_v50 = vld [vmem:[#allocation5 + $0x268] sm:$0xff]  ;;  %767 = vadd.xlane.f32.xlu0 %v766_v8  ;;  %v774_v41 = vadd.f32 %v503_v1, %v502_v60  ;;  %v3499_v27 = vld [vmem:[#allocation5 + $0x270] sm:$0xff]  ;;  %v3501_v47 = vld [vmem:[#allocation5 + $0x278] sm:$0xff]  ;;  %v514_v51 = vmul.f32 %v3494_v22, %v130_v9 }
  0x6d   :  { %5617 = vst [vmem:[#allocation44_spill] sm:$0xff] %v3496_v50  ;;  %5618 = vst [vmem:[#allocation45_spill] sm:$0xff] %v3499_v27  ;;  %v515_v28 = vmul.f32 %v3496_v50, %v131_v24  ;;  %v126_v46 = vld [vmem:[#allocation2 + $0x240] sm:$0xff]  ;;  %v781_v4 = vadd.f32 %v780_v6, %v509_v2  ;;  %v516_v35 = vmul.f32 %v3499_v27, %v132_v25  ;;  %v127_v40 = vld [vmem:[#allocation2 + $0x248] sm:$0xff] }
  0x6e   :  { %5619 = vst [vmem:[#allocation46_spill] sm:$0xff] %v3501_v47  ;;  %v128_v5 = vld [vmem:[#allocation2 + $0x250] sm:$0xff]  ;;  %v129_v23 = vld [vmem:[#allocation2 + $0x258] sm:$0xff]  ;;  %v775_v53 = vadd.f32 %v774_v41, %v504_v58  ;;  %v517_v8 = vmul.f32 %v3501_v47, %v133_v26  ;;  %v3507_v60 = vld [vmem:[#allocation5 + $0x240] sm:$0xff] }
  0x6f   :  { %v789_v52 = vadd.f32 %v515_v28, %v514_v51  ;;  %5620 = vst [vmem:[#allocation47_spill] sm:$0xff] %v3507_v60  ;;  %v3509_v1 = vld [vmem:[#allocation5 + $0x248] sm:$0xff]  ;;  %v3511_v59 = vld [vmem:[#allocation5 + $0x250] sm:$0xff]  ;;  %782 = vadd.xlane.f32.xlu1 %v781_v4  ;;  %v3513_v9 = vld [vmem:[#allocation5 + $0x258] sm:$0xff]  ;;  %v510_v2 = vmul.f32 %v3507_v60, %v126_v46 }
  0x70   :  { %5621 = vst [vmem:[#allocation48_spill] sm:$0xff] %v3509_v1  ;;  %5622 = vst [vmem:[#allocation49_spill] sm:$0xff] %v3511_v59  ;;  %v511_v25 = vmul.f32 %v3509_v1, %v127_v40  ;;  %v512_v6 = vmul.f32 %v3511_v59, %v128_v5  ;;  %v138_v24 = vld [vmem:[#allocation2 + $0x2a0] sm:$0xff]  ;;  %v139_v41 = vld [vmem:[#allocation2 + $0x2a8] sm:$0xff]  ;;  %v776_v58 = vadd.f32 %v775_v53, %v505_v21 }
  0x71   :  { %5623 = vst [vmem:[#allocation50_spill] sm:$0xff] %v3513_v9  ;;  %v790_v26 = vadd.f32 %v789_v52, %v516_v35  ;;  %v140_v51 = vld [vmem:[#allocation2 + $0x2b0] sm:$0xff]  ;;  %v141_v28 = vld [vmem:[#allocation2 + $0x2b8] sm:$0xff]  ;;  %v3518_v47 = vld [vmem:[#allocation5 + $0x2a0] sm:$0xff]  ;;  %v513_v27 = vmul.f32 %v3513_v9, %v129_v23 }
  0x72   :  { %5624 = vst [vmem:[#allocation51_spill] sm:$0xff] %v3518_v47  ;;  %v784_v50 = vadd.f32 %v511_v25, %v510_v2  ;;  %v3521_v4 = vld [vmem:[#allocation5 + $0x2a8] sm:$0xff]  ;;  %v3523_v22 = vld [vmem:[#allocation5 + $0x2b0] sm:$0xff]  ;;  %v3525_v46 = vld [vmem:[#allocation5 + $0x2b8] sm:$0xff]  ;;  %v522_v40 = vmul.f32 %v3518_v47, %v138_v24  ;;  %777 = vadd.xlane.f32.xlu0 %v776_v58 }
  0x73   :  { %5625 = vst [vmem:[#allocation52_spill] sm:$0xff] %v3521_v4  ;;  %5626 = vst [vmem:[#allocation53_spill] sm:$0xff] %v3523_v22  ;;  %v791_v5 = vadd.f32 %v790_v26, %v517_v8  ;;  %v523_v53 = vmul.f32 %v3521_v4, %v139_v41  ;;  %v524_v21 = vmul.f32 %v3523_v22, %v140_v51  ;;  %v134_v35 = vld [vmem:[#allocation2 + $0x280] sm:$0xff]  ;;  %v135_v52 = vld [vmem:[#allocation2 + $0x288] sm:$0xff] }
  0x74   :  { %5627 = vst [vmem:[#allocation54_spill] sm:$0xff] %v3525_v46  ;;  %v136_v59 = vld [vmem:[#allocation2 + $0x290] sm:$0xff]  ;;  %v785_v1 = vadd.f32 %v784_v50, %v512_v6  ;;  %v137_v23 = vld [vmem:[#allocation2 + $0x298] sm:$0xff]  ;;  %v3530_v2 = vld [vmem:[#allocation5 + $0x280] sm:$0xff]  ;;  %v525_v9 = vmul.f32 %v3525_v46, %v141_v28 }
  0x75   :  { %5628 = vst [vmem:[#allocation55_spill] sm:$0xff] %v3530_v2  ;;  %v3532_v25 = vld [vmem:[#allocation5 + $0x288] sm:$0xff]  ;;  %792 = vadd.xlane.f32.xlu1 %v791_v5  ;;  %v799_v60 = vadd.f32 %v523_v53, %v522_v40  ;;  %v3535_v24 = vld [vmem:[#allocation5 + $0x290] sm:$0xff]  ;;  %v3537_v8 = vld [vmem:[#allocation5 + $0x298] sm:$0xff]  ;;  %v518_v41 = vmul.f32 %v3530_v2, %v134_v35 }
  0x76   :  { %5629 = vst [vmem:[#allocation56_spill] sm:$0xff] %v3532_v25  ;;  %5630 = vst [vmem:[#allocation57_spill] sm:$0xff] %v3535_v24  ;;  %v519_v58 = vmul.f32 %v3532_v25, %v135_v52  ;;  %v146_v26 = vld [vmem:[#allocation2 + $0x2e0] sm:$0xff]  ;;  %v786_v51 = vadd.f32 %v785_v1, %v513_v27  ;;  %v520_v50 = vmul.f32 %v3535_v24, %v136_v59  ;;  %v147_v6 = vld [vmem:[#allocation2 + $0x2e8] sm:$0xff] }
  0x77   :  { %5631 = vst [vmem:[#allocation58_spill] sm:$0xff] %v3537_v8  ;;  %v148_v22 = vld [vmem:[#allocation2 + $0x2f0] sm:$0xff]  ;;  %v149_v4 = vld [vmem:[#allocation2 + $0x2f8] sm:$0xff]  ;;  %v800_v47 = vadd.f32 %v799_v60, %v524_v21  ;;  %v521_v5 = vmul.f32 %v3537_v8, %v137_v23  ;;  %v3543_v40 = vld [vmem:[#allocation5 + $0x2e0] sm:$0xff] }
  0x78   :  { %v794_v28 = vadd.f32 %v519_v58, %v518_v41  ;;  %5632 = vst [vmem:[#allocation59_spill] sm:$0xff] %v3543_v40  ;;  %v3545_v53 = vld [vmem:[#allocation5 + $0x2e8] sm:$0xff]  ;;  %v3547_v46 = vld [vmem:[#allocation5 + $0x2f0] sm:$0xff]  ;;  %787 = vadd.xlane.f32.xlu0 %v786_v51  ;;  %v3549_v35 = vld [vmem:[#allocation5 + $0x2f8] sm:$0xff]  ;;  %v530_v27 = vmul.f32 %v3543_v40, %v146_v26 }
  0x79   :  { %5633 = vst [vmem:[#allocation60_spill] sm:$0xff] %v3545_v53  ;;  %5634 = vst [vmem:[#allocation61_spill] sm:$0xff] %v3547_v46  ;;  %v531_v59 = vmul.f32 %v3545_v53, %v147_v6  ;;  %v532_v1 = vmul.f32 %v3547_v46, %v148_v22  ;;  %v142_v52 = vld [vmem:[#allocation2 + $0x2c0] sm:$0xff]  ;;  %v143_v60 = vld [vmem:[#allocation2 + $0x2c8] sm:$0xff]  ;;  %v801_v21 = vadd.f32 %v800_v47, %v525_v9 }
  0x7a   :  { %5635 = vst [vmem:[#allocation62_spill] sm:$0xff] %v3549_v35  ;;  %v795_v23 = vadd.f32 %v794_v28, %v520_v50  ;;  %v144_v41 = vld [vmem:[#allocation2 + $0x2d0] sm:$0xff]  ;;  %v145_v58 = vld [vmem:[#allocation2 + $0x2d8] sm:$0xff]  ;;  %v3554_v8 = vld [vmem:[#allocation5 + $0x2c0] sm:$0xff]  ;;  %v533_v24 = vmul.f32 %v3549_v35, %v149_v4 }
  0x7b   :  { %5636 = vst [vmem:[#allocation63_spill] sm:$0xff] %v3554_v8  ;;  %v809_v25 = vadd.f32 %v531_v59, %v530_v27  ;;  %v3557_v51 = vld [vmem:[#allocation5 + $0x2c8] sm:$0xff]  ;;  %v3559_v2 = vld [vmem:[#allocation5 + $0x2d0] sm:$0xff]  ;;  %v3561_v26 = vld [vmem:[#allocation5 + $0x2d8] sm:$0xff]  ;;  %v526_v6 = vmul.f32 %v3554_v8, %v142_v52  ;;  %802 = vadd.xlane.f32.xlu1 %v801_v21 }
  0x7c   :  { %5637 = vst [vmem:[#allocation64_spill] sm:$0xff] %v3557_v51  ;;  %5638 = vst [vmem:[#allocation65_spill] sm:$0xff] %v3559_v2  ;;  %v796_v22 = vadd.f32 %v795_v23, %v521_v5  ;;  %v527_v47 = vmul.f32 %v3557_v51, %v143_v60  ;;  %v528_v9 = vmul.f32 %v3559_v2, %v144_v41  ;;  %v154_v50 = vld [vmem:[#allocation2 + $0x320] sm:$0xff]  ;;  %v155_v28 = vld [vmem:[#allocation2 + $0x328] sm:$0xff] }
  0x7d   :  { %5639 = vst [vmem:[#allocation66_spill] sm:$0xff] %v3561_v26  ;;  %v156_v46 = vld [vmem:[#allocation2 + $0x330] sm:$0xff]  ;;  %v810_v53 = vadd.f32 %v809_v25, %v532_v1  ;;  %v157_v4 = vld [vmem:[#allocation2 + $0x338] sm:$0xff]  ;;  %v3566_v27 = vld [vmem:[#allocation5 + $0x320] sm:$0xff]  ;;  %v529_v35 = vmul.f32 %v3561_v26, %v145_v58 }
  0x7e   :  { %5640 = vst [vmem:[#allocation67_spill] sm:$0xff] %v3566_v27  ;;  %v3568_v59 = vld [vmem:[#allocation5 + $0x328] sm:$0xff]  ;;  %797 = vadd.xlane.f32.xlu0 %v796_v22  ;;  %v804_v40 = vadd.f32 %v527_v47, %v526_v6  ;;  %v3571_v52 = vld [vmem:[#allocation5 + $0x330] sm:$0xff]  ;;  %v3573_v5 = vld [vmem:[#allocation5 + $0x338] sm:$0xff]  ;;  %v538_v60 = vmul.f32 %v3566_v27, %v154_v50 }
  0x7f   :  { %5641 = vst [vmem:[#allocation68_spill] sm:$0xff] %v3568_v59  ;;  %5642 = vst [vmem:[#allocation69_spill] sm:$0xff] %v3571_v52  ;;  %v539_v21 = vmul.f32 %v3568_v59, %v155_v28  ;;  %v150_v23 = vld [vmem:[#allocation2 + $0x300] sm:$0xff]  ;;  %v811_v41 = vadd.f32 %v810_v53, %v533_v24  ;;  %v540_v25 = vmul.f32 %v3571_v52, %v156_v46  ;;  %v151_v1 = vld [vmem:[#allocation2 + $0x308] sm:$0xff] }
  0x80   :  { %5643 = vst [vmem:[#allocation70_spill] sm:$0xff] %v3573_v5  ;;  %v152_v2 = vld [vmem:[#allocation2 + $0x310] sm:$0xff]  ;;  %v153_v51 = vld [vmem:[#allocation2 + $0x318] sm:$0xff]  ;;  %v805_v8 = vadd.f32 %v804_v40, %v528_v9  ;;  %v541_v22 = vmul.f32 %v3573_v5, %v157_v4  ;;  %v3579_v6 = vld [vmem:[#allocation5 + $0x300] sm:$0xff] }
  0x81   :  { %v819_v58 = vadd.f32 %v539_v21, %v538_v60  ;;  %5644 = vst [vmem:[#allocation71_spill] sm:$0xff] %v3579_v6  ;;  %v3581_v47 = vld [vmem:[#allocation5 + $0x308] sm:$0xff]  ;;  %v3583_v26 = vld [vmem:[#allocation5 + $0x310] sm:$0xff]  ;;  %812 = vadd.xlane.f32.xlu1 %v811_v41  ;;  %v3585_v50 = vld [vmem:[#allocation5 + $0x318] sm:$0xff]  ;;  %v534_v24 = vmul.f32 %v3579_v6, %v150_v23 }
  0x82   :  { %5645 = vst [vmem:[#allocation72_spill] sm:$0xff] %v3581_v47  ;;  %5646 = vst [vmem:[#allocation73_spill] sm:$0xff] %v3583_v26  ;;  %v535_v46 = vmul.f32 %v3581_v47, %v151_v1  ;;  %v536_v53 = vmul.f32 %v3583_v26, %v152_v2  ;;  %v162_v28 = vld [vmem:[#allocation2 + $0x360] sm:$0xff]  ;;  %v163_v40 = vld [vmem:[#allocation2 + $0x368] sm:$0xff]  ;;  %v806_v9 = vadd.f32 %v805_v8, %v529_v35 }
  0x83   :  { %5647 = vst [vmem:[#allocation74_spill] sm:$0xff] %v3585_v50  ;;  %v820_v4 = vadd.f32 %v819_v58, %v540_v25  ;;  %v164_v60 = vld [vmem:[#allocation2 + $0x370] sm:$0xff]  ;;  %v165_v21 = vld [vmem:[#allocation2 + $0x378] sm:$0xff]  ;;  %v3590_v5 = vld [vmem:[#allocation5 + $0x360] sm:$0xff]  ;;  %v537_v52 = vmul.f32 %v3585_v50, %v153_v51 }
  0x84   :  { %5648 = vst [vmem:[#allocation75_spill] sm:$0xff] %v3590_v5  ;;  %v814_v59 = vadd.f32 %v535_v46, %v534_v24  ;;  %v3593_v41 = vld [vmem:[#allocation5 + $0x368] sm:$0xff]  ;;  %v3595_v27 = vld [vmem:[#allocation5 + $0x370] sm:$0xff]  ;;  %v3597_v23 = vld [vmem:[#allocation5 + $0x378] sm:$0xff]  ;;  %v546_v1 = vmul.f32 %v3590_v5, %v162_v28  ;;  %807 = vadd.xlane.f32.xlu0 %v806_v9 }
  0x85   :  { %5649 = vst [vmem:[#allocation76_spill] sm:$0xff] %v3593_v41  ;;  %5650 = vst [vmem:[#allocation77_spill] sm:$0xff] %v3595_v27  ;;  %v821_v2 = vadd.f32 %v820_v4, %v541_v22  ;;  %v547_v8 = vmul.f32 %v3593_v41, %v163_v40  ;;  %v548_v35 = vmul.f32 %v3595_v27, %v164_v60  ;;  %v158_v25 = vld [vmem:[#allocation2 + $0x340] sm:$0xff]  ;;  %v159_v58 = vld [vmem:[#allocation2 + $0x348] sm:$0xff] }
  0x86   :  { %5651 = vst [vmem:[#allocation78_spill] sm:$0xff] %v3597_v23  ;;  %v160_v26 = vld [vmem:[#allocation2 + $0x350] sm:$0xff]  ;;  %v815_v47 = vadd.f32 %v814_v59, %v536_v53  ;;  %v161_v51 = vld [vmem:[#allocation2 + $0x358] sm:$0xff]  ;;  %v3602_v24 = vld [vmem:[#allocation5 + $0x340] sm:$0xff]  ;;  %v549_v50 = vmul.f32 %v3597_v23, %v165_v21 }
  0x87   :  { %5652 = vst [vmem:[#allocation79_spill] sm:$0xff] %v3602_v24  ;;  %v3604_v46 = vld [vmem:[#allocation5 + $0x348] sm:$0xff]  ;;  %822 = vadd.xlane.f32.xlu1 %v821_v2  ;;  %v829_v6 = vadd.f32 %v547_v8, %v546_v1  ;;  %v3607_v28 = vld [vmem:[#allocation5 + $0x350] sm:$0xff]  ;;  %v3609_v22 = vld [vmem:[#allocation5 + $0x358] sm:$0xff]  ;;  %v542_v40 = vmul.f32 %v3602_v24, %v158_v25 }
  0x88   :  { %5653 = vst [vmem:[#allocation80_spill] sm:$0xff] %v3604_v46  ;;  %5654 = vst [vmem:[#allocation81_spill] sm:$0xff] %v3607_v28  ;;  %v543_v9 = vmul.f32 %v3604_v46, %v159_v58  ;;  %v170_v4 = vld [vmem:[#allocation2 + $0x3a0] sm:$0xff]  ;;  %v816_v60 = vadd.f32 %v815_v47, %v537_v52  ;;  %v544_v59 = vmul.f32 %v3607_v28, %v160_v26  ;;  %v171_v53 = vld [vmem:[#allocation2 + $0x3a8] sm:$0xff] }
  0x89   :  { %5655 = vst [vmem:[#allocation82_spill] sm:$0xff] %v3609_v22  ;;  %v172_v27 = vld [vmem:[#allocation2 + $0x3b0] sm:$0xff]  ;;  %v173_v41 = vld [vmem:[#allocation2 + $0x3b8] sm:$0xff]  ;;  %v830_v5 = vadd.f32 %v829_v6, %v548_v35  ;;  %v545_v2 = vmul.f32 %v3609_v22, %v161_v51  ;;  %v3615_v1 = vld [vmem:[#allocation5 + $0x3a0] sm:$0xff] }
  0x8a   :  { %v824_v21 = vadd.f32 %v543_v9, %v542_v40  ;;  %5656 = vst [vmem:[#allocation83_spill] sm:$0xff] %v3615_v1  ;;  %v3617_v8 = vld [vmem:[#allocation5 + $0x3a8] sm:$0xff]  ;;  %v3619_v23 = vld [vmem:[#allocation5 + $0x3b0] sm:$0xff]  ;;  %817 = vadd.xlane.f32.xlu0 %v816_v60  ;;  %v3621_v25 = vld [vmem:[#allocation5 + $0x3b8] sm:$0xff]  ;;  %v554_v52 = vmul.f32 %v3615_v1, %v170_v4 }
  0x8b   :  { %5657 = vst [vmem:[#allocation84_spill] sm:$0xff] %v3617_v8  ;;  %5658 = vst [vmem:[#allocation85_spill] sm:$0xff] %v3619_v23  ;;  %v555_v26 = vmul.f32 %v3617_v8, %v171_v53  ;;  %v556_v47 = vmul.f32 %v3619_v23, %v172_v27  ;;  %v166_v58 = vld [vmem:[#allocation2 + $0x380] sm:$0xff]  ;;  %v167_v6 = vld [vmem:[#allocation2 + $0x388] sm:$0xff]  ;;  %v831_v35 = vadd.f32 %v830_v5, %v549_v50 }
  0x8c   :  { %5659 = vst [vmem:[#allocation86_spill] sm:$0xff] %v3621_v25  ;;  %v825_v51 = vadd.f32 %v824_v21, %v544_v59  ;;  %v168_v40 = vld [vmem:[#allocation2 + $0x390] sm:$0xff]  ;;  %v169_v9 = vld [vmem:[#allocation2 + $0x398] sm:$0xff]  ;;  %v3626_v22 = vld [vmem:[#allocation5 + $0x380] sm:$0xff]  ;;  %v557_v28 = vmul.f32 %v3621_v25, %v173_v41 }
  0x8d   :  { %5660 = vst [vmem:[#allocation87_spill] sm:$0xff] %v3626_v22  ;;  %v839_v46 = vadd.f32 %v555_v26, %v554_v52  ;;  %v3629_v60 = vld [vmem:[#allocation5 + $0x388] sm:$0xff]  ;;  %v3631_v24 = vld [vmem:[#allocation5 + $0x390] sm:$0xff]  ;;  %v3633_v4 = vld [vmem:[#allocation5 + $0x398] sm:$0xff]  ;;  %v550_v53 = vmul.f32 %v3626_v22, %v166_v58  ;;  %832 = vadd.xlane.f32.xlu1 %v831_v35 }
  0x8e   :  { %5661 = vst [vmem:[#allocation88_spill] sm:$0xff] %v3629_v60  ;;  %5662 = vst [vmem:[#allocation89_spill] sm:$0xff] %v3631_v24  ;;  %v826_v27 = vadd.f32 %v825_v51, %v545_v2  ;;  %v551_v5 = vmul.f32 %v3629_v60, %v167_v6  ;;  %v552_v50 = vmul.f32 %v3631_v24, %v168_v40  ;;  %v178_v59 = vld [vmem:[#allocation2 + $0x3e0] sm:$0xff]  ;;  %v179_v21 = vld [vmem:[#allocation2 + $0x3e8] sm:$0xff] }
  0x8f   :  { %5663 = vst [vmem:[#allocation90_spill] sm:$0xff] %v3633_v4  ;;  %v180_v23 = vld [vmem:[#allocation2 + $0x3f0] sm:$0xff]  ;;  %v840_v8 = vadd.f32 %v839_v46, %v556_v47  ;;  %v181_v41 = vld [vmem:[#allocation2 + $0x3f8] sm:$0xff]  ;;  %v3638_v52 = vld [vmem:[#allocation5 + $0x3e0] sm:$0xff]  ;;  %v553_v25 = vmul.f32 %v3633_v4, %v169_v9 }
  0x90   :  { %5664 = vst [vmem:[#allocation91_spill] sm:$0xff] %v3638_v52  ;;  %v3640_v26 = vld [vmem:[#allocation5 + $0x3e8] sm:$0xff]  ;;  %827 = vadd.xlane.f32.xlu0 %v826_v27  ;;  %v834_v1 = vadd.f32 %v551_v5, %v550_v53  ;;  %v3643_v58 = vld [vmem:[#allocation5 + $0x3f0] sm:$0xff]  ;;  %v3645_v2 = vld [vmem:[#allocation5 + $0x3f8] sm:$0xff]  ;;  %v562_v6 = vmul.f32 %v3638_v52, %v178_v59 }
  0x91   :  { %5665 = vst [vmem:[#allocation92_spill] sm:$0xff] %v3640_v26  ;;  %5666 = vst [vmem:[#allocation93_spill] sm:$0xff] %v3643_v58  ;;  %v563_v35 = vmul.f32 %v3640_v26, %v179_v21  ;;  %v174_v51 = vld [vmem:[#allocation2 + $0x3c0] sm:$0xff]  ;;  %v841_v40 = vadd.f32 %v840_v8, %v557_v28  ;;  %v564_v46 = vmul.f32 %v3643_v58, %v180_v23  ;;  %v175_v47 = vld [vmem:[#allocation2 + $0x3c8] sm:$0xff] }
  0x92   :  { %5667 = vst [vmem:[#allocation94_spill] sm:$0xff] %v3645_v2  ;;  %v176_v24 = vld [vmem:[#allocation2 + $0x3d0] sm:$0xff]  ;;  %v177_v60 = vld [vmem:[#allocation2 + $0x3d8] sm:$0xff]  ;;  %v835_v22 = vadd.f32 %v834_v1, %v552_v50  ;;  %v565_v27 = vmul.f32 %v3645_v2, %v181_v41  ;;  %v3651_v53 = vld [vmem:[#allocation5 + $0x3c0] sm:$0xff] }
  0x93   :  { %v849_v9 = vadd.f32 %v563_v35, %v562_v6  ;;  %v3653_v5 = vld [vmem:[#allocation5 + $0x3c8] sm:$0xff]  ;;  %v3655_v4 = vld [vmem:[#allocation5 + $0x3d0] sm:$0xff]  ;;  %842 = vadd.xlane.f32.xlu1 %v841_v40  ;;  %v3657_v59 = vld [vmem:[#allocation5 + $0x3d8] sm:$0xff]  ;;  %v558_v28 = vmul.f32 %v3651_v53, %v174_v51 }
  0x94   :  { %5668 = vst [vmem:[#allocation95_spill] sm:$0xff] %v3653_v5  ;;  %5669 = vst [vmem:[#allocation96_spill] sm:$0xff] %v3655_v4  ;;  %v559_v23 = vmul.f32 %v3653_v5, %v175_v47  ;;  %v560_v8 = vmul.f32 %v3655_v4, %v176_v24  ;;  %v186_v21 = vld [vmem:[#allocation2 + $0x420] sm:$0xff]  ;;  %v187_v1 = vld [vmem:[#allocation2 + $0x428] sm:$0xff]  ;;  %v836_v50 = vadd.f32 %v835_v22, %v553_v25 }
  0x95   :  { %v850_v41 = vadd.f32 %v849_v9, %v564_v46  ;;  %v561_v6 = vmul.f32 %v3657_v59, %v177_v60  ;;  %v188_v35 = vld [vmem:[#allocation2 + $0x430] sm:$0xff]  ;;  %v189_v2 = vld [vmem:[#allocation2 + $0x438] sm:$0xff]  ;;  %v570_v58 = vmul.f32 %v3314_v44, %v186_v21  ;;  %v182_v26 = vld [vmem:[#allocation2 + $0x400] sm:$0xff]  ;;  %v571_v52 = vmul.f32 %v3316_v45, %v187_v1 }
  0x96   :  { %v844_v40 = vadd.f32 %v559_v23, %v558_v28  ;;  %v572_v51 = vmul.f32 %v3319_v48, %v188_v35  ;;  %v573_v47 = vmul.f32 %v3321_v49, %v189_v2  ;;  %v183_v5 = vld [vmem:[#allocation2 + $0x408] sm:$0xff]  ;;  %v184_v24 = vld [vmem:[#allocation2 + $0x410] sm:$0xff]  ;;  %v185_v4 = vld [vmem:[#allocation2 + $0x418] sm:$0xff]  ;;  %837 = vadd.xlane.f32.xlu0 %v836_v50  ;;  %v566_v25 = vmul.f32 %v3291_v17, %v182_v26 }
  0x97   :  { %v851_v22 = vadd.f32 %v850_v41, %v565_v27  ;;  %v567_v60 = vmul.f32 %v3293_v18, %v183_v5  ;;  %v568_v46 = vmul.f32 %v3295_v19, %v184_v24  ;;  %v194_v44 = vld [vmem:[#allocation2 + $0x460] sm:$0xff]  ;;  %v195_v9 = vld [vmem:[#allocation2 + $0x468] sm:$0xff]  ;;  %v196_v28 = vld [vmem:[#allocation2 + $0x470] sm:$0xff]  ;;  %v859_v45 = vadd.f32 %v571_v52, %v570_v58 }
  0x98   :  { %v845_v23 = vadd.f32 %v844_v40, %v560_v8  ;;  %v569_v48 = vmul.f32 %v3297_v20, %v185_v4  ;;  %v197_v21 = vld [vmem:[#allocation2 + $0x478] sm:$0xff]  ;;  %v578_v49 = vmul.f32 %v3302_v29, %v194_v44  ;;  %v190_v2 = vld [vmem:[#allocation2 + $0x440] sm:$0xff]  ;;  %v191_v1 = vld [vmem:[#allocation2 + $0x448] sm:$0xff]  ;;  %v579_v17 = vmul.f32 %v3305_v32, %v195_v9 }
  0x99   :  { %852 = vadd.xlane.f32.xlu1 %v851_v22  ;;  %v854_v27 = vadd.f32 %v567_v60, %v566_v25  ;;  %v580_v18 = vmul.f32 %v3307_v33, %v196_v28  ;;  %v581_v19 = vmul.f32 %v3309_v34, %v197_v21  ;;  %v192_v26 = vld [vmem:[#allocation2 + $0x450] sm:$0xff]  ;;  %v193_v5 = vld [vmem:[#allocation2 + $0x458] sm:$0xff]  ;;  %v202_v50 = vld [vmem:[#allocation2 + $0x4a0] sm:$0xff]  ;;  %v860_v52 = vadd.f32 %v859_v45, %v572_v51 }
  0x9a   :  { %v846_v8 = vadd.f32 %v845_v23, %v561_v6  ;;  %v2684_v58 = vld [vmem:[#allocation5 + $0x40] sm:$0xff]  ;;  %v2685_v4 = vld [vmem:[#allocation5 + $0x48] sm:$0xff]  ;;  %v204_v35 = vld [vmem:[#allocation2 + $0x4b0] sm:$0xff]  ;;  %v869_v22 = vadd.f32 %v579_v17, %v578_v49  ;;  %v586_v6 = vmul.f32 %v3327_v61, %v202_v50 }
  0x9b   :  { %v574_v20 = vmul.f32 %v2684_v58, %v190_v2  ;;  %v575_v41 = vmul.f32 %v2685_v4, %v191_v1  ;;  %v203_v29 = vld [vmem:[#allocation2 + $0x4a8] sm:$0xff]  ;;  %v205_v40 = vld [vmem:[#allocation2 + $0x4b8] sm:$0xff]  ;;  %v855_v24 = vadd.f32 %v854_v27, %v568_v46  ;;  %v2686_v25 = vld [vmem:[#allocation5 + $0x50] sm:$0xff]  ;;  %v861_v9 = vadd.f32 %v860_v52, %v573_v47 }
  0x9c   :  { %v576_v32 = vmul.f32 %v2686_v25, %v192_v26  ;;  %v2687_v60 = vld [vmem:[#allocation5 + $0x58] sm:$0xff]  ;;  %v198_v44 = vld [vmem:[#allocation2 + $0x480] sm:$0xff]  ;;  %v199_v34 = vld [vmem:[#allocation2 + $0x488] sm:$0xff]  ;;  %847 = vadd.xlane.f32.xlu0 %v846_v8  ;;  %v587_v51 = vmul.f32 %v3329_v62, %v203_v29  ;;  %v870_v1 = vadd.f32 %v869_v22, %v580_v18  ;;  %v588_v46 = vmul.f32 %v3331_v63, %v204_v35 }
  0x9d   :  { %v577_v33 = vmul.f32 %v2687_v60, %v193_v5  ;;  %v864_v28 = vadd.f32 %v575_v41, %v574_v20  ;;  %v200_v23 = vld [vmem:[#allocation2 + $0x490] sm:$0xff]  ;;  %v201_v45 = vld [vmem:[#allocation2 + $0x498] sm:$0xff]  ;;  %v210_v21 = vld [vmem:[#allocation2 + $0x4e0] sm:$0xff]  ;;  %v856_v2 = vadd.f32 %v855_v24, %v569_v48  ;;  %v589_v49 = vmul.f32 %v3333_v0, %v205_v40  ;;  %862 = vadd.xlane.f32.xlu1 %v861_v9 }
  0x9e   :  { %v211_v27 = vld [vmem:[#allocation2 + $0x4e8] sm:$0xff]  ;;  %v212_v17 = vld [vmem:[#allocation2 + $0x4f0] sm:$0xff]  ;;  %v879_v5 = vadd.f32 %v587_v51, %v586_v6  ;;  %v582_v47 = vmul.f32 %v3338_v10, %v198_v44  ;;  %v583_v61 = vmul.f32 %v3341_v13, %v199_v34  ;;  %v213_v50 = vld [vmem:[#allocation2 + $0x4f8] sm:$0xff]  ;;  %v871_v52 = vadd.f32 %v870_v1, %v581_v19 }
  0x9f   :  { %v865_v26 = vadd.f32 %v864_v28, %v576_v32  ;;  %v206_v62 = vld [vmem:[#allocation2 + $0x4c0] sm:$0xff]  ;;  %v207_v8 = vld [vmem:[#allocation2 + $0x4c8] sm:$0xff]  ;;  %v584_v48 = vmul.f32 %v3343_v14, %v200_v23  ;;  %v585_v18 = vmul.f32 %v3345_v15, %v201_v45  ;;  %v594_v63 = vmul.f32 %v3350_v30, %v210_v21  ;;  %v208_v0 = vld [vmem:[#allocation2 + $0x4d0] sm:$0xff] }
  0xa0   :  { %857 = vadd.xlane.f32.xlu0 %v856_v2  ;;  %v880_v20 = vadd.f32 %v879_v5, %v588_v46  ;;  %v874_v4 = vadd.f32 %v583_v61, %v582_v47  ;;  %v595_v41 = vmul.f32 %v3352_v31, %v211_v27  ;;  %v209_v10 = vld [vmem:[#allocation2 + $0x4d8] sm:$0xff]  ;;  %v218_v29 = vld [vmem:[#allocation2 + $0x520] sm:$0xff]  ;;  %v219_v13 = vld [vmem:[#allocation2 + $0x528] sm:$0xff]  ;;  %v596_v35 = vmul.f32 %v3355_v37, %v212_v17 }
  0xa1   :  { %v866_v58 = vadd.f32 %v865_v26, %v577_v33  ;;  %v597_v19 = vmul.f32 %v3357_v38, %v213_v50  ;;  %v590_v14 = vmul.f32 %v3363_v54, %v206_v62  ;;  %v591_v15 = vmul.f32 %v3365_v55, %v207_v8  ;;  %v220_v40 = vld [vmem:[#allocation2 + $0x530] sm:$0xff]  ;;  %v221_v30 = vld [vmem:[#allocation2 + $0x538] sm:$0xff]  ;;  %872 = vadd.xlane.f32.xlu1 %v871_v52  ;;  %v214_v31 = vld [vmem:[#allocation2 + $0x500] sm:$0xff] }
  0xa2   :  { %v881_v24 = vadd.f32 %v880_v20, %v589_v49  ;;  %v875_v22 = vadd.f32 %v874_v4, %v584_v48  ;;  %v889_v25 = vadd.f32 %v595_v41, %v594_v63  ;;  %v592_v32 = vmul.f32 %v3367_v56, %v208_v0  ;;  %v215_v60 = vld [vmem:[#allocation2 + $0x508] sm:$0xff]  ;;  %v216_v54 = vld [vmem:[#allocation2 + $0x510] sm:$0xff]  ;;  %v217_v34 = vld [vmem:[#allocation2 + $0x518] sm:$0xff] }
  0xa3   :  { %v593_v33 = vmul.f32 %v3369_v57, %v209_v10  ;;  %v884_v44 = vadd.f32 %v591_v15, %v590_v14  ;;  %v602_v37 = vmul.f32 %v3374_v7, %v218_v29  ;;  %v603_v38 = vmul.f32 %v3377_v11, %v219_v13  ;;  %v226_v55 = vld [vmem:[#allocation2 + $0x560] sm:$0xff]  ;;  %v227_v56 = vld [vmem:[#allocation2 + $0x568] sm:$0xff]  ;;  %v228_v23 = vld [vmem:[#allocation2 + $0x570] sm:$0xff] }
  0xa4   :  { %867 = vadd.xlane.f32.xlu0 %v866_v58  ;;  %v876_v9 = vadd.f32 %v875_v22, %v585_v18  ;;  %v890_v28 = vadd.f32 %v889_v25, %v596_v35  ;;  %v604_v6 = vmul.f32 %v3379_v12, %v220_v40  ;;  %v605_v51 = vmul.f32 %v3381_v16, %v221_v30  ;;  %v229_v2 = vld [vmem:[#allocation2 + $0x578] sm:$0xff]  ;;  %v222_v11 = vld [vmem:[#allocation2 + $0x540] sm:$0xff]  ;;  %v223_v1 = vld [vmem:[#allocation2 + $0x548] sm:$0xff] }
  0xa5   :  { %v885_v45 = vadd.f32 %v884_v44, %v592_v32  ;;  %v899_v21 = vadd.f32 %v603_v38, %v602_v37  ;;  %v598_v57 = vmul.f32 %v3386_v36, %v214_v31  ;;  %v599_v7 = vmul.f32 %v3388_v39, %v215_v60  ;;  %882 = vadd.xlane.f32.xlu1 %v881_v24  ;;  %v224_v16 = vld [vmem:[#allocation2 + $0x550] sm:$0xff]  ;;  %v5670_v47 = vld [vmem:[#allocation12_spill] sm:$0xff]  ;;  %v225_v36 = vld [vmem:[#allocation2 + $0x558] sm:$0xff] }
  0xa6   :  { %v891_v46 = vadd.f32 %v890_v28, %v597_v19  ;;  %v600_v49 = vmul.f32 %v3391_v42, %v216_v54  ;;  %v601_v27 = vmul.f32 %v3393_v43, %v217_v34  ;;  %v610_v12 = vmul.f32 %v3399_v3, %v226_v55  ;;  %v234_v50 = vld [vmem:[#allocation2 + $0x5a0] sm:$0xff]  ;;  %v235_v39 = vld [vmem:[#allocation2 + $0x5a8] sm:$0xff]  ;;  %v5672_v52 = vld [vmem:[#allocation14_spill] sm:$0xff] }
  0xa7   :  { %v886_v17 = vadd.f32 %v885_v45, %v593_v33  ;;  %v900_v26 = vadd.f32 %v899_v21, %v604_v6  ;;  %v894_v5 = vadd.f32 %v599_v7, %v598_v57  ;;  %v611_v61 = vmul.f32 %v5670_v47, %v227_v56  ;;  %v5671_v62 = vld [vmem:[#allocation13_spill] sm:$0xff]  ;;  %v5673_v18 = vld [vmem:[#allocation15_spill] sm:$0xff]  ;;  %v5674_v63 = vld [vmem:[#allocation16_spill] sm:$0xff] }
  0xa8   :  { %877 = vadd.xlane.f32.xlu0 %v876_v9  ;;  %v612_v8 = vmul.f32 %v5671_v62, %v228_v23  ;;  %v613_v48 = vmul.f32 %v5672_v52, %v229_v2  ;;  %v606_v42 = vmul.f32 %v5673_v18, %v222_v11  ;;  %v607_v43 = vmul.f32 %v5674_v63, %v223_v1  ;;  %v236_v0 = vld [vmem:[#allocation2 + $0x5b0] sm:$0xff]  ;;  %v237_v3 = vld [vmem:[#allocation2 + $0x5b8] sm:$0xff]  ;;  %v230_v29 = vld [vmem:[#allocation2 + $0x580] sm:$0xff] }
  0xa9   :  { %v901_v58 = vadd.f32 %v900_v26, %v605_v51  ;;  %v895_v20 = vadd.f32 %v894_v5, %v600_v49  ;;  %v909_v4 = vadd.f32 %v611_v61, %v610_v12  ;;  %v5675_v41 = vld [vmem:[#allocation17_spill] sm:$0xff]  ;;  %892 = vadd.xlane.f32.xlu1 %v891_v46  ;;  %v5676_v35 = vld [vmem:[#allocation18_spill] sm:$0xff]  ;;  %v5677_v15 = vld [vmem:[#allocation19_spill] sm:$0xff] }
  0xaa   :  { %v608_v10 = vmul.f32 %v5675_v41, %v224_v16  ;;  %v231_v13 = vld [vmem:[#allocation2 + $0x588] sm:$0xff]  ;;  %v609_v19 = vmul.f32 %v5676_v35, %v225_v36  ;;  %v904_v14 = vadd.f32 %v607_v43, %v606_v42  ;;  %v618_v40 = vmul.f32 %v5677_v15, %v234_v50  ;;  %v232_v22 = vld [vmem:[#allocation2 + $0x590] sm:$0xff]  ;;  %v233_v25 = vld [vmem:[#allocation2 + $0x598] sm:$0xff] }
  0xab   :  { %v5678_v30 = vld [vmem:[#allocation20_spill] sm:$0xff]  ;;  %v896_v31 = vadd.f32 %v895_v20, %v601_v27  ;;  %v910_v60 = vadd.f32 %v909_v4, %v612_v8  ;;  %v5679_v33 = vld [vmem:[#allocation21_spill] sm:$0xff]  ;;  %v5680_v37 = vld [vmem:[#allocation22_spill] sm:$0xff] }
  0xac   :  { %v619_v24 = vmul.f32 %v5678_v30, %v235_v39  ;;  %v242_v32 = vld [vmem:[#allocation2 + $0x5e0] sm:$0xff]  ;;  %v620_v44 = vmul.f32 %v5679_v33, %v236_v0  ;;  %v621_v38 = vmul.f32 %v5680_v37, %v237_v3  ;;  %v243_v54 = vld [vmem:[#allocation2 + $0x5e8] sm:$0xff]  ;;  %v244_v34 = vld [vmem:[#allocation2 + $0x5f0] sm:$0xff]  ;;  %887 = vadd.xlane.f32.xlu0 %v886_v17  ;;  %v905_v55 = vadd.f32 %v904_v14, %v608_v10 }
  0xad   :  { %v5681_v28 = vld [vmem:[#allocation23_spill] sm:$0xff]  ;;  %v5682_v51 = vld [vmem:[#allocation24_spill] sm:$0xff]  ;;  %v911_v57 = vadd.f32 %v910_v60, %v613_v48  ;;  %v5683_v7 = vld [vmem:[#allocation25_spill] sm:$0xff]  ;;  %902 = vadd.xlane.f32.xlu1 %v901_v58 }
  0xae   :  { %v919_v9 = vadd.f32 %v619_v24, %v618_v40  ;;  %v614_v6 = vmul.f32 %v5681_v28, %v230_v29  ;;  %v615_v56 = vmul.f32 %v5682_v51, %v231_v13  ;;  %v245_v23 = vld [vmem:[#allocation2 + $0x5f8] sm:$0xff]  ;;  %v238_v45 = vld [vmem:[#allocation2 + $0x5c0] sm:$0xff]  ;;  %v239_v21 = vld [vmem:[#allocation2 + $0x5c8] sm:$0xff]  ;;  %v616_v2 = vmul.f32 %v5683_v7, %v232_v22 }
  0xaf   :  { %v5684_v11 = vld [vmem:[#allocation26_spill] sm:$0xff]  ;;  %v5685_v46 = vld [vmem:[#allocation27_spill] sm:$0xff]  ;;  %v906_v12 = vadd.f32 %v905_v55, %v609_v19  ;;  %v5686_v26 = vld [vmem:[#allocation28_spill] sm:$0xff] }
  0xb0   :  { %v617_v1 = vmul.f32 %v5684_v11, %v233_v25  ;;  %v626_v49 = vmul.f32 %v5685_v46, %v242_v32  ;;  %v240_v27 = vld [vmem:[#allocation2 + $0x5d0] sm:$0xff]  ;;  %v920_v16 = vadd.f32 %v919_v9, %v620_v44  ;;  %v914_v17 = vadd.f32 %v615_v56, %v614_v6  ;;  %v241_v47 = vld [vmem:[#allocation2 + $0x5d8] sm:$0xff]  ;;  %v250_v61 = vld [vmem:[#allocation2 + $0x620] sm:$0xff]  ;;  %897 = vadd.xlane.f32.xlu0 %v896_v31 }
  0xb1   :  { %v627_v5 = vmul.f32 %v5686_v26, %v243_v54  ;;  %v251_v36 = vld [vmem:[#allocation2 + $0x628] sm:$0xff]  ;;  %v5688_v62 = vld [vmem:[#allocation30_spill] sm:$0xff]  ;;  %v5689_v52 = vld [vmem:[#allocation31_spill] sm:$0xff]  ;;  %912 = vadd.xlane.f32.xlu1 %v911_v57 }
  0xb2   :  { %v5687_v50 = vld [vmem:[#allocation29_spill] sm:$0xff]  ;;  %v629_v8 = vmul.f32 %v5688_v62, %v245_v23  ;;  %v622_v48 = vmul.f32 %v5689_v52, %v238_v45  ;;  %v5690_v18 = vld [vmem:[#allocation32_spill] sm:$0xff]  ;;  %v253_v43 = vld [vmem:[#allocation2 + $0x638] sm:$0xff]  ;;  %v921_v0 = vadd.f32 %v920_v16, %v621_v38  ;;  %v915_v3 = vadd.f32 %v914_v17, %v616_v2 }
  0xb3   :  { %v628_v39 = vmul.f32 %v5687_v50, %v244_v34  ;;  %v623_v42 = vmul.f32 %v5690_v18, %v239_v21  ;;  %v252_v63 = vld [vmem:[#allocation2 + $0x630] sm:$0xff]  ;;  %v929_v58 = vadd.f32 %v627_v5, %v626_v49  ;;  %v246_v41 = vld [vmem:[#allocation2 + $0x600] sm:$0xff]  ;;  %v247_v10 = vld [vmem:[#allocation2 + $0x608] sm:$0xff] }
  0xb4   :  { %v5691_v20 = vld [vmem:[#allocation33_spill] sm:$0xff]  ;;  %v5692_v29 = vld [vmem:[#allocation34_spill] sm:$0xff]  ;;  %v5693_v19 = vld [vmem:[#allocation35_spill] sm:$0xff]  ;;  %v916_v25 = vadd.f32 %v915_v3, %v617_v1  ;;  %907 = vadd.xlane.f32.xlu0 %v906_v12 }
  0xb5   :  { %v624_v4 = vmul.f32 %v5691_v20, %v240_v27  ;;  %v625_v13 = vmul.f32 %v5692_v29, %v241_v47  ;;  %v924_v35 = vadd.f32 %v623_v42, %v622_v48  ;;  %v634_v14 = vmul.f32 %v5693_v19, %v250_v61  ;;  %v5694_v15 = vld [vmem:[#allocation36_spill] sm:$0xff]  ;;  %v248_v30 = vld [vmem:[#allocation2 + $0x610] sm:$0xff]  ;;  %v249_v24 = vld [vmem:[#allocation2 + $0x618] sm:$0xff]  ;;  %922 = vadd.xlane.f32.xlu1 %v921_v0 }
  0xb6   :  { %v635_v40 = vmul.f32 %v5694_v15, %v251_v36  ;;  %v258_v22 = vld [vmem:[#allocation2 + $0x660] sm:$0xff]  ;;  %v930_v32 = vadd.f32 %v929_v58, %v628_v39  ;;  %v5695_v31 = vld [vmem:[#allocation37_spill] sm:$0xff]  ;;  %v5696_v33 = vld [vmem:[#allocation38_spill] sm:$0xff] }
  0xb7   :  { %v636_v60 = vmul.f32 %v5695_v31, %v252_v63  ;;  %v637_v44 = vmul.f32 %v5696_v33, %v253_v43  ;;  %v259_v37 = vld [vmem:[#allocation2 + $0x668] sm:$0xff]  ;;  %v260_v38 = vld [vmem:[#allocation2 + $0x670] sm:$0xff]  ;;  %v925_v54 = vadd.f32 %v924_v35, %v624_v4  ;;  %v5697_v55 = vld [vmem:[#allocation39_spill] sm:$0xff] }
  0xb8   :  { %v939_v34 = vadd.f32 %v635_v40, %v634_v14  ;;  %v630_v9 = vmul.f32 %v5697_v55, %v246_v41  ;;  %v5698_v28 = vld [vmem:[#allocation40_spill] sm:$0xff]  ;;  %v261_v51 = vld [vmem:[#allocation2 + $0x678] sm:$0xff]  ;;  %v931_v45 = vadd.f32 %v930_v32, %v629_v8  ;;  %v5699_v21 = vld [vmem:[#allocation41_spill] sm:$0xff]  ;;  %917 = vadd.xlane.f32.xlu0 %v916_v25 }
  0xb9   :  { %v631_v6 = vmul.f32 %v5698_v28, %v247_v10  ;;  %v254_v56 = vld [vmem:[#allocation2 + $0x640] sm:$0xff]  ;;  %v255_v23 = vld [vmem:[#allocation2 + $0x648] sm:$0xff]  ;;  %v632_v57 = vmul.f32 %v5699_v21, %v248_v30  ;;  %v5700_v7 = vld [vmem:[#allocation42_spill] sm:$0xff]  ;;  %v926_v49 = vadd.f32 %v925_v54, %v625_v13 }
  0xba   :  { %v633_v2 = vmul.f32 %v5700_v7, %v249_v24  ;;  %v5701_v11 = vld [vmem:[#allocation43_spill] sm:$0xff]  ;;  %v256_v46 = vld [vmem:[#allocation2 + $0x650] sm:$0xff]  ;;  %v940_v27 = vadd.f32 %v939_v34, %v636_v60  ;;  %v5702_v17 = vld [vmem:[#allocation44_spill] sm:$0xff]  ;;  %932 = vadd.xlane.f32.xlu1 %v931_v45 }
  0xbb   :  { %v642_v1 = vmul.f32 %v5701_v11, %v258_v22  ;;  %v934_v16 = vadd.f32 %v631_v6, %v630_v9  ;;  %v643_v26 = vmul.f32 %v5702_v17, %v259_v37  ;;  %v257_v5 = vld [vmem:[#allocation2 + $0x658] sm:$0xff]  ;;  %v266_v47 = vld [vmem:[#allocation2 + $0x6a0] sm:$0xff]  ;;  %v267_v61 = vld [vmem:[#allocation2 + $0x6a8] sm:$0xff] }
  0xbc   :  { %v5703_v36 = vld [vmem:[#allocation45_spill] sm:$0xff]  ;;  %v5704_v12 = vld [vmem:[#allocation46_spill] sm:$0xff]  ;;  %v5705_v62 = vld [vmem:[#allocation47_spill] sm:$0xff]  ;;  %v941_v63 = vadd.f32 %v940_v27, %v637_v44  ;;  %927 = vadd.xlane.f32.xlu0 %v926_v49 }
  0xbd   :  { %v644_v50 = vmul.f32 %v5703_v36, %v260_v38  ;;  %v645_v39 = vmul.f32 %v5704_v12, %v261_v51  ;;  %v638_v8 = vmul.f32 %v5705_v62, %v254_v56  ;;  %v5706_v52 = vld [vmem:[#allocation48_spill] sm:$0xff]  ;;  %v268_v18 = vld [vmem:[#allocation2 + $0x6b0] sm:$0xff]  ;;  %v269_v42 = vld [vmem:[#allocation2 + $0x6b8] sm:$0xff]  ;;  %v935_v43 = vadd.f32 %v934_v16, %v632_v57 }
  0xbe   :  { %v639_v48 = vmul.f32 %v5706_v52, %v255_v23  ;;  %v949_v3 = vadd.f32 %v643_v26, %v642_v1  ;;  %v5707_v58 = vld [vmem:[#allocation49_spill] sm:$0xff]  ;;  %v262_v4 = vld [vmem:[#allocation2 + $0x680] sm:$0xff]  ;;  %v5708_v10 = vld [vmem:[#allocation50_spill] sm:$0xff]  ;;  %942 = vadd.xlane.f32.xlu1 %v941_v63 }
  0xbf   :  { %v640_v20 = vmul.f32 %v5707_v58, %v256_v46  ;;  %v263_v41 = vld [vmem:[#allocation2 + $0x688] sm:$0xff]  ;;  %v641_v0 = vmul.f32 %v5708_v10, %v257_v5  ;;  %v5709_v13 = vld [vmem:[#allocation51_spill] sm:$0xff]  ;;  %v264_v15 = vld [vmem:[#allocation2 + $0x690] sm:$0xff]  ;;  %v936_v24 = vadd.f32 %v935_v43, %v633_v2 }
  0xc0   :  { %v944_v29 = vadd.f32 %v639_v48, %v638_v8  ;;  %v650_v35 = vmul.f32 %v5709_v13, %v266_v47  ;;  %v5710_v19 = vld [vmem:[#allocation52_spill] sm:$0xff]  ;;  %v265_v40 = vld [vmem:[#allocation2 + $0x698] sm:$0xff]  ;;  %v950_v22 = vadd.f32 %v949_v3, %v644_v50  ;;  %v5711_v32 = vld [vmem:[#allocation53_spill] sm:$0xff] }
  0xc1   :  { %v651_v14 = vmul.f32 %v5710_v19, %v267_v61  ;;  %v274_v30 = vld [vmem:[#allocation2 + $0x6e0] sm:$0xff]  ;;  %v652_v31 = vmul.f32 %v5711_v32, %v268_v18  ;;  %v5712_v60 = vld [vmem:[#allocation54_spill] sm:$0xff]  ;;  %v275_v44 = vld [vmem:[#allocation2 + $0x6e8] sm:$0xff]  ;;  %937 = vadd.xlane.f32.xlu0 %v936_v24 }
  0xc2   :  { %v653_v33 = vmul.f32 %v5712_v60, %v269_v42  ;;  %v276_v37 = vld [vmem:[#allocation2 + $0x6f0] sm:$0xff]  ;;  %v945_v25 = vadd.f32 %v944_v29, %v640_v20  ;;  %v5713_v54 = vld [vmem:[#allocation55_spill] sm:$0xff]  ;;  %v5714_v55 = vld [vmem:[#allocation56_spill] sm:$0xff]  ;;  %v951_v56 = vadd.f32 %v950_v22, %v645_v39 }
  0xc3   :  { %v959_v38 = vadd.f32 %v651_v14, %v650_v35  ;;  %v646_v34 = vmul.f32 %v5713_v54, %v262_v4  ;;  %v647_v9 = vmul.f32 %v5714_v55, %v263_v41  ;;  %v277_v28 = vld [vmem:[#allocation2 + $0x6f8] sm:$0xff]  ;;  %v270_v6 = vld [vmem:[#allocation2 + $0x6c0] sm:$0xff]  ;;  %v271_v51 = vld [vmem:[#allocation2 + $0x6c8] sm:$0xff] }
  0xc4   :  { %v5715_v23 = vld [vmem:[#allocation57_spill] sm:$0xff]  ;;  %v5716_v57 = vld [vmem:[#allocation58_spill] sm:$0xff]  ;;  %v5717_v2 = vld [vmem:[#allocation59_spill] sm:$0xff]  ;;  %v946_v46 = vadd.f32 %v945_v25, %v641_v0  ;;  %952 = vadd.xlane.f32.xlu1 %v951_v56 }
  0xc5   :  { %v648_v21 = vmul.f32 %v5715_v23, %v264_v15  ;;  %v649_v7 = vmul.f32 %v5716_v57, %v265_v40  ;;  %v658_v11 = vmul.f32 %v5717_v2, %v274_v30  ;;  %v272_v1 = vld [vmem:[#allocation2 + $0x6d0] sm:$0xff]  ;;  %v960_v45 = vadd.f32 %v959_v38, %v652_v31  ;;  %v5718_v16 = vld [vmem:[#allocation60_spill] sm:$0xff]  ;;  %v273_v26 = vld [vmem:[#allocation2 + $0x6d8] sm:$0xff] }
  0xc6   :  { %v954_v27 = vadd.f32 %v647_v9, %v646_v34  ;;  %v659_v17 = vmul.f32 %v5718_v16, %v275_v44  ;;  %v282_v5 = vld [vmem:[#allocation2 + $0x720] sm:$0xff]  ;;  %v283_v47 = vld [vmem:[#allocation2 + $0x728] sm:$0xff]  ;;  %v5720_v50 = vld [vmem:[#allocation62_spill] sm:$0xff]  ;;  %947 = vadd.xlane.f32.xlu0 %v946_v46 }
  0xc7   :  { %v5719_v61 = vld [vmem:[#allocation61_spill] sm:$0xff]  ;;  %v661_v12 = vmul.f32 %v5720_v50, %v277_v28  ;;  %v5721_v39 = vld [vmem:[#allocation63_spill] sm:$0xff]  ;;  %v5722_v8 = vld [vmem:[#allocation64_spill] sm:$0xff]  ;;  %v961_v49 = vadd.f32 %v960_v45, %v653_v33 }
  0xc8   :  { %v660_v36 = vmul.f32 %v5719_v61, %v276_v37  ;;  %v654_v62 = vmul.f32 %v5721_v39, %v270_v6  ;;  %v655_v52 = vmul.f32 %v5722_v8, %v271_v51  ;;  %v284_v48 = vld [vmem:[#allocation2 + $0x730] sm:$0xff]  ;;  %v285_v18 = vld [vmem:[#allocation2 + $0x738] sm:$0xff]  ;;  %v955_v42 = vadd.f32 %v954_v27, %v648_v21  ;;  %v278_v20 = vld [vmem:[#allocation2 + $0x700] sm:$0xff] }
  0xc9   :  { %v969_v43 = vadd.f32 %v659_v17, %v658_v11  ;;  %v5723_v3 = vld [vmem:[#allocation65_spill] sm:$0xff]  ;;  %v5724_v41 = vld [vmem:[#allocation66_spill] sm:$0xff]  ;;  %v5725_v29 = vld [vmem:[#allocation67_spill] sm:$0xff]  ;;  %962 = vadd.xlane.f32.xlu1 %v961_v49 }
  0xca   :  { %v656_v58 = vmul.f32 %v5723_v3, %v272_v1  ;;  %v279_v4 = vld [vmem:[#allocation2 + $0x708] sm:$0xff]  ;;  %v657_v10 = vmul.f32 %v5724_v41, %v273_v26  ;;  %v964_v0 = vadd.f32 %v655_v52, %v654_v62  ;;  %v666_v13 = vmul.f32 %v5725_v29, %v282_v5  ;;  %v280_v14 = vld [vmem:[#allocation2 + $0x710] sm:$0xff]  ;;  %v281_v15 = vld [vmem:[#allocation2 + $0x718] sm:$0xff] }
  0xcb   :  { %v5726_v35 = vld [vmem:[#allocation68_spill] sm:$0xff]  ;;  %v956_v30 = vadd.f32 %v955_v42, %v649_v7  ;;  %v970_v63 = vadd.f32 %v969_v43, %v660_v36  ;;  %v5727_v22 = vld [vmem:[#allocation69_spill] sm:$0xff]  ;;  %v5728_v31 = vld [vmem:[#allocation70_spill] sm:$0xff] }
  0xcc   :  { %v667_v19 = vmul.f32 %v5726_v35, %v283_v47  ;;  %v290_v40 = vld [vmem:[#allocation2 + $0x760] sm:$0xff]  ;;  %v668_v32 = vmul.f32 %v5727_v22, %v284_v48  ;;  %v669_v60 = vmul.f32 %v5728_v31, %v285_v18  ;;  %v291_v33 = vld [vmem:[#allocation2 + $0x768] sm:$0xff]  ;;  %v292_v44 = vld [vmem:[#allocation2 + $0x770] sm:$0xff]  ;;  %v965_v37 = vadd.f32 %v964_v0, %v656_v58 }
  0xcd   :  { %v5729_v38 = vld [vmem:[#allocation71_spill] sm:$0xff]  ;;  %v5730_v34 = vld [vmem:[#allocation72_spill] sm:$0xff]  ;;  %v971_v51 = vadd.f32 %v970_v63, %v661_v12  ;;  %v5731_v24 = vld [vmem:[#allocation73_spill] sm:$0xff]  ;;  %957 = vadd.xlane.f32.xlu0 %v956_v30 }
  0xce   :  { %v979_v25 = vadd.f32 %v667_v19, %v666_v13  ;;  %v662_v54 = vmul.f32 %v5729_v38, %v278_v20  ;;  %v663_v55 = vmul.f32 %v5730_v34, %v279_v4  ;;  %v293_v9 = vld [vmem:[#allocation2 + $0x778] sm:$0xff]  ;;  %v286_v28 = vld [vmem:[#allocation2 + $0x740] sm:$0xff]  ;;  %v287_v6 = vld [vmem:[#allocation2 + $0x748] sm:$0xff]  ;;  %v664_v23 = vmul.f32 %v5731_v24, %v280_v14 }
  0xcf   :  { %v5732_v21 = vld [vmem:[#allocation74_spill] sm:$0xff]  ;;  %v5733_v7 = vld [vmem:[#allocation75_spill] sm:$0xff]  ;;  %v966_v1 = vadd.f32 %v965_v37, %v657_v10  ;;  %v5734_v16 = vld [vmem:[#allocation76_spill] sm:$0xff]  ;;  %972 = vadd.xlane.f32.xlu1 %v971_v51 }
  0xd0   :  { %v665_v57 = vmul.f32 %v5732_v21, %v281_v15  ;;  %v674_v2 = vmul.f32 %v5733_v7, %v290_v40  ;;  %v288_v11 = vld [vmem:[#allocation2 + $0x750] sm:$0xff]  ;;  %v980_v45 = vadd.f32 %v979_v25, %v668_v32  ;;  %v974_v27 = vadd.f32 %v663_v55, %v662_v54  ;;  %v289_v26 = vld [vmem:[#allocation2 + $0x758] sm:$0xff]  ;;  %v298_v5 = vld [vmem:[#allocation2 + $0x7a0] sm:$0xff] }
  0xd1   :  { %v675_v17 = vmul.f32 %v5734_v16, %v291_v33  ;;  %v299_v47 = vld [vmem:[#allocation2 + $0x7a8] sm:$0xff]  ;;  %v5736_v56 = vld [vmem:[#allocation78_spill] sm:$0xff]  ;;  %v5737_v12 = vld [vmem:[#allocation79_spill] sm:$0xff]  ;;  %967 = vadd.xlane.f32.xlu0 %v966_v1 }
  0xd2   :  { %v5735_v61 = vld [vmem:[#allocation77_spill] sm:$0xff]  ;;  %v677_v50 = vmul.f32 %v5736_v56, %v293_v9  ;;  %v670_v39 = vmul.f32 %v5737_v12, %v286_v28  ;;  %v5738_v62 = vld [vmem:[#allocation80_spill] sm:$0xff]  ;;  %v301_v48 = vld [vmem:[#allocation2 + $0x7b8] sm:$0xff]  ;;  %v981_v18 = vadd.f32 %v980_v45, %v669_v60  ;;  %v975_v42 = vadd.f32 %v974_v27, %v664_v23 }
  0xd3   :  { %v676_v36 = vmul.f32 %v5735_v61, %v292_v44  ;;  %v671_v8 = vmul.f32 %v5738_v62, %v287_v6  ;;  %v300_v52 = vld [vmem:[#allocation2 + $0x7b0] sm:$0xff]  ;;  %v989_v43 = vadd.f32 %v675_v17, %v674_v2  ;;  %v294_v20 = vld [vmem:[#allocation2 + $0x780] sm:$0xff]  ;;  %v295_v4 = vld [vmem:[#allocation2 + $0x788] sm:$0xff] }
  0xd4   :  { %v5739_v3 = vld [vmem:[#allocation81_spill] sm:$0xff]  ;;  %v5740_v41 = vld [vmem:[#allocation82_spill] sm:$0xff]  ;;  %v5741_v0 = vld [vmem:[#allocation83_spill] sm:$0xff]  ;;  %v976_v40 = vadd.f32 %v975_v42, %v665_v57  ;;  %982 = vadd.xlane.f32.xlu1 %v981_v18 }
  0xd5   :  { %v672_v58 = vmul.f32 %v5739_v3, %v288_v11  ;;  %v673_v46 = vmul.f32 %v5740_v41, %v289_v26  ;;  %v984_v10 = vadd.f32 %v671_v8, %v670_v39  ;;  %v682_v29 = vmul.f32 %v5741_v0, %v298_v5  ;;  %v5742_v13 = vld [vmem:[#allocation84_spill] sm:$0xff]  ;;  %v296_v19 = vld [vmem:[#allocation2 + $0x790] sm:$0xff]  ;;  %v297_v14 = vld [vmem:[#allocation2 + $0x798] sm:$0xff] }
  0xd6   :  { %v683_v35 = vmul.f32 %v5742_v13, %v299_v47  ;;  %v306_v15 = vld [vmem:[#allocation2 + $0x7e0] sm:$0xff]  ;;  %v990_v63 = vadd.f32 %v989_v43, %v676_v36  ;;  %v5743_v22 = vld [vmem:[#allocation85_spill] sm:$0xff]  ;;  %v5744_v31 = vld [vmem:[#allocation86_spill] sm:$0xff]  ;;  %977 = vadd.xlane.f32.xlu0 %v976_v40 }
  0xd7   :  { %v684_v32 = vmul.f32 %v5743_v22, %v300_v52  ;;  %v685_v60 = vmul.f32 %v5744_v31, %v301_v48  ;;  %v307_v33 = vld [vmem:[#allocation2 + $0x7e8] sm:$0xff]  ;;  %v308_v44 = vld [vmem:[#allocation2 + $0x7f0] sm:$0xff]  ;;  %v985_v49 = vadd.f32 %v984_v10, %v672_v58  ;;  %v5745_v25 = vld [vmem:[#allocation87_spill] sm:$0xff] }
  0xd8   :  { %v999_v37 = vadd.f32 %v683_v35, %v682_v29  ;;  %v678_v38 = vmul.f32 %v5745_v25, %v294_v20  ;;  %v5746_v54 = vld [vmem:[#allocation88_spill] sm:$0xff]  ;;  %v309_v55 = vld [vmem:[#allocation2 + $0x7f8] sm:$0xff]  ;;  %v991_v6 = vadd.f32 %v990_v63, %v677_v50  ;;  %v5747_v24 = vld [vmem:[#allocation89_spill] sm:$0xff] }
  0xd9   :  { %v679_v34 = vmul.f32 %v5746_v54, %v295_v4  ;;  %v302_v9 = vld [vmem:[#allocation2 + $0x7c0] sm:$0xff]  ;;  %v303_v28 = vld [vmem:[#allocation2 + $0x7c8] sm:$0xff]  ;;  %v680_v23 = vmul.f32 %v5747_v24, %v296_v19  ;;  %v5748_v21 = vld [vmem:[#allocation90_spill] sm:$0xff]  ;;  %v986_v45 = vadd.f32 %v985_v49, %v673_v46 }
  0xda   :  { %v681_v57 = vmul.f32 %v5748_v21, %v297_v14  ;;  %v5749_v7 = vld [vmem:[#allocation91_spill] sm:$0xff]  ;;  %v304_v11 = vld [vmem:[#allocation2 + $0x7d0] sm:$0xff]  ;;  %v1000_v30 = vadd.f32 %v999_v37, %v684_v32  ;;  %v5750_v16 = vld [vmem:[#allocation92_spill] sm:$0xff]  ;;  %v686_v56 = vmul.f32 %v3651_v53, %v302_v9  ;;  %992 = vadd.xlane.f32.xlu1 %v991_v6 }
  0xdb   :  { %v690_v2 = vmul.f32 %v5749_v7, %v306_v15  ;;  %v994_v27 = vadd.f32 %v679_v34, %v678_v38  ;;  %v691_v17 = vmul.f32 %v5750_v16, %v307_v33  ;;  %v305_v26 = vld [vmem:[#allocation2 + $0x7d8] sm:$0xff]  ;;  %v5751_v5 = vld [vmem:[#allocation93_spill] sm:$0xff]  ;;  %v3785_v39 = vld [vmem:[#allocation5 + $0x420] sm:$0xff]  ;;  %987 = vadd.xlane.f32.xlu0 %v986_v45 }
  0xdc   :  { %v692_v47 = vmul.f32 %v5751_v5, %v308_v44  ;;  %v5752_v61 = vld [vmem:[#allocation94_spill] sm:$0xff]  ;;  %v5753_v50 = vld [vmem:[#allocation95_spill] sm:$0xff]  ;;  %5754 = vst [vmem:[#allocation12_spill] sm:$0xff] %v3785_v39  ;;  %v3787_v62 = vld [vmem:[#allocation5 + $0x428] sm:$0xff]  ;;  %v1001_v51 = vadd.f32 %v1000_v30, %v685_v60  ;;  %v689_v58 = vmul.f32 %v3657_v59, %v305_v26 }
  0xdd   :  { %v693_v36 = vmul.f32 %v5752_v61, %v309_v55  ;;  %v687_v12 = vmul.f32 %v5753_v50, %v303_v28  ;;  %5755 = vst [vmem:[#allocation13_spill] sm:$0xff] %v3787_v62  ;;  %v995_v8 = vadd.f32 %v994_v27, %v680_v23  ;;  %v1009_v52 = vadd.f32 %v691_v17, %v690_v2  ;;  %v5756_v48 = vld [vmem:[#allocation96_spill] sm:$0xff]  ;;  %v3797_v29 = vld [vmem:[#allocation5 + $0x430] sm:$0xff]  ;;  %v3816_v38 = vld [vmem:[#allocation5 + $0x438] sm:$0xff] }
  0xde   :  { %v688_v42 = vmul.f32 %v5756_v48, %v304_v11  ;;  %v3790_v43 = vld [vmem:[#allocation5 + $0x400] sm:$0xff]  ;;  %v3792_v3 = vld [vmem:[#allocation5 + $0x408] sm:$0xff]  ;;  %5759 = vst [vmem:[#allocation16_spill] sm:$0xff] %v3797_v29  ;;  %v3805_v63 = vld [vmem:[#allocation5 + $0x410] sm:$0xff]  ;;  %1002 = vadd.xlane.f32.xlu1 %v1001_v51 }
  0xdf   :  { %5757 = vst [vmem:[#allocation14_spill] sm:$0xff] %v3790_v43  ;;  %5758 = vst [vmem:[#allocation15_spill] sm:$0xff] %v3792_v3  ;;  %v1004_v20 = vadd.f32 %v687_v12, %v686_v56  ;;  %v996_v53 = vadd.f32 %v995_v8, %v681_v57  ;;  %v1010_v4 = vadd.f32 %v1009_v52, %v692_v47  ;;  %v2688_v41 = vld [vmem:[#allocation2 + $0x20] sm:$0xff]  ;;  %v2689_v10 = vld [vmem:[#allocation2 + $0x28] sm:$0xff]  ;;  %v3837_v47 = vpop.xlane.xlu1 %707 }
  0xe0   :  { %v1221_v46 = vmul.f32 %v2688_v41, %v3785_v39  ;;  %v1222_v1 = vmul.f32 %v2689_v10, %v3787_v62  ;;  %v2690_v13 = vld [vmem:[#allocation2] sm:$0xff]  ;;  %v2691_v19 = vld [vmem:[#allocation2 + $0x8] sm:$0xff]  ;;  %5760 = vst [vmem:[#allocation17_spill] sm:$0xff] %v3805_v63  ;;  %v2692_v60 = vld [vmem:[#allocation2 + $0x30] sm:$0xff] }
  0xe1   :  { %v1005_v0 = vadd.f32 %v1004_v20, %v688_v42  ;;  %v1217_v35 = vmul.f32 %v2690_v13, %v3790_v43  ;;  %v1218_v14 = vmul.f32 %v2691_v19, %v3792_v3  ;;  %v3801_v59 = vld [vmem:[#allocation5 + $0x460] sm:$0xff]  ;;  %v3803_v18 = vld [vmem:[#allocation5 + $0x468] sm:$0xff]  ;;  %v1011_v15 = vadd.f32 %v1010_v4, %v693_v36  ;;  %5761 = vst [vmem:[#allocation18_spill] sm:$0xff] %v3816_v38  ;;  %v2695_v54 = vld [vmem:[#allocation2 + $0x10] sm:$0xff] }
  0xe2   :  { %v3809_v32 = vld [vmem:[#allocation5 + $0x440] sm:$0xff]  ;;  %v3811_v31 = vld [vmem:[#allocation5 + $0x448] sm:$0xff]  ;;  %v1223_v33 = vmul.f32 %v2692_v60, %v3797_v29  ;;  %v1478_v44 = vadd.f32 %v1222_v1, %v1221_v46  ;;  %v1219_v34 = vmul.f32 %v2695_v54, %v3805_v63  ;;  %v3819_v9 = vld [vmem:[#allocation5 + $0x470] sm:$0xff]  ;;  %5763 = vst [vmem:[#allocation20_spill] sm:$0xff] %v3837_v47  ;;  %997 = vadd.xlane.f32.xlu0 %v996_v53  ;;  %v3857_v53 = vpop.xlane.xlu0 %697 }
  0xe3   :  { %v3807_v22 = vadd.f32 %v1005_v0, %v689_v58  ;;  %v2693_v49 = vld [vmem:[#allocation2 + $0x60] sm:$0xff]  ;;  %v2694_v25 = vld [vmem:[#allocation2 + $0x68] sm:$0xff]  ;;  %v1473_v55 = vadd.f32 %v1218_v14, %v1217_v35  ;;  %v3821_v28 = vld [vmem:[#allocation5 + $0x418] sm:$0xff]  ;;  %5764 = vst [vmem:[#allocation21_spill] sm:$0xff] %v3857_v53  ;;  %1012 = vadd.xlane.f32.xlu1 %v1011_v15 }
  0xe4   :  { %v1229_v37 = vmul.f32 %v2693_v49, %v3801_v59  ;;  %v1230_v40 = vmul.f32 %v2694_v25, %v3803_v18  ;;  %5762 = vst [vmem:[#allocation19_spill] sm:$0xff] %v3821_v28  ;;  %v2696_v6 = vld [vmem:[#allocation2 + $0x40] sm:$0xff]  ;;  %v2697_v23 = vld [vmem:[#allocation2 + $0x48] sm:$0xff]  ;;  %v3829_v2 = vld [vmem:[#allocation5 + $0x450] sm:$0xff]  ;;  %v1479_v27 = vadd.f32 %v1478_v44, %v1223_v33 }
  0xe5   :  { %v1225_v24 = vmul.f32 %v2696_v6, %v3809_v32  ;;  %v1226_v21 = vmul.f32 %v2697_v23, %v3811_v31  ;;  %v3825_v57 = vld [vmem:[#allocation5 + $0x4a0] sm:$0xff]  ;;  %v3827_v7 = vld [vmem:[#allocation5 + $0x4a8] sm:$0xff]  ;;  %v2698_v11 = vld [vmem:[#allocation2 + $0x38] sm:$0xff]  ;;  %v1474_v56 = vadd.f32 %v1473_v55, %v1219_v34 }
  0xe6   :  { %v1224_v30 = vmul.f32 %v2698_v11, %v3816_v38  ;;  %v2699_v45 = vld [vmem:[#allocation2 + $0x70] sm:$0xff]  ;;  %v1488_v17 = vadd.f32 %v1230_v40, %v1229_v37  ;;  %v3835_v5 = vld [vmem:[#allocation5 + $0x480] sm:$0xff]  ;;  %v2700_v61 = vld [vmem:[#allocation2 + $0x18] sm:$0xff]  ;;  %1007 = vadd.xlane.f32.xlu0 %v3807_v22 }
  0xe7   :  { %v1231_v16 = vmul.f32 %v2699_v45, %v3819_v9  ;;  %v3833_v26 = vld [vmem:[#allocation5 + $0x4b0] sm:$0xff]  ;;  %v1220_v36 = vmul.f32 %v2700_v61, %v3821_v28  ;;  %v3840_v50 = vld [vmem:[#allocation5 + $0x478] sm:$0xff]  ;;  %v2701_v12 = vld [vmem:[#allocation2 + $0xa0] sm:$0xff]  ;;  %v1483_v4 = vadd.f32 %v1226_v21, %v1225_v24  ;;  %v3876_v61 = vpop.xlane.xlu1 %712 }
  0xe8   :  { %v1237_v51 = vmul.f32 %v2701_v12, %v3825_v57  ;;  %v2702_v8 = vld [vmem:[#allocation2 + $0xa8] sm:$0xff]  ;;  %v3846_v42 = vld [vmem:[#allocation5 + $0x458] sm:$0xff]  ;;  %v2703_v58 = vld [vmem:[#allocation2 + $0x50] sm:$0xff]  ;;  %v1480_v14 = vadd.f32 %v1479_v27, %v1224_v30  ;;  %5765 = vst [vmem:[#allocation22_spill] sm:$0xff] %v3876_v61 }
  0xe9   :  { %v1238_v52 = vmul.f32 %v2702_v8, %v3827_v7  ;;  %v3844_v48 = vld [vmem:[#allocation5 + $0x488] sm:$0xff]  ;;  %v1227_v20 = vmul.f32 %v2703_v58, %v3829_v2  ;;  %v3849_v41 = vld [vmem:[#allocation5 + $0x490] sm:$0xff]  ;;  %v2705_v0 = vld [vmem:[#allocation2 + $0x80] sm:$0xff]  ;;  %v1489_v44 = vadd.f32 %v1488_v17, %v1231_v16  ;;  %v1475_v40 = vadd.f32 %v1474_v56, %v1220_v36 }
  0xea   :  { %v2704_v46 = vld [vmem:[#allocation2 + $0xb0] sm:$0xff]  ;;  %v1233_v13 = vmul.f32 %v2705_v0, %v3835_v5  ;;  %v3853_v35 = vld [vmem:[#allocation5 + $0x4e0] sm:$0xff]  ;;  %v3855_v19 = vld [vmem:[#allocation5 + $0x4e8] sm:$0xff]  ;;  %1481 = vadd.xlane.f32.xlu1 %v1480_v14 }
  0xeb   :  { %v1239_v10 = vmul.f32 %v2704_v46, %v3833_v26  ;;  %v1498_v1 = vadd.f32 %v1238_v52, %v1237_v51  ;;  %v2706_v60 = vld [vmem:[#allocation2 + $0x78] sm:$0xff]  ;;  %v2707_v37 = vld [vmem:[#allocation2 + $0x88] sm:$0xff]  ;;  %v2709_v6 = vld [vmem:[#allocation2 + $0x90] sm:$0xff]  ;;  %v1484_v23 = vadd.f32 %v1483_v4, %v1227_v20  ;;  %v3885_v46 = vpop.xlane.xlu0 %702  ;;  %1476 = vadd.xlane.f32.xlu0 %v1475_v40 }
  0xec   :  { %v1232_v33 = vmul.f32 %v2706_v60, %v3840_v50  ;;  %v3860_v49 = vld [vmem:[#allocation5 + $0x4b8] sm:$0xff]  ;;  %v1234_v25 = vmul.f32 %v2707_v37, %v3844_v48  ;;  %v1235_v24 = vmul.f32 %v2709_v6, %v3849_v41  ;;  %v3867_v15 = vld [vmem:[#allocation5 + $0x4f0] sm:$0xff]  ;;  %v2710_v11 = vld [vmem:[#allocation2 + $0xe0] sm:$0xff]  ;;  %5766 = vst [vmem:[#allocation23_spill] sm:$0xff] %v3885_v46 }
  0xed   :  { %v2708_v54 = vld [vmem:[#allocation2 + $0x58] sm:$0xff]  ;;  %v1245_v30 = vmul.f32 %v2710_v11, %v3853_v35  ;;  %v2711_v27 = vld [vmem:[#allocation2 + $0xe8] sm:$0xff]  ;;  %v3872_v16 = vld [vmem:[#allocation5 + $0x4c0] sm:$0xff]  ;;  %v1499_v12 = vadd.f32 %v1498_v1, %v1239_v10 }
  0xee   :  { %v1228_v34 = vmul.f32 %v2708_v54, %v3846_v42  ;;  %v3864_v55 = vld [vmem:[#allocation5 + $0x498] sm:$0xff]  ;;  %v1493_v21 = vadd.f32 %v1234_v25, %v1233_v13  ;;  %v1246_v45 = vmul.f32 %v2711_v27, %v3855_v19  ;;  %v3874_v17 = vld [vmem:[#allocation5 + $0x4c8] sm:$0xff]  ;;  %v3879_v51 = vld [vmem:[#allocation5 + $0x4d0] sm:$0xff]  ;;  %v1490_v22 = vadd.f32 %v1489_v44, %v1232_v33 }
  0xef   :  { %v2712_v36 = vld [vmem:[#allocation2 + $0xb8] sm:$0xff]  ;;  %v2714_v20 = vld [vmem:[#allocation2 + $0xf0] sm:$0xff]  ;;  %v2715_v60 = vld [vmem:[#allocation2 + $0xc0] sm:$0xff] }
  0xf0   :  { %v1240_v56 = vmul.f32 %v2712_v36, %v3860_v49  ;;  %v2713_v8 = vld [vmem:[#allocation2 + $0x98] sm:$0xff]  ;;  %v1247_v4 = vmul.f32 %v2714_v20, %v3867_v15  ;;  %v1494_v0 = vadd.f32 %v1493_v21, %v1235_v24  ;;  %v1508_v13 = vadd.f32 %v1246_v45, %v1245_v30  ;;  %v2716_v10 = vld [vmem:[#allocation2 + $0xc8] sm:$0xff]  ;;  %v3889_v14 = vld [vmem:[#allocation5 + $0x520] sm:$0xff]  ;;  %v3901_v36 = vpop.xlane.xlu1 %722  ;;  %1491 = vadd.xlane.f32.xlu1 %v1490_v22 }
  0xf1   :  { %v1236_v52 = vmul.f32 %v2713_v8, %v3864_v55  ;;  %v3882_v58 = vld [vmem:[#allocation5 + $0x4f8] sm:$0xff]  ;;  %v1241_v37 = vmul.f32 %v2715_v60, %v3872_v16  ;;  %v1242_v1 = vmul.f32 %v2716_v10, %v3874_v17  ;;  %v3891_v33 = vld [vmem:[#allocation5 + $0x528] sm:$0xff]  ;;  %v3893_v44 = vld [vmem:[#allocation5 + $0x530] sm:$0xff]  ;;  %v1485_v25 = vadd.f32 %v1484_v23, %v1228_v34  ;;  %5767 = vst [vmem:[#allocation24_spill] sm:$0xff] %v3901_v36  ;;  %v3916_v36 = vpop.xlane.xlu0 %717 }
  0xf2   :  { %v2717_v54 = vld [vmem:[#allocation2 + $0xd0] sm:$0xff]  ;;  %v1500_v11 = vadd.f32 %v1499_v12, %v1240_v56  ;;  %v2718_v24 = vld [vmem:[#allocation2 + $0xf8] sm:$0xff]  ;;  %v3899_v45 = vld [vmem:[#allocation5 + $0x500] sm:$0xff]  ;;  %v1509_v8 = vadd.f32 %v1508_v13, %v1247_v4  ;;  %5768 = vst [vmem:[#allocation25_spill] sm:$0xff] %v3916_v36 }
  0xf3   :  { %v1243_v6 = vmul.f32 %v2717_v54, %v3879_v51  ;;  %v1248_v21 = vmul.f32 %v2718_v24, %v3882_v58  ;;  %v3897_v30 = vld [vmem:[#allocation5 + $0x4d8] sm:$0xff]  ;;  %v1503_v27 = vadd.f32 %v1242_v1, %v1241_v37  ;;  %v2719_v20 = vld [vmem:[#allocation2 + $0x120] sm:$0xff]  ;;  %v2720_v34 = vld [vmem:[#allocation2 + $0x128] sm:$0xff]  ;;  %v1495_v37 = vadd.f32 %v1494_v0, %v1236_v52  ;;  %1486 = vadd.xlane.f32.xlu0 %v1485_v25 }
  0xf4   :  { %v1253_v40 = vmul.f32 %v2719_v20, %v3889_v14  ;;  %v1254_v23 = vmul.f32 %v2720_v34, %v3891_v33  ;;  %v2721_v60 = vld [vmem:[#allocation2 + $0x130] sm:$0xff]  ;;  %v3906_v12 = vld [vmem:[#allocation5 + $0x508] sm:$0xff]  ;;  %v3910_v1 = vld [vmem:[#allocation5 + $0x538] sm:$0xff]  ;;  %1501 = vadd.xlane.f32.xlu1 %v1500_v11 }
  0xf5   :  { %v1255_v56 = vmul.f32 %v2721_v60, %v3893_v44  ;;  %v3908_v10 = vld [vmem:[#allocation5 + $0x510] sm:$0xff]  ;;  %v2722_v54 = vld [vmem:[#allocation2 + $0xd8] sm:$0xff]  ;;  %v1504_v4 = vadd.f32 %v1503_v27, %v1243_v6  ;;  %v2723_v24 = vld [vmem:[#allocation2 + $0x100] sm:$0xff]  ;;  %v1510_v6 = vadd.f32 %v1509_v8, %v1248_v21 }
  0xf6   :  { %v1244_v22 = vmul.f32 %v2722_v54, %v3897_v30  ;;  %v1518_v13 = vadd.f32 %v1254_v23, %v1253_v40  ;;  %v1249_v20 = vmul.f32 %v2723_v24, %v3899_v45  ;;  %v3914_v34 = vld [vmem:[#allocation5 + $0x560] sm:$0xff]  ;;  %v3918_v60 = vld [vmem:[#allocation5 + $0x518] sm:$0xff]  ;;  %v2724_v61 = vld [vmem:[#allocation2 + $0x108] sm:$0xff]  ;;  %v3927_v24 = vpop.xlane.xlu1 %732 }
  0xf7   :  { %v1250_v52 = vmul.f32 %v2724_v61, %v3906_v12  ;;  %v2725_v0 = vld [vmem:[#allocation2 + $0x110] sm:$0xff]  ;;  %v3922_v47 = vld [vmem:[#allocation5 + $0x568] sm:$0xff]  ;;  %v2726_v27 = vld [vmem:[#allocation2 + $0x138] sm:$0xff]  ;;  %5769 = vst [vmem:[#allocation26_spill] sm:$0xff] %v3927_v24  ;;  %1496 = vadd.xlane.f32.xlu0 %v1495_v37  ;;  %v3941_v24 = vpop.xlane.xlu0 %727 }
  0xf8   :  { %v1251_v25 = vmul.f32 %v2725_v0, %v3908_v10  ;;  %v3924_v54 = vld [vmem:[#allocation5 + $0x570] sm:$0xff]  ;;  %v1256_v40 = vmul.f32 %v2726_v27, %v3910_v1  ;;  %v1519_v23 = vadd.f32 %v1518_v13, %v1255_v56  ;;  %v3929_v46 = vld [vmem:[#allocation5 + $0x578] sm:$0xff]  ;;  %v2727_v53 = vld [vmem:[#allocation2 + $0x160] sm:$0xff]  ;;  %v1505_v0 = vadd.f32 %v1504_v4, %v1244_v22  ;;  %5771 = vst [vmem:[#allocation28_spill] sm:$0xff] %v3941_v24 }
  0xf9   :  { %v1513_v36 = vadd.f32 %v1250_v52, %v1249_v20  ;;  %v1261_v61 = vmul.f32 %v2727_v53, %v3914_v34  ;;  %v3932_v28 = vld [vmem:[#allocation5 + $0x540] sm:$0xff]  ;;  %v2728_v63 = vld [vmem:[#allocation2 + $0x118] sm:$0xff]  ;;  %v2729_v21 = vld [vmem:[#allocation2 + $0x168] sm:$0xff]  ;;  %1511 = vadd.xlane.f32.xlu1 %v1510_v6 }
  0xfa   :  { %v1252_v11 = vmul.f32 %v2728_v63, %v3918_v60  ;;  %v1262_v8 = vmul.f32 %v2729_v21, %v3922_v47  ;;  %v2730_v27 = vld [vmem:[#allocation2 + $0x170] sm:$0xff]  ;;  %v3937_v13 = vld [vmem:[#allocation5 + $0x548] sm:$0xff]  ;;  %v1520_v53 = vadd.f32 %v1519_v23, %v1256_v40  ;;  %v2731_v37 = vld [vmem:[#allocation2 + $0x178] sm:$0xff] }
  0xfb   :  { %v1263_v56 = vmul.f32 %v2730_v27, %v3924_v54  ;;  %v3939_v20 = vld [vmem:[#allocation5 + $0x550] sm:$0xff]  ;;  %v1514_v52 = vadd.f32 %v1513_v36, %v1251_v25  ;;  %v1264_v22 = vmul.f32 %v2731_v37, %v3929_v46  ;;  %v3944_v63 = vld [vmem:[#allocation5 + $0x558] sm:$0xff]  ;;  %v2732_v38 = vld [vmem:[#allocation2 + $0x140] sm:$0xff]  ;;  %1506 = vadd.xlane.f32.xlu0 %v1505_v0 }
  0xfc   :  { %5770 = vst [vmem:[#allocation27_spill] sm:$0xff] %v3939_v20  ;;  %v1528_v4 = vadd.f32 %v1262_v8, %v1261_v61  ;;  %v1257_v21 = vmul.f32 %v2732_v38, %v3932_v28  ;;  %v3947_v3 = vld [vmem:[#allocation5 + $0x5a0] sm:$0xff]  ;;  %v2733_v27 = vld [vmem:[#allocation2 + $0x148] sm:$0xff]  ;;  %v2734_v29 = vld [vmem:[#allocation2 + $0x150] sm:$0xff]  ;;  %v3955_v61 = vpop.xlane.xlu1 %742 }
  0xfd   :  { %5772 = vst [vmem:[#allocation29_spill] sm:$0xff] %v3947_v3  ;;  %v1258_v43 = vmul.f32 %v2733_v27, %v3937_v13  ;;  %v1259_v36 = vmul.f32 %v2734_v29, %v3939_v20  ;;  %v3951_v25 = vld [vmem:[#allocation5 + $0x5a8] sm:$0xff]  ;;  %v3953_v6 = vld [vmem:[#allocation5 + $0x5b0] sm:$0xff]  ;;  %v1515_v40 = vadd.f32 %v1514_v52, %v1252_v11  ;;  %5775 = vst [vmem:[#allocation32_spill] sm:$0xff] %v3955_v61  ;;  %1521 = vadd.xlane.f32.xlu1 %v1520_v53 }
  0xfe   :  { %5773 = vst [vmem:[#allocation30_spill] sm:$0xff] %v3951_v25  ;;  %5774 = vst [vmem:[#allocation31_spill] sm:$0xff] %v3953_v6  ;;  %v1529_v23 = vadd.f32 %v1528_v4, %v1263_v56  ;;  %v2735_v8 = vld [vmem:[#allocation2 + $0x158] sm:$0xff]  ;;  %v2736_v62 = vld [vmem:[#allocation2 + $0x1a0] sm:$0xff] }
  0xff   :  { %v1260_v38 = vmul.f32 %v2735_v8, %v3944_v63  ;;  %v1523_v37 = vadd.f32 %v1258_v43, %v1257_v21  ;;  %v3958_v24 = vld [vmem:[#allocation5 + $0x5b8] sm:$0xff]  ;;  %v1269_v27 = vmul.f32 %v2736_v62, %v3947_v3  ;;  %v3961_v39 = vld [vmem:[#allocation5 + $0x580] sm:$0xff]  ;;  %v2737_v20 = vld [vmem:[#allocation2 + $0x1a8] sm:$0xff]  ;;  %v3969_v43 = vpop.xlane.xlu0 %737  ;;  %1516 = vadd.xlane.f32.xlu0 %v1515_v40 }
 0x100   :  { %5776 = vst [vmem:[#allocation33_spill] sm:$0xff] %v3958_v24  ;;  %5777 = vst [vmem:[#allocation34_spill] sm:$0xff] %v3961_v39  ;;  %v1530_v29 = vadd.f32 %v1529_v23, %v1264_v22  ;;  %v1270_v0 = vmul.f32 %v2737_v20, %v3951_v25  ;;  %v2738_v11 = vld [vmem:[#allocation2 + $0x1b0] sm:$0xff]  ;;  %v3965_v52 = vld [vmem:[#allocation5 + $0x588] sm:$0xff] }
 0x101   :  { %v1271_v56 = vmul.f32 %v2738_v11, %v3953_v6  ;;  %5778 = vst [vmem:[#allocation35_spill] sm:$0xff] %v3965_v52  ;;  %v3967_v4 = vld [vmem:[#allocation5 + $0x590] sm:$0xff]  ;;  %5780 = vst [vmem:[#allocation37_spill] sm:$0xff] %v3969_v43  ;;  %v1524_v21 = vadd.f32 %v1523_v37, %v1259_v36  ;;  %v2739_v8 = vld [vmem:[#allocation2 + $0x1b8] sm:$0xff]  ;;  %v3983_v37 = vpop.xlane.xlu1 %752 }
 0x102   :  { %5779 = vst [vmem:[#allocation36_spill] sm:$0xff] %v3967_v4  ;;  %v1272_v62 = vmul.f32 %v2739_v8, %v3958_v24  ;;  %v1538_v61 = vadd.f32 %v1270_v0, %v1269_v27  ;;  %v3972_v53 = vld [vmem:[#allocation5 + $0x598] sm:$0xff]  ;;  %v2740_v22 = vld [vmem:[#allocation2 + $0x180] sm:$0xff]  ;;  %v2741_v6 = vld [vmem:[#allocation2 + $0x188] sm:$0xff]  ;;  %1531 = vadd.xlane.f32.xlu1 %v1530_v29 }
 0x103   :  { %v1265_v20 = vmul.f32 %v2740_v22, %v3961_v39  ;;  %v3975_v23 = vld [vmem:[#allocation5 + $0x5e0] sm:$0xff]  ;;  %v1525_v11 = vadd.f32 %v1524_v21, %v1260_v38  ;;  %v1266_v25 = vmul.f32 %v2741_v6, %v3965_v52  ;;  %v2742_v3 = vld [vmem:[#allocation2 + $0x190] sm:$0xff]  ;;  %v3979_v36 = vld [vmem:[#allocation5 + $0x5e8] sm:$0xff]  ;;  %5784 = vst [vmem:[#allocation41_spill] sm:$0xff] %v3983_v37 }
 0x104   :  { %5781 = vst [vmem:[#allocation38_spill] sm:$0xff] %v3975_v23  ;;  %v1267_v43 = vmul.f32 %v2742_v3, %v3967_v4  ;;  %5782 = vst [vmem:[#allocation39_spill] sm:$0xff] %v3979_v36  ;;  %v3981_v40 = vld [vmem:[#allocation5 + $0x5f0] sm:$0xff]  ;;  %v1539_v27 = vadd.f32 %v1538_v61, %v1271_v56  ;;  %v2743_v0 = vld [vmem:[#allocation2 + $0x198] sm:$0xff] }
 0x105   :  { %5783 = vst [vmem:[#allocation40_spill] sm:$0xff] %v3981_v40  ;;  %v1268_v8 = vmul.f32 %v2743_v0, %v3972_v53  ;;  %v1533_v22 = vadd.f32 %v1266_v25, %v1265_v20  ;;  %v3986_v39 = vld [vmem:[#allocation5 + $0x5f8] sm:$0xff]  ;;  %v2744_v38 = vld [vmem:[#allocation2 + $0x1e0] sm:$0xff]  ;;  %1526 = vadd.xlane.f32.xlu0 %v1525_v11  ;;  %v2745_v4 = vld [vmem:[#allocation2 + $0x1e8] sm:$0xff]  ;;  %v3997_v25 = vpop.xlane.xlu0 %747 }
 0x106   :  { %5785 = vst [vmem:[#allocation42_spill] sm:$0xff] %v3986_v39  ;;  %v1277_v6 = vmul.f32 %v2744_v38, %v3975_v23  ;;  %v3989_v21 = vld [vmem:[#allocation5 + $0x5c0] sm:$0xff]  ;;  %v1540_v3 = vadd.f32 %v1539_v27, %v1272_v62  ;;  %v1278_v52 = vmul.f32 %v2745_v4, %v3979_v36  ;;  %v2746_v24 = vld [vmem:[#allocation2 + $0x1f0] sm:$0xff]  ;;  %v3993_v61 = vld [vmem:[#allocation5 + $0x5c8] sm:$0xff] }
 0x107   :  { %5786 = vst [vmem:[#allocation43_spill] sm:$0xff] %v3989_v21  ;;  %v1279_v29 = vmul.f32 %v2746_v24, %v3981_v40  ;;  %5787 = vst [vmem:[#allocation44_spill] sm:$0xff] %v3993_v61  ;;  %v3995_v56 = vld [vmem:[#allocation5 + $0x5d0] sm:$0xff]  ;;  %v1534_v20 = vadd.f32 %v1533_v22, %v1267_v43  ;;  %v2747_v0 = vld [vmem:[#allocation2 + $0x1f8] sm:$0xff]  ;;  %v4005_v24 = vpop.xlane.xlu1 %762 }
 0x108   :  { %5788 = vst [vmem:[#allocation45_spill] sm:$0xff] %v3995_v56  ;;  %5789 = vst [vmem:[#allocation46_spill] sm:$0xff] %v3997_v25  ;;  %1541 = vadd.xlane.f32.xlu1 %v1540_v3  ;;  %v1280_v38 = vmul.f32 %v2747_v0, %v3986_v39  ;;  %v1548_v37 = vadd.f32 %v1278_v52, %v1277_v6  ;;  %v4000_v11 = vld [vmem:[#allocation5 + $0x5d8] sm:$0xff]  ;;  %v2748_v62 = vld [vmem:[#allocation2 + $0x1c0] sm:$0xff] }
 0x109   :  { %5790 = vst [vmem:[#allocation47_spill] sm:$0xff] %v4000_v11  ;;  %v1273_v4 = vmul.f32 %v2748_v62, %v3989_v21  ;;  %v4003_v27 = vld [vmem:[#allocation5 + $0x620] sm:$0xff]  ;;  %5792 = vst [vmem:[#allocation49_spill] sm:$0xff] %v4005_v24  ;;  %v1535_v40 = vadd.f32 %v1534_v20, %v1268_v8  ;;  %v2749_v36 = vld [vmem:[#allocation2 + $0x1c8] sm:$0xff] }
 0x10a   :  { %5791 = vst [vmem:[#allocation48_spill] sm:$0xff] %v4003_v27  ;;  %v1274_v23 = vmul.f32 %v2749_v36, %v3993_v61  ;;  %v2750_v25 = vld [vmem:[#allocation2 + $0x1d0] sm:$0xff]  ;;  %v4009_v22 = vld [vmem:[#allocation5 + $0x628] sm:$0xff]  ;;  %v1549_v52 = vadd.f32 %v1548_v37, %v1279_v29  ;;  %v2751_v6 = vld [vmem:[#allocation2 + $0x1d8] sm:$0xff]  ;;  %v4019_v36 = vpop.xlane.xlu0 %757 }
 0x10b   :  { %v1275_v43 = vmul.f32 %v2750_v25, %v3995_v56  ;;  %5793 = vst [vmem:[#allocation50_spill] sm:$0xff] %v4009_v22  ;;  %v4011_v3 = vld [vmem:[#allocation5 + $0x630] sm:$0xff]  ;;  %1536 = vadd.xlane.f32.xlu0 %v1535_v40  ;;  %v1276_v0 = vmul.f32 %v2751_v6, %v4000_v11  ;;  %v4014_v21 = vld [vmem:[#allocation5 + $0x638] sm:$0xff]  ;;  %v2752_v24 = vld [vmem:[#allocation2 + $0x220] sm:$0xff] }
 0x10c   :  { %5794 = vst [vmem:[#allocation51_spill] sm:$0xff] %v4011_v3  ;;  %v1543_v62 = vadd.f32 %v1274_v23, %v1273_v4  ;;  %5795 = vst [vmem:[#allocation52_spill] sm:$0xff] %v4014_v21  ;;  %v1285_v8 = vmul.f32 %v2752_v24, %v4003_v27  ;;  %v4017_v20 = vld [vmem:[#allocation5 + $0x600] sm:$0xff]  ;;  %v1550_v25 = vadd.f32 %v1549_v52, %v1280_v38  ;;  %v2753_v56 = vld [vmem:[#allocation2 + $0x228] sm:$0xff] }
 0x10d   :  { %5796 = vst [vmem:[#allocation53_spill] sm:$0xff] %v4017_v20  ;;  %5797 = vst [vmem:[#allocation54_spill] sm:$0xff] %v4019_v36  ;;  %v1286_v61 = vmul.f32 %v2753_v56, %v4009_v22  ;;  %v2754_v39 = vld [vmem:[#allocation2 + $0x230] sm:$0xff]  ;;  %v4023_v37 = vld [vmem:[#allocation5 + $0x608] sm:$0xff]  ;;  %v4033_v56 = vpop.xlane.xlu1 %772 }
 0x10e   :  { %v1287_v40 = vmul.f32 %v2754_v39, %v4011_v3  ;;  %5798 = vst [vmem:[#allocation55_spill] sm:$0xff] %v4023_v37  ;;  %v4025_v29 = vld [vmem:[#allocation5 + $0x610] sm:$0xff]  ;;  %v1544_v23 = vadd.f32 %v1543_v62, %v1275_v43  ;;  %1551 = vadd.xlane.f32.xlu1 %v1550_v25  ;;  %v2755_v4 = vld [vmem:[#allocation2 + $0x238] sm:$0xff]  ;;  %v2756_v36 = vld [vmem:[#allocation2 + $0x200] sm:$0xff] }
 0x10f   :  { %5799 = vst [vmem:[#allocation56_spill] sm:$0xff] %v4025_v29  ;;  %v1288_v24 = vmul.f32 %v2755_v4, %v4014_v21  ;;  %v1558_v6 = vadd.f32 %v1286_v61, %v1285_v8  ;;  %v4028_v27 = vld [vmem:[#allocation5 + $0x618] sm:$0xff]  ;;  %v1281_v38 = vmul.f32 %v2756_v36, %v4017_v20  ;;  %v4031_v52 = vld [vmem:[#allocation5 + $0x660] sm:$0xff]  ;;  %5802 = vst [vmem:[#allocation59_spill] sm:$0xff] %v4033_v56  ;;  %v4041_v8 = vpop.xlane.xlu0 %767 }
 0x110   :  { %5800 = vst [vmem:[#allocation57_spill] sm:$0xff] %v4028_v27  ;;  %5801 = vst [vmem:[#allocation58_spill] sm:$0xff] %v4031_v52  ;;  %v1545_v39 = vadd.f32 %v1544_v23, %v1276_v0  ;;  %v2757_v3 = vld [vmem:[#allocation2 + $0x208] sm:$0xff]  ;;  %v2758_v11 = vld [vmem:[#allocation2 + $0x210] sm:$0xff] }
 0x111   :  { %v1282_v22 = vmul.f32 %v2757_v3, %v4023_v37  ;;  %v1283_v43 = vmul.f32 %v2758_v11, %v4025_v29  ;;  %v4037_v62 = vld [vmem:[#allocation5 + $0x668] sm:$0xff]  ;;  %v4039_v25 = vld [vmem:[#allocation5 + $0x670] sm:$0xff]  ;;  %v1559_v61 = vadd.f32 %v1558_v6, %v1287_v40  ;;  %5805 = vst [vmem:[#allocation62_spill] sm:$0xff] %v4041_v8  ;;  %v2759_v36 = vld [vmem:[#allocation2 + $0x218] sm:$0xff] }
 0x112   :  { %5803 = vst [vmem:[#allocation60_spill] sm:$0xff] %v4037_v62  ;;  %5804 = vst [vmem:[#allocation61_spill] sm:$0xff] %v4039_v25  ;;  %1546 = vadd.xlane.f32.xlu0 %v1545_v39  ;;  %v1284_v4 = vmul.f32 %v2759_v36, %v4028_v27  ;;  %v4044_v56 = vld [vmem:[#allocation5 + $0x678] sm:$0xff]  ;;  %v2760_v0 = vld [vmem:[#allocation2 + $0x260] sm:$0xff] }
 0x113   :  { %v1553_v20 = vadd.f32 %v1282_v22, %v1281_v38  ;;  %5806 = vst [vmem:[#allocation63_spill] sm:$0xff] %v4044_v56  ;;  %v1293_v3 = vmul.f32 %v2760_v0, %v4031_v52  ;;  %v4047_v23 = vld [vmem:[#allocation5 + $0x640] sm:$0xff]  ;;  %v1560_v11 = vadd.f32 %v1559_v61, %v1288_v24  ;;  %v2761_v29 = vld [vmem:[#allocation2 + $0x268] sm:$0xff]  ;;  %v2762_v21 = vld [vmem:[#allocation2 + $0x270] sm:$0xff]  ;;  %v4055_v22 = vpop.xlane.xlu1 %782 }
 0x114   :  { %5807 = vst [vmem:[#allocation64_spill] sm:$0xff] %v4047_v23  ;;  %v1294_v37 = vmul.f32 %v2761_v29, %v4037_v62  ;;  %v1295_v40 = vmul.f32 %v2762_v21, %v4039_v25  ;;  %v4051_v6 = vld [vmem:[#allocation5 + $0x648] sm:$0xff]  ;;  %v4053_v39 = vld [vmem:[#allocation5 + $0x650] sm:$0xff]  ;;  %5810 = vst [vmem:[#allocation67_spill] sm:$0xff] %v4055_v22 }
 0x115   :  { %5808 = vst [vmem:[#allocation65_spill] sm:$0xff] %v4051_v6  ;;  %5809 = vst [vmem:[#allocation66_spill] sm:$0xff] %v4053_v39  ;;  %v1554_v36 = vadd.f32 %v1553_v20, %v1283_v43  ;;  %1561 = vadd.xlane.f32.xlu1 %v1560_v11  ;;  %v2763_v38 = vld [vmem:[#allocation2 + $0x278] sm:$0xff]  ;;  %v2764_v24 = vld [vmem:[#allocation2 + $0x240] sm:$0xff] }
 0x116   :  { %v1296_v0 = vmul.f32 %v2763_v38, %v4044_v56  ;;  %v1568_v8 = vadd.f32 %v1294_v37, %v1293_v3  ;;  %v4058_v52 = vld [vmem:[#allocation5 + $0x658] sm:$0xff]  ;;  %v1289_v29 = vmul.f32 %v2764_v24, %v4047_v23  ;;  %v4061_v61 = vld [vmem:[#allocation5 + $0x6a0] sm:$0xff]  ;;  %v2765_v25 = vld [vmem:[#allocation2 + $0x248] sm:$0xff]  ;;  %v4069_v37 = vpop.xlane.xlu0 %777 }
 0x117   :  { %5811 = vst [vmem:[#allocation68_spill] sm:$0xff] %v4058_v52  ;;  %5812 = vst [vmem:[#allocation69_spill] sm:$0xff] %v4061_v61  ;;  %v1555_v21 = vadd.f32 %v1554_v36, %v1284_v4  ;;  %v1290_v62 = vmul.f32 %v2765_v25, %v4051_v6  ;;  %v2766_v27 = vld [vmem:[#allocation2 + $0x250] sm:$0xff]  ;;  %v4065_v43 = vld [vmem:[#allocation5 + $0x6a8] sm:$0xff] }
 0x118   :  { %v1291_v20 = vmul.f32 %v2766_v27, %v4053_v39  ;;  %5813 = vst [vmem:[#allocation70_spill] sm:$0xff] %v4065_v43  ;;  %v4067_v11 = vld [vmem:[#allocation5 + $0x6b0] sm:$0xff]  ;;  %v1569_v38 = vadd.f32 %v1568_v8, %v1295_v40  ;;  %5815 = vst [vmem:[#allocation72_spill] sm:$0xff] %v4069_v37  ;;  %v2767_v3 = vld [vmem:[#allocation2 + $0x258] sm:$0xff] }
 0x119   :  { %5814 = vst [vmem:[#allocation71_spill] sm:$0xff] %v4067_v11  ;;  %1556 = vadd.xlane.f32.xlu0 %v1555_v21  ;;  %v1292_v24 = vmul.f32 %v2767_v3, %v4058_v52  ;;  %v1563_v22 = vadd.f32 %v1290_v62, %v1289_v29  ;;  %v4072_v23 = vld [vmem:[#allocation5 + $0x6b8] sm:$0xff]  ;;  %v2768_v4 = vld [vmem:[#allocation2 + $0x2a0] sm:$0xff]  ;;  %v2769_v39 = vld [vmem:[#allocation2 + $0x2a8] sm:$0xff]  ;;  %v4083_v3 = vpop.xlane.xlu1 %792 }
 0x11a   :  { %5816 = vst [vmem:[#allocation73_spill] sm:$0xff] %v4072_v23  ;;  %v1301_v25 = vmul.f32 %v2768_v4, %v4061_v61  ;;  %v4075_v36 = vld [vmem:[#allocation5 + $0x680] sm:$0xff]  ;;  %v1570_v27 = vadd.f32 %v1569_v38, %v1296_v0  ;;  %v1302_v6 = vmul.f32 %v2769_v39, %v4065_v43  ;;  %v2770_v56 = vld [vmem:[#allocation2 + $0x2b0] sm:$0xff]  ;;  %v4079_v40 = vld [vmem:[#allocation5 + $0x688] sm:$0xff] }
 0x11b   :  { %5817 = vst [vmem:[#allocation74_spill] sm:$0xff] %v4075_v36  ;;  %v1303_v8 = vmul.f32 %v2770_v56, %v4067_v11  ;;  %5818 = vst [vmem:[#allocation75_spill] sm:$0xff] %v4079_v40  ;;  %v4081_v21 = vld [vmem:[#allocation5 + $0x690] sm:$0xff]  ;;  %v4085_v62 = vld [vmem:[#allocation2 + $0x460] sm:$0xff]  ;;  %v1564_v4 = vadd.f32 %v1563_v22, %v1291_v20 }
 0x11c   :  { %5819 = vst [vmem:[#allocation76_spill] sm:$0xff] %v4081_v21  ;;  %5820 = vst [vmem:[#allocation77_spill] sm:$0xff] %v4083_v3  ;;  %v4089_v29 = vmul.f32 %v4085_v62, %v3801_v59  ;;  %v4091_v0 = vld [vmem:[#allocation2 + $0x468] sm:$0xff]  ;;  %1571 = vadd.xlane.f32.xlu1 %v1570_v27  ;;  %v2773_v56 = vld [vmem:[#allocation2 + $0x2b8] sm:$0xff]  ;;  %v1578_v37 = vadd.f32 %v1302_v6, %v1301_v25 }
 0x11d   :  { %5821 = vst [vmem:[#allocation78_spill] sm:$0xff] %v4085_v62  ;;  %5822 = vst [vmem:[#allocation79_spill] sm:$0xff] %v4091_v0  ;;  %v4095_v39 = vmul.f32 %v4091_v0, %v3803_v18  ;;  %v1304_v38 = vmul.f32 %v2773_v56, %v4072_v23  ;;  %v4098_v11 = vld [vmem:[#allocation5 + $0x698] sm:$0xff]  ;;  %v2774_v3 = vld [vmem:[#allocation2 + $0x280] sm:$0xff]  ;;  %v1565_v18 = vadd.f32 %v1564_v4, %v1292_v24 }
 0x11e   :  { %5823 = vst [vmem:[#allocation80_spill] sm:$0xff] %v4098_v11  ;;  %v1297_v43 = vmul.f32 %v2774_v3, %v4075_v36  ;;  %v4101_v61 = vld [vmem:[#allocation5 + $0x6e0] sm:$0xff]  ;;  %v4103_v59 = vld [vmem:[#allocation2 + $0x470] sm:$0xff]  ;;  %v2776_v20 = vld [vmem:[#allocation2 + $0x288] sm:$0xff]  ;;  %v4115_v3 = vpop.xlane.xlu0 %787 }
 0x11f   :  { %5824 = vst [vmem:[#allocation81_spill] sm:$0xff] %v4101_v61  ;;  %5825 = vst [vmem:[#allocation82_spill] sm:$0xff] %v4103_v59  ;;  %v4107_v22 = vmul.f32 %v4103_v59, %v3819_v9  ;;  %v1298_v27 = vmul.f32 %v2776_v20, %v4079_v40  ;;  %v2777_v0 = vld [vmem:[#allocation2 + $0x290] sm:$0xff]  ;;  %v4111_v25 = vld [vmem:[#allocation5 + $0x6e8] sm:$0xff]  ;;  %v1579_v20 = vadd.f32 %v1578_v37, %v1303_v8  ;;  %1566 = vadd.xlane.f32.xlu0 %v1565_v18 }
 0x120   :  { %v1299_v6 = vmul.f32 %v2777_v0, %v4081_v21  ;;  %5826 = vst [vmem:[#allocation83_spill] sm:$0xff] %v4111_v25  ;;  %v4113_v56 = vld [vmem:[#allocation5 + $0x6f0] sm:$0xff]  ;;  %5828 = vst [vmem:[#allocation85_spill] sm:$0xff] %v4115_v3  ;;  %v4117_v62 = vld [vmem:[#allocation2 + $0x478] sm:$0xff] }
 0x121   :  { %5827 = vst [vmem:[#allocation84_spill] sm:$0xff] %v4113_v56  ;;  %5829 = vst [vmem:[#allocation86_spill] sm:$0xff] %v4117_v62  ;;  %v4121_v23 = vmul.f32 %v4117_v62, %v3840_v50  ;;  %v4123_v9 = vld [vmem:[#allocation2 + $0x440] sm:$0xff]  ;;  %v4129_v4 = vld [vmem:[#allocation2 + $0x448] sm:$0xff]  ;;  %v1573_v21 = vadd.f32 %v1298_v27, %v1297_v43 }
 0x122   :  { %5830 = vst [vmem:[#allocation87_spill] sm:$0xff] %v4123_v9  ;;  %v4127_v24 = vmul.f32 %v4123_v9, %v3809_v32  ;;  %5831 = vst [vmem:[#allocation88_spill] sm:$0xff] %v4129_v4  ;;  %v4133_v0 = vmul.f32 %v4129_v4, %v3811_v31  ;;  %v4135_v3 = vld [vmem:[#allocation2 + $0x450] sm:$0xff]  ;;  %v2782_v50 = vld [vmem:[#allocation2 + $0x298] sm:$0xff] }
 0x123   :  { %5832 = vst [vmem:[#allocation89_spill] sm:$0xff] %v4135_v3  ;;  %v4139_v59 = vmul.f32 %v4135_v3, %v3829_v2  ;;  %v1300_v62 = vmul.f32 %v2782_v50, %v4098_v11  ;;  %v4142_v32 = vld [vmem:[#allocation5 + $0x6f8] sm:$0xff]  ;;  %v2783_v9 = vld [vmem:[#allocation2 + $0x2e0] sm:$0xff]  ;;  %v1580_v2 = vadd.f32 %v1579_v20, %v1304_v38  ;;  %v2785_v8 = vld [vmem:[#allocation2 + $0x2e8] sm:$0xff] }
 0x124   :  { %5833 = vst [vmem:[#allocation90_spill] sm:$0xff] %v4142_v32  ;;  %v1309_v52 = vmul.f32 %v2783_v9, %v4101_v61  ;;  %v4145_v40 = vld [vmem:[#allocation5 + $0x6c0] sm:$0xff]  ;;  %v4147_v31 = vld [vmem:[#allocation2 + $0x458] sm:$0xff]  ;;  %v1310_v18 = vmul.f32 %v2785_v8, %v4111_v25  ;;  %v2786_v3 = vld [vmem:[#allocation2 + $0x2f0] sm:$0xff]  ;;  %v4159_v9 = vpop.xlane.xlu1 %802  ;;  %v1574_v8 = vadd.f32 %v1573_v21, %v1299_v6 }
 0x125   :  { %5834 = vst [vmem:[#allocation91_spill] sm:$0xff] %v4145_v40  ;;  %5835 = vst [vmem:[#allocation92_spill] sm:$0xff] %v4147_v31  ;;  %v4151_v37 = vmul.f32 %v4147_v31, %v3846_v42  ;;  %v1311_v43 = vmul.f32 %v2786_v3, %v4113_v56  ;;  %v4155_v27 = vld [vmem:[#allocation5 + $0x6c8] sm:$0xff]  ;;  %v4157_v50 = vld [vmem:[#allocation5 + $0x6d0] sm:$0xff]  ;;  %1581 = vadd.xlane.f32.xlu1 %v1580_v2 }
 0x126   :  { %5836 = vst [vmem:[#allocation93_spill] sm:$0xff] %v4155_v27  ;;  %5837 = vst [vmem:[#allocation94_spill] sm:$0xff] %v4157_v50  ;;  %v4161_v4 = vld [vmem:[#allocation2 + $0x4a0] sm:$0xff]  ;;  %v4167_v42 = vld [vmem:[#allocation2 + $0x4a8] sm:$0xff]  ;;  %v1588_v56 = vadd.f32 %v1310_v18, %v1309_v52  ;;  %v1575_v6 = vadd.f32 %v1574_v8, %v1300_v62 }
 0x127   :  { %5838 = vst [vmem:[#allocation95_spill] sm:$0xff] %v4159_v9  ;;  %5839 = vst [vmem:[#allocation96_spill] sm:$0xff] %v4161_v4  ;;  %v4165_v61 = vmul.f32 %v4161_v4, %v3825_v57  ;;  %v4171_v38 = vmul.f32 %v4167_v42, %v3827_v7  ;;  %v4173_v20 = vld [vmem:[#allocation2 + $0x4b0] sm:$0xff]  ;;  %v4179_v9 = vld [vmem:[#allocation2 + $0x4b8] sm:$0xff] }
 0x128   :  { %5840 = vst [vmem:[#allocation97_spill] sm:$0xff] %v4167_v42  ;;  %5841 = vst [vmem:[#allocation98_spill] sm:$0xff] %v4173_v20  ;;  %v4177_v3 = vmul.f32 %v4173_v20, %v3833_v26  ;;  %v4183_v31 = vmul.f32 %v4179_v9, %v3860_v49  ;;  %v2791_v57 = vld [vmem:[#allocation2 + $0x2f8] sm:$0xff]  ;;  %v2792_v42 = vld [vmem:[#allocation2 + $0x2c0] sm:$0xff]  ;;  %v4191_v26 = vpop.xlane.xlu0 %797  ;;  %1576 = vadd.xlane.f32.xlu0 %v1575_v6 }
 0x129   :  { %5842 = vst [vmem:[#allocation99_spill] sm:$0xff] %v4179_v9  ;;  %v1312_v4 = vmul.f32 %v2791_v57, %v4142_v32  ;;  %v4186_v7 = vld [vmem:[#allocation5 + $0x6d8] sm:$0xff]  ;;  %v1305_v25 = vmul.f32 %v2792_v42, %v4145_v40  ;;  %v4189_v11 = vld [vmem:[#allocation5 + $0x720] sm:$0xff]  ;;  %5845 = vst [vmem:[#allocation102_spill] sm:$0xff] %v4191_v26 }
 0x12a   :  { %5843 = vst [vmem:[#allocation100_spill] sm:$0xff] %v4186_v7  ;;  %5844 = vst [vmem:[#allocation101_spill] sm:$0xff] %v4189_v11  ;;  %v4193_v21 = vld [vmem:[#allocation2 + $0x480] sm:$0xff]  ;;  %v2794_v2 = vld [vmem:[#allocation2 + $0x2c8] sm:$0xff] }
 0x12b   :  { %5846 = vst [vmem:[#allocation103_spill] sm:$0xff] %v4193_v21  ;;  %v4197_v49 = vmul.f32 %v4193_v21, %v3835_v5  ;;  %v1306_v57 = vmul.f32 %v2794_v2, %v4155_v27  ;;  %v2795_v52 = vld [vmem:[#allocation2 + $0x2d0] sm:$0xff]  ;;  %v4201_v9 = vld [vmem:[#allocation5 + $0x728] sm:$0xff]  ;;  %v4217_v62 = vld [vmem:[#allocation2 + $0x498] sm:$0xff]  ;;  %v1589_v2 = vadd.f32 %v1588_v56, %v1311_v43 }
 0x12c   :  { %v1307_v18 = vmul.f32 %v2795_v52, %v4157_v50  ;;  %5847 = vst [vmem:[#allocation104_spill] sm:$0xff] %v4201_v9  ;;  %v4203_v42 = vld [vmem:[#allocation5 + $0x730] sm:$0xff]  ;;  %v4205_v20 = vld [vmem:[#allocation2 + $0x488] sm:$0xff]  ;;  %5851 = vst [vmem:[#allocation108_spill] sm:$0xff] %v4217_v62  ;;  %v4221_v8 = vmul.f32 %v4217_v62, %v3864_v55  ;;  %v4235_v55 = vpop.xlane.xlu1 %812  ;;  %v4275_v36 = vpop.xlane.xlu0 %807 }
 0x12d   :  { %5848 = vst [vmem:[#allocation105_spill] sm:$0xff] %v4203_v42  ;;  %5849 = vst [vmem:[#allocation106_spill] sm:$0xff] %v4205_v20  ;;  %v4209_v26 = vmul.f32 %v4205_v20, %v3844_v48  ;;  %v4211_v40 = vld [vmem:[#allocation2 + $0x490] sm:$0xff]  ;;  %v4223_v52 = vld [vmem:[#allocation2 + $0x4e0] sm:$0xff]  ;;  %v1583_v50 = vadd.f32 %v1306_v57, %v1305_v25  ;;  %v1590_v43 = vadd.f32 %v1589_v2, %v1312_v4 }
 0x12e   :  { %5850 = vst [vmem:[#allocation107_spill] sm:$0xff] %v4211_v40  ;;  %v4215_v5 = vmul.f32 %v4211_v40, %v3849_v41  ;;  %5852 = vst [vmem:[#allocation109_spill] sm:$0xff] %v4223_v52  ;;  %v4227_v21 = vmul.f32 %v4223_v52, %v3853_v35  ;;  %v2800_v48 = vld [vmem:[#allocation2 + $0x2d8] sm:$0xff]  ;;  %v2801_v40 = vld [vmem:[#allocation2 + $0x320] sm:$0xff] }
 0x12f   :  { %v1308_v20 = vmul.f32 %v2800_v48, %v4186_v7  ;;  %v4230_v41 = vld [vmem:[#allocation5 + $0x738] sm:$0xff]  ;;  %v1317_v27 = vmul.f32 %v2801_v40, %v4189_v11  ;;  %v4233_v32 = vld [vmem:[#allocation5 + $0x700] sm:$0xff]  ;;  %5855 = vst [vmem:[#allocation112_spill] sm:$0xff] %v4235_v55  ;;  %v4237_v56 = vld [vmem:[#allocation2 + $0x4e8] sm:$0xff]  ;;  %1591 = vadd.xlane.f32.xlu1 %v1590_v43 }
 0x130   :  { %5853 = vst [vmem:[#allocation110_spill] sm:$0xff] %v4230_v41  ;;  %5854 = vst [vmem:[#allocation111_spill] sm:$0xff] %v4233_v32  ;;  %v4241_v35 = vmul.f32 %v4237_v56, %v3855_v19  ;;  %v2803_v6 = vld [vmem:[#allocation2 + $0x328] sm:$0xff]  ;;  %v2804_v25 = vld [vmem:[#allocation2 + $0x330] sm:$0xff] }
 0x131   :  { %5856 = vst [vmem:[#allocation113_spill] sm:$0xff] %v4237_v56  ;;  %v1318_v48 = vmul.f32 %v2803_v6, %v4201_v9  ;;  %v1319_v57 = vmul.f32 %v2804_v25, %v4203_v42  ;;  %v4245_v52 = vld [vmem:[#allocation5 + $0x708] sm:$0xff]  ;;  %v4247_v40 = vld [vmem:[#allocation5 + $0x710] sm:$0xff]  ;;  %v4255_v11 = vld [vmem:[#allocation2 + $0x4f8] sm:$0xff]  ;;  %v1584_v6 = vadd.f32 %v1583_v50, %v1307_v18 }
 0x132   :  { %5857 = vst [vmem:[#allocation114_spill] sm:$0xff] %v4245_v52  ;;  %5858 = vst [vmem:[#allocation115_spill] sm:$0xff] %v4247_v40  ;;  %v4249_v62 = vld [vmem:[#allocation2 + $0x4f0] sm:$0xff]  ;;  %v4259_v19 = vmul.f32 %v4255_v11, %v3882_v58  ;;  %v4261_v4 = vld [vmem:[#allocation2 + $0x4c0] sm:$0xff] }
 0x133   :  { %5859 = vst [vmem:[#allocation116_spill] sm:$0xff] %v4249_v62  ;;  %v4253_v55 = vmul.f32 %v4249_v62, %v3867_v15  ;;  %5860 = vst [vmem:[#allocation117_spill] sm:$0xff] %v4255_v11  ;;  %v4265_v2 = vmul.f32 %v4261_v4, %v3872_v16  ;;  %v4267_v25 = vld [vmem:[#allocation2 + $0x4c8] sm:$0xff]  ;;  %v2809_v15 = vld [vmem:[#allocation2 + $0x338] sm:$0xff]  ;;  %v1598_v42 = vadd.f32 %v1318_v48, %v1317_v27 }
 0x134   :  { %5861 = vst [vmem:[#allocation118_spill] sm:$0xff] %v4261_v4  ;;  %5862 = vst [vmem:[#allocation119_spill] sm:$0xff] %v4267_v25  ;;  %v4271_v56 = vmul.f32 %v4267_v25, %v3874_v17  ;;  %v1320_v62 = vmul.f32 %v2809_v15, %v4230_v41  ;;  %v1188_v58 = vld [vmem:[#allocation5 + $0x718] sm:$0xff]  ;;  %v2810_v11 = vld [vmem:[#allocation2 + $0x300] sm:$0xff]  ;;  %v1585_v17 = vadd.f32 %v1584_v6, %v1308_v20 }
 0x135   :  { %v1313_v9 = vmul.f32 %v2810_v11, %v4233_v32  ;;  %v1197_v7 = vld [vmem:[#allocation5 + $0x760] sm:$0xff]  ;;  %5863 = vst [vmem:[#allocation120_spill] sm:$0xff] %v4275_v36  ;;  %v4277_v16 = vld [vmem:[#allocation2 + $0x4d0] sm:$0xff]  ;;  %v2812_v18 = vld [vmem:[#allocation2 + $0x308] sm:$0xff] }
 0x136   :  { %5864 = vst [vmem:[#allocation121_spill] sm:$0xff] %v4277_v16  ;;  %v4281_v50 = vmul.f32 %v4277_v16, %v3879_v51  ;;  %v1314_v43 = vmul.f32 %v2812_v18, %v4245_v52  ;;  %v2813_v25 = vld [vmem:[#allocation2 + $0x310] sm:$0xff]  ;;  %v1198_v48 = vld [vmem:[#allocation5 + $0x768] sm:$0xff]  ;;  %v4285_v41 = vld [vmem:[#allocation2 + $0x4d8] sm:$0xff]  ;;  %v4303_v18 = vpop.xlane.xlu1 %822  ;;  %1586 = vadd.xlane.f32.xlu0 %v1585_v17 }
 0x137   :  { %v1315_v27 = vmul.f32 %v2813_v25, %v4247_v40  ;;  %v1199_v15 = vld [vmem:[#allocation5 + $0x770] sm:$0xff]  ;;  %5865 = vst [vmem:[#allocation122_spill] sm:$0xff] %v4285_v41  ;;  %v4289_v11 = vmul.f32 %v4285_v41, %v3897_v30  ;;  %v4291_v36 = vld [vmem:[#allocation2 + $0x520] sm:$0xff]  ;;  %v4297_v20 = vld [vmem:[#allocation2 + $0x528] sm:$0xff]  ;;  %v1599_v25 = vadd.f32 %v1598_v42, %v1319_v57 }
 0x138   :  { %5867 = vst [vmem:[#allocation124_spill] sm:$0xff] %v4291_v36  ;;  %v4295_v51 = vmul.f32 %v4291_v36, %v3889_v14  ;;  %5868 = vst [vmem:[#allocation125_spill] sm:$0xff] %v4297_v20  ;;  %v4301_v6 = vmul.f32 %v4297_v20, %v3891_v33  ;;  %v4305_v40 = vld [vmem:[#allocation2 + $0x530] sm:$0xff]  ;;  %v2818_v41 = vld [vmem:[#allocation2 + $0x318] sm:$0xff]  ;;  %v1593_v14 = vadd.f32 %v1314_v43, %v1313_v9 }
 0x139   :  { %5866 = vst [vmem:[#allocation123_spill] sm:$0xff] %v4289_v11  ;;  %5869 = vst [vmem:[#allocation126_spill] sm:$0xff] %v4303_v18  ;;  %v4309_v30 = vmul.f32 %v4305_v40, %v3893_v44  ;;  %v1316_v52 = vmul.f32 %v2818_v41, %v1188_v58  ;;  %v1200_v36 = vld [vmem:[#allocation5 + $0x778] sm:$0xff]  ;;  %v2819_v32 = vld [vmem:[#allocation2 + $0x360] sm:$0xff]  ;;  %v1600_v42 = vadd.f32 %v1599_v25, %v1320_v62  ;;  %v4335_v58 = vpop.xlane.xlu0 %817 }
 0x13a   :  { %5870 = vst [vmem:[#allocation127_spill] sm:$0xff] %v4305_v40  ;;  %v1325_v16 = vmul.f32 %v2819_v32, %v1197_v7  ;;  %v1193_v4 = vld [vmem:[#allocation5 + $0x740] sm:$0xff]  ;;  %v4311_v11 = vld [vmem:[#allocation2 + $0x538] sm:$0xff]  ;;  %v2821_v57 = vld [vmem:[#allocation2 + $0x368] sm:$0xff]  ;;  %v1594_v41 = vadd.f32 %v1593_v14, %v1315_v27 }
 0x13b   :  { %5871 = vst [vmem:[#allocation128_spill] sm:$0xff] %v4309_v30  ;;  %5872 = vst [vmem:[#allocation129_spill] sm:$0xff] %v4311_v11  ;;  %v4315_v33 = vmul.f32 %v4311_v11, %v3910_v1  ;;  %v1326_v18 = vmul.f32 %v2821_v57, %v1198_v48  ;;  %v2822_v20 = vld [vmem:[#allocation2 + $0x370] sm:$0xff]  ;;  %v1194_v40 = vld [vmem:[#allocation5 + $0x748] sm:$0xff]  ;;  %1601 = vadd.xlane.f32.xlu1 %v1600_v42 }
 0x13c   :  { %v1327_v44 = vmul.f32 %v2822_v20, %v1199_v15  ;;  %v1195_v17 = vld [vmem:[#allocation5 + $0x750] sm:$0xff]  ;;  %v4317_v30 = vld [vmem:[#allocation2 + $0x500] sm:$0xff]  ;;  %v4323_v32 = vld [vmem:[#allocation2 + $0x508] sm:$0xff]  ;;  %5877 = vst [vmem:[#allocation134_spill] sm:$0xff] %v4335_v58  ;;  %v1595_v27 = vadd.f32 %v1594_v41, %v1316_v52 }
 0x13d   :  { %5873 = vst [vmem:[#allocation130_spill] sm:$0xff] %v4315_v33  ;;  %5874 = vst [vmem:[#allocation131_spill] sm:$0xff] %v4317_v30  ;;  %v4321_v9 = vmul.f32 %v4317_v30, %v3899_v45  ;;  %v4327_v7 = vmul.f32 %v4323_v32, %v3906_v12  ;;  %v4329_v1 = vld [vmem:[#allocation2 + $0x510] sm:$0xff]  ;;  %v4337_v43 = vld [vmem:[#allocation2 + $0x518] sm:$0xff]  ;;  %v1608_v12 = vadd.f32 %v1326_v18, %v1325_v16  ;;  %v4367_v18 = vpop.xlane.xlu1 %832 }
 0x13e   :  { %5875 = vst [vmem:[#allocation132_spill] sm:$0xff] %v4323_v32  ;;  %5876 = vst [vmem:[#allocation133_spill] sm:$0xff] %v4329_v1  ;;  %v4333_v62 = vmul.f32 %v4329_v1, %v3908_v10  ;;  %v4341_v45 = vmul.f32 %v4337_v43, %v3918_v60  ;;  %v2827_v48 = vld [vmem:[#allocation2 + $0x378] sm:$0xff]  ;;  %v2828_v25 = vld [vmem:[#allocation2 + $0x340] sm:$0xff]  ;;  %1596 = vadd.xlane.f32.xlu0 %v1595_v27 }
 0x13f   :  { %5878 = vst [vmem:[#allocation135_spill] sm:$0xff] %v4337_v43  ;;  %v1328_v15 = vmul.f32 %v2827_v48, %v1200_v36  ;;  %v1196_v20 = vld [vmem:[#allocation5 + $0x758] sm:$0xff]  ;;  %v1321_v57 = vmul.f32 %v2828_v25, %v1193_v4  ;;  %v1205_v11 = vld [vmem:[#allocation5 + $0x7a0] sm:$0xff]  ;;  %v2830_v14 = vld [vmem:[#allocation2 + $0x348] sm:$0xff] }
 0x140   :  { %5879 = vst [vmem:[#allocation136_spill] sm:$0xff] %v4341_v45  ;;  %v4343_v32 = vld [vmem:[#allocation2 + $0x560] sm:$0xff]  ;;  %v1322_v58 = vmul.f32 %v2830_v14, %v1194_v40  ;;  %v2831_v1 = vld [vmem:[#allocation2 + $0x350] sm:$0xff]  ;;  %v1206_v43 = vld [vmem:[#allocation5 + $0x7a8] sm:$0xff]  ;;  %v1609_v40 = vadd.f32 %v1608_v12, %v1327_v44 }
 0x141   :  { %5880 = vst [vmem:[#allocation137_spill] sm:$0xff] %v4343_v32  ;;  %v4347_v10 = vmul.f32 %v4343_v32, %v3914_v34  ;;  %v1323_v60 = vmul.f32 %v2831_v1, %v1195_v17  ;;  %v1207_v42 = vld [vmem:[#allocation5 + $0x7b0] sm:$0xff]  ;;  %v4349_v30 = vld [vmem:[#allocation2 + $0x568] sm:$0xff]  ;;  %v4361_v34 = vld [vmem:[#allocation2 + $0x578] sm:$0xff] }
 0x142   :  { %5881 = vst [vmem:[#allocation138_spill] sm:$0xff] %v4349_v30  ;;  %v4353_v36 = vmul.f32 %v4349_v30, %v3922_v47  ;;  %v4355_v4 = vld [vmem:[#allocation2 + $0x570] sm:$0xff]  ;;  %5883 = vst [vmem:[#allocation140_spill] sm:$0xff] %v4361_v34  ;;  %v4365_v52 = vmul.f32 %v4361_v34, %v3929_v46  ;;  %v4369_v17 = vld [vmem:[#allocation2 + $0x540] sm:$0xff]  ;;  %v1610_v44 = vadd.f32 %v1609_v40, %v1328_v15 }
 0x143   :  { %5882 = vst [vmem:[#allocation139_spill] sm:$0xff] %v4355_v4  ;;  %v4359_v16 = vmul.f32 %v4355_v4, %v3924_v54  ;;  %5885 = vst [vmem:[#allocation142_spill] sm:$0xff] %v4367_v18  ;;  %v4373_v47 = vmul.f32 %v4369_v17, %v3932_v28  ;;  %v2836_v1 = vld [vmem:[#allocation2 + $0x358] sm:$0xff]  ;;  %v1603_v54 = vadd.f32 %v1322_v58, %v1321_v57  ;;  %v2837_v25 = vld [vmem:[#allocation2 + $0x3a0] sm:$0xff] }
 0x144   :  { %5884 = vst [vmem:[#allocation141_spill] sm:$0xff] %v4365_v52  ;;  %5886 = vst [vmem:[#allocation143_spill] sm:$0xff] %v4369_v17  ;;  %v1324_v41 = vmul.f32 %v2836_v1, %v1196_v20  ;;  %v1208_v48 = vld [vmem:[#allocation5 + $0x7b8] sm:$0xff]  ;;  %v1333_v14 = vmul.f32 %v2837_v25, %v1205_v11  ;;  %v1201_v4 = vld [vmem:[#allocation5 + $0x780] sm:$0xff]  ;;  %v4381_v17 = vpop.xlane.xlu0 %827  ;;  %1611 = vadd.xlane.f32.xlu1 %v1610_v44 }
 0x145   :  { %v4375_v30 = vld [vmem:[#allocation2 + $0x548] sm:$0xff]  ;;  %v2840_v34 = vld [vmem:[#allocation2 + $0x3b0] sm:$0xff]  ;;  %5888 = vst [vmem:[#allocation145_spill] sm:$0xff] %v4381_v17  ;;  %v5890_v20 = vld [vmem:[#allocation27_spill] sm:$0xff] }
 0x146   :  { %5887 = vst [vmem:[#allocation144_spill] sm:$0xff] %v4375_v30  ;;  %v4379_v46 = vmul.f32 %v4375_v30, %v3937_v13  ;;  %v2839_v12 = vld [vmem:[#allocation2 + $0x3a8] sm:$0xff]  ;;  %v1335_v28 = vmul.f32 %v2840_v34, %v1207_v42  ;;  %v1203_v27 = vld [vmem:[#allocation5 + $0x790] sm:$0xff]  ;;  %v4389_v57 = vld [vmem:[#allocation2 + $0x558] sm:$0xff]  ;;  %v1604_v42 = vadd.f32 %v1603_v54, %v1323_v60 }
 0x147   :  { %v1334_v18 = vmul.f32 %v2839_v12, %v1206_v43  ;;  %v1202_v32 = vld [vmem:[#allocation5 + $0x788] sm:$0xff]  ;;  %v4383_v58 = vld [vmem:[#allocation2 + $0x550] sm:$0xff]  ;;  %5892 = vst [vmem:[#allocation147_spill] sm:$0xff] %v4389_v57  ;;  %v4393_v13 = vmul.f32 %v4389_v57, %v3944_v63  ;;  %v2843_v15 = vld [vmem:[#allocation2 + $0x5a0] sm:$0xff] }
 0x148   :  { %5889 = vst [vmem:[#allocation146_spill] sm:$0xff] %v4383_v58  ;;  %v4387_v11 = vmul.f32 %v4383_v58, %v5890_v20  ;;  %v5894_v43 = vld [vmem:[#allocation29_spill] sm:$0xff]  ;;  %v5895_v1 = vld [vmem:[#allocation30_spill] sm:$0xff]  ;;  %v2846_v30 = vld [vmem:[#allocation2 + $0x380] sm:$0xff] }
 0x149   :  { %5893 = vst [vmem:[#allocation148_spill] sm:$0xff] %v4393_v13  ;;  %v4396_v40 = vmul.f32 %v2843_v15, %v5894_v43  ;;  %v2844_v34 = vld [vmem:[#allocation2 + $0x5a8] sm:$0xff]  ;;  %v2845_v12 = vld [vmem:[#allocation2 + $0x3b8] sm:$0xff]  ;;  %v1618_v20 = vadd.f32 %v1334_v18, %v1333_v14  ;;  %v1329_v52 = vmul.f32 %v2846_v30, %v1201_v4  ;;  %v1213_v45 = vld [vmem:[#allocation5 + $0x7e0] sm:$0xff]  ;;  %v1605_v13 = vadd.f32 %v1604_v42, %v1324_v41 }
 0x14a   :  { %5891 = vst [vmem:[#allocation27_spill] sm:$0xff] %v4387_v11  ;;  %v4399_v25 = vmul.f32 %v2844_v34, %v5895_v1  ;;  %v1336_v17 = vmul.f32 %v2845_v12, %v1208_v48  ;;  %v1204_v58 = vld [vmem:[#allocation5 + $0x798] sm:$0xff]  ;;  %v2847_v33 = vld [vmem:[#allocation2 + $0x5b0] sm:$0xff]  ;;  %v2848_v15 = vld [vmem:[#allocation2 + $0x388] sm:$0xff]  ;;  %v4404_v1 = vpop.xlane.xlu1 %842 }
 0x14b   :  { %v5896_v63 = vld [vmem:[#allocation31_spill] sm:$0xff]  ;;  %v1330_v43 = vmul.f32 %v2848_v15, %v1202_v32  ;;  %v2849_v60 = vld [vmem:[#allocation2 + $0x390] sm:$0xff]  ;;  %v1214_v11 = vld [vmem:[#allocation5 + $0x7e8] sm:$0xff]  ;;  %5897 = vst [vmem:[#allocation29_spill] sm:$0xff] %v4404_v1  ;;  %1606 = vadd.xlane.f32.xlu0 %v1605_v13 }
 0x14c   :  { %v4402_v57 = vmul.f32 %v2847_v33, %v5896_v63  ;;  %v1331_v54 = vmul.f32 %v2849_v60, %v1203_v27  ;;  %v1215_v34 = vld [vmem:[#allocation5 + $0x7f0] sm:$0xff]  ;;  %v2850_v44 = vld [vmem:[#allocation2 + $0x5b8] sm:$0xff]  ;;  %v4409_v14 = vld [vmem:[#allocation2 + $0x580] sm:$0xff]  ;;  %v1619_v27 = vadd.f32 %v1618_v20, %v1335_v28 }
 0x14d   :  { %v5898_v48 = vld [vmem:[#allocation33_spill] sm:$0xff]  ;;  %5900 = vst [vmem:[#allocation31_spill] sm:$0xff] %v4409_v14  ;;  %v5901_v30 = vld [vmem:[#allocation34_spill] sm:$0xff]  ;;  %v5904_v41 = vld [vmem:[#allocation35_spill] sm:$0xff] }
 0x14e   :  { %v4407_v18 = vmul.f32 %v2850_v44, %v5898_v48  ;;  %v4413_v4 = vmul.f32 %v4409_v14, %v5901_v30  ;;  %v4415_v33 = vld [vmem:[#allocation2 + $0x588] sm:$0xff]  ;;  %v4421_v42 = vld [vmem:[#allocation2 + $0x590] sm:$0xff]  ;;  %v2854_v15 = vld [vmem:[#allocation2 + $0x398] sm:$0xff]  ;;  %v1613_v44 = vadd.f32 %v1330_v43, %v1329_v52  ;;  %v1620_v28 = vadd.f32 %v1619_v27, %v1336_v17 }
 0x14f   :  { %5903 = vst [vmem:[#allocation34_spill] sm:$0xff] %v4415_v33  ;;  %v4419_v32 = vmul.f32 %v4415_v33, %v5904_v41  ;;  %5906 = vst [vmem:[#allocation149_spill] sm:$0xff] %v4421_v42  ;;  %v5907_v12 = vld [vmem:[#allocation36_spill] sm:$0xff]  ;;  %v1332_v60 = vmul.f32 %v2854_v15, %v1204_v58  ;;  %v1216_v48 = vld [vmem:[#allocation5 + $0x7f8] sm:$0xff] }
 0x150   :  { %5899 = vst [vmem:[#allocation30_spill] sm:$0xff] %v4407_v18  ;;  %5902 = vst [vmem:[#allocation33_spill] sm:$0xff] %v4413_v4  ;;  %v4425_v63 = vmul.f32 %v4421_v42, %v5907_v12  ;;  %v2855_v30 = vld [vmem:[#allocation2 + $0x3e0] sm:$0xff]  ;;  %v4427_v18 = vld [vmem:[#allocation2 + $0x598] sm:$0xff]  ;;  %v1614_v17 = vadd.f32 %v1613_v44, %v1331_v54  ;;  %1621 = vadd.xlane.f32.xlu1 %v1620_v28 }
 0x151   :  { %5905 = vst [vmem:[#allocation35_spill] sm:$0xff] %v4419_v32  ;;  %v1341_v1 = vmul.f32 %v2855_v30, %v1213_v45  ;;  %v1209_v14 = vld [vmem:[#allocation5 + $0x7c0] sm:$0xff]  ;;  %5909 = vst [vmem:[#allocation150_spill] sm:$0xff] %v4427_v18  ;;  %v4431_v41 = vmul.f32 %v4427_v18, %v3972_v53  ;;  %v2857_v20 = vld [vmem:[#allocation2 + $0x3e8] sm:$0xff] }
 0x152   :  { %5908 = vst [vmem:[#allocation36_spill] sm:$0xff] %v4425_v63  ;;  %v1342_v33 = vmul.f32 %v2857_v20, %v1214_v11  ;;  %v2858_v32 = vld [vmem:[#allocation2 + $0x3f0] sm:$0xff]  ;;  %v1210_v42 = vld [vmem:[#allocation5 + $0x7c8] sm:$0xff]  ;;  %v4433_v63 = vpop.xlane.xlu0 %837  ;;  %v2859_v52 = vld [vmem:[#allocation2 + $0x5e0] sm:$0xff]  ;;  %v1615_v54 = vadd.f32 %v1614_v17, %v1332_v60 }
 0x153   :  { %5910 = vst [vmem:[#allocation151_spill] sm:$0xff] %v4431_v41  ;;  %v1343_v12 = vmul.f32 %v2858_v32, %v1215_v34  ;;  %v1211_v13 = vld [vmem:[#allocation5 + $0x7d0] sm:$0xff]  ;;  %5911 = vst [vmem:[#allocation152_spill] sm:$0xff] %v4433_v63  ;;  %v2860_v45 = vld [vmem:[#allocation2 + $0x5e8] sm:$0xff] }
 0x154   :  { %v5912_v58 = vld [vmem:[#allocation38_spill] sm:$0xff]  ;;  %v5914_v15 = vld [vmem:[#allocation39_spill] sm:$0xff]  ;;  %v5915_v53 = vld [vmem:[#allocation40_spill] sm:$0xff]  ;;  %v1628_v63 = vadd.f32 %v1342_v33, %v1341_v1  ;;  %1616 = vadd.xlane.f32.xlu0 %v1615_v54 }
 0x155   :  { %v4436_v43 = vmul.f32 %v2859_v52, %v5912_v58  ;;  %v4439_v30 = vmul.f32 %v2860_v45, %v5914_v15  ;;  %v2861_v4 = vld [vmem:[#allocation2 + $0x5f0] sm:$0xff]  ;;  %v2862_v11 = vld [vmem:[#allocation2 + $0x5f8] sm:$0xff]  ;;  %v2864_v52 = vld [vmem:[#allocation2 + $0x3c0] sm:$0xff] }
 0x156   :  { %v4442_v18 = vmul.f32 %v2861_v4, %v5915_v53  ;;  %v5916_v27 = vld [vmem:[#allocation42_spill] sm:$0xff]  ;;  %v1337_v58 = vmul.f32 %v2864_v52, %v1209_v14  ;;  %v4449_v45 = vld [vmem:[#allocation2 + $0x5c0] sm:$0xff]  ;;  %v2866_v44 = vld [vmem:[#allocation2 + $0x3c8] sm:$0xff]  ;;  %v1629_v60 = vadd.f32 %v1628_v63, %v1343_v12 }
 0x157   :  { %5913 = vst [vmem:[#allocation38_spill] sm:$0xff] %v4436_v43  ;;  %v4445_v34 = vmul.f32 %v2862_v11, %v5916_v27  ;;  %v2863_v32 = vld [vmem:[#allocation2 + $0x3f8] sm:$0xff]  ;;  %v4447_v43 = vpop.xlane.xlu1 %852  ;;  %5919 = vst [vmem:[#allocation42_spill] sm:$0xff] %v4449_v45  ;;  %v1338_v53 = vmul.f32 %v2866_v44, %v1210_v42  ;;  %v2867_v11 = vld [vmem:[#allocation2 + $0x3d0] sm:$0xff] }
 0x158   :  { %v1344_v20 = vmul.f32 %v2863_v32, %v1216_v48  ;;  %v1212_v41 = vld [vmem:[#allocation5 + $0x7d8] sm:$0xff]  ;;  %5918 = vst [vmem:[#allocation40_spill] sm:$0xff] %v4447_v43  ;;  %v1339_v27 = vmul.f32 %v2867_v11, %v1211_v13  ;;  %v4455_v28 = vld [vmem:[#allocation2 + $0x5c8] sm:$0xff]  ;;  %v4461_v14 = vld [vmem:[#allocation2 + $0x5d0] sm:$0xff] }
 0x159   :  { %5917 = vst [vmem:[#allocation39_spill] sm:$0xff] %v4445_v34  ;;  %v5920_v15 = vld [vmem:[#allocation43_spill] sm:$0xff]  ;;  %v5922_v48 = vld [vmem:[#allocation44_spill] sm:$0xff]  ;;  %v5924_v33 = vld [vmem:[#allocation45_spill] sm:$0xff] }
 0x15a   :  { %v4453_v4 = vmul.f32 %v4449_v45, %v5920_v15  ;;  %5921 = vst [vmem:[#allocation43_spill] sm:$0xff] %v4455_v28  ;;  %v4459_v1 = vmul.f32 %v4455_v28, %v5922_v48  ;;  %5923 = vst [vmem:[#allocation44_spill] sm:$0xff] %v4461_v14  ;;  %v4465_v32 = vmul.f32 %v4461_v14, %v5924_v33  ;;  %v2870_v52 = vld [vmem:[#allocation2 + $0x5d8] sm:$0xff]  ;;  %v2871_v42 = vld [vmem:[#allocation2 + $0x620] sm:$0xff]  ;;  %v4477_v33 = vpop.xlane.xlu0 %847 }
 0x15b   :  { %v5926_v15 = vld [vmem:[#allocation47_spill] sm:$0xff]  ;;  %v5928_v17 = vld [vmem:[#allocation48_spill] sm:$0xff]  ;;  %v1623_v48 = vadd.f32 %v1338_v53, %v1337_v58  ;;  %v1630_v63 = vadd.f32 %v1629_v60, %v1344_v20  ;;  %v2877_v53 = vld [vmem:[#allocation2 + $0x630] sm:$0xff] }
 0x15c   :  { %5925 = vst [vmem:[#allocation45_spill] sm:$0xff] %v4465_v32  ;;  %v4468_v43 = vmul.f32 %v2870_v52, %v5926_v15  ;;  %v4471_v13 = vmul.f32 %v2871_v42, %v5928_v17  ;;  %v2872_v44 = vld [vmem:[#allocation2 + $0x3d8] sm:$0xff]  ;;  %v4473_v28 = vld [vmem:[#allocation2 + $0x420] sm:$0xff]  ;;  %v2874_v14 = vld [vmem:[#allocation2 + $0x628] sm:$0xff] }
 0x15d   :  { %v1340_v11 = vmul.f32 %v2872_v44, %v1212_v41  ;;  %5929 = vst [vmem:[#allocation48_spill] sm:$0xff] %v4473_v28  ;;  %v5930_v45 = vld [vmem:[#allocation12_spill] sm:$0xff]  ;;  %v5932_v32 = vld [vmem:[#allocation50_spill] sm:$0xff]  ;;  %v5934_v15 = vld [vmem:[#allocation13_spill] sm:$0xff]  ;;  %v1624_v44 = vadd.f32 %v1623_v48, %v1339_v27  ;;  %1631 = vadd.xlane.f32.xlu1 %v1630_v63 }
 0x15e   :  { %5927 = vst [vmem:[#allocation47_spill] sm:$0xff] %v4468_v43  ;;  %v1349_v34 = vmul.f32 %v4473_v28, %v5930_v45  ;;  %5931 = vst [vmem:[#allocation12_spill] sm:$0xff] %v4477_v33  ;;  %v4480_v52 = vmul.f32 %v2874_v14, %v5932_v32  ;;  %v4482_v12 = vld [vmem:[#allocation2 + $0x428] sm:$0xff]  ;;  %v4486_v42 = vld [vmem:[#allocation2 + $0x430] sm:$0xff] }
 0x15f   :  { %5933 = vst [vmem:[#allocation50_spill] sm:$0xff] %v4482_v12  ;;  %v1350_v54 = vmul.f32 %v4482_v12, %v5934_v15  ;;  %5935 = vst [vmem:[#allocation13_spill] sm:$0xff] %v4486_v42  ;;  %v5936_v41 = vld [vmem:[#allocation16_spill] sm:$0xff]  ;;  %v5937_v17 = vld [vmem:[#allocation51_spill] sm:$0xff]  ;;  %v4501_v12 = vpop.xlane.xlu1 %862 }
 0x160   :  { %v1351_v58 = vmul.f32 %v4486_v42, %v5936_v41  ;;  %v4491_v45 = vmul.f32 %v2877_v53, %v5937_v17  ;;  %v4493_v33 = vld [vmem:[#allocation2 + $0x400] sm:$0xff]  ;;  %v5939_v14 = vld [vmem:[#allocation14_spill] sm:$0xff]  ;;  %v4497_v32 = vld [vmem:[#allocation2 + $0x408] sm:$0xff] }
 0x161   :  { %5938 = vst [vmem:[#allocation16_spill] sm:$0xff] %v4493_v33  ;;  %v1345_v20 = vmul.f32 %v4493_v33, %v5939_v14  ;;  %5940 = vst [vmem:[#allocation51_spill] sm:$0xff] %v4497_v32  ;;  %v5941_v60 = vld [vmem:[#allocation15_spill] sm:$0xff]  ;;  %v5943_v41 = vld [vmem:[#allocation18_spill] sm:$0xff]  ;;  %v1638_v17 = vadd.f32 %v1350_v54, %v1349_v34  ;;  %v1648_v14 = vadd.f32 %v4095_v39, %v4089_v29 }
 0x162   :  { %v1346_v15 = vmul.f32 %v4497_v32, %v5941_v60  ;;  %5942 = vst [vmem:[#allocation14_spill] sm:$0xff] %v4501_v12  ;;  %v4503_v28 = vld [vmem:[#allocation2 + $0x438] sm:$0xff]  ;;  %v4507_v27 = vld [vmem:[#allocation2 + $0x410] sm:$0xff]  ;;  %v1625_v33 = vadd.f32 %v1624_v44, %v1340_v11  ;;  %v1643_v32 = vadd.f32 %v4133_v0, %v4127_v24  ;;  %v1653_v29 = vadd.f32 %v4209_v26, %v4197_v49  ;;  %v5947_v11 = vld [vmem:[#allocation52_spill] sm:$0xff] }
 0x163   :  { %v1352_v53 = vmul.f32 %v4503_v28, %v5943_v41  ;;  %v5944_v48 = vld [vmem:[#allocation17_spill] sm:$0xff]  ;;  %v4513_v43 = vld [vmem:[#allocation2 + $0x418] sm:$0xff]  ;;  %v4519_v41 = vpop.xlane.xlu0 %857  ;;  %v1639_v34 = vadd.f32 %v1638_v17, %v1351_v58  ;;  %v1649_v54 = vadd.f32 %v1648_v14, %v4107_v22  ;;  %v1668_v24 = vadd.f32 %v4241_v35, %v4227_v21  ;;  %v4532_v0 = vpop.xlane.xlu1 %872  ;;  %v4537_v26 = vld [vmem:[#allocation2 + $0x600] sm:$0xff] }
 0x164   :  { %v1347_v42 = vmul.f32 %v4507_v27, %v5944_v48  ;;  %v5945_v60 = vld [vmem:[#allocation19_spill] sm:$0xff]  ;;  %v1633_v12 = vadd.f32 %v1346_v15, %v1345_v20  ;;  %5946 = vst [vmem:[#allocation15_spill] sm:$0xff] %v4519_v41  ;;  %v1658_v48 = vadd.f32 %v4171_v38, %v4165_v61  ;;  %1626 = vadd.xlane.f32.xlu0 %v1625_v33  ;;  %5948 = vst [vmem:[#allocation18_spill] sm:$0xff] %v4532_v0  ;;  %v5949_v49 = vld [vmem:[#allocation53_spill] sm:$0xff] }
 0x165   :  { %v1348_v63 = vmul.f32 %v4513_v43, %v5945_v60  ;;  %v2883_v39 = vld [vmem:[#allocation2 + $0x638] sm:$0xff]  ;;  %v1644_v15 = vadd.f32 %v1643_v32, %v4139_v59  ;;  %v1640_v22 = vadd.f32 %v1639_v34, %v1352_v53  ;;  %v1650_v58 = vadd.f32 %v1649_v54, %v4121_v23  ;;  %v4545_v35 = vld [vmem:[#allocation2 + $0x608] sm:$0xff]  ;;  %v4553_v17 = vld [vmem:[#allocation2 + $0x610] sm:$0xff] }
 0x166   :  { %v4527_v44 = vmul.f32 %v2883_v39, %v5947_v11  ;;  %v1634_v20 = vadd.f32 %v1633_v12, %v1347_v42  ;;  %v1659_v61 = vadd.f32 %v1658_v48, %v4177_v3  ;;  %v1654_v38 = vadd.f32 %v1653_v29, %v4215_v5  ;;  %v5951_v32 = vld [vmem:[#allocation55_spill] sm:$0xff]  ;;  %v5956_v29 = vld [vmem:[#allocation128_spill] sm:$0xff] }
 0x167   :  { %v1409_v33 = vmul.f32 %v4537_v26, %v5949_v49  ;;  %v1645_v59 = vadd.f32 %v1644_v15, %v4151_v37  ;;  %v1669_v42 = vadd.f32 %v1668_v24, %v4253_v55  ;;  %v4543_v21 = vpop.xlane.xlu0 %867  ;;  %v1410_v23 = vmul.f32 %v4545_v35, %v5951_v32  ;;  %1641 = vadd.xlane.f32.xlu1 %v1640_v22  ;;  %v5952_v37 = vld [vmem:[#allocation56_spill] sm:$0xff]  ;;  %v2890_v22 = vld [vmem:[#allocation2 + $0x670] sm:$0xff]  ;;  %v2891_v32 = vld [vmem:[#allocation2 + $0x678] sm:$0xff] }
 0x168   :  { %v1635_v12 = vadd.f32 %v1634_v20, %v1348_v63  ;;  %5950 = vst [vmem:[#allocation17_spill] sm:$0xff] %v4543_v21  ;;  %v1660_v3 = vadd.f32 %v1659_v61, %v4183_v31  ;;  %v1655_v5 = vadd.f32 %v1654_v38, %v4221_v8  ;;  %v1663_v53 = vadd.f32 %v4271_v56, %v4265_v2  ;;  %v4564_v63 = vpop.xlane.xlu1 %882  ;;  %v4566_v8 = vld [vmem:[#allocation2 + $0x618] sm:$0xff]  ;;  %v5954_v56 = vld [vmem:[#allocation57_spill] sm:$0xff]  ;;  %v2888_v48 = vld [vmem:[#allocation2 + $0x660] sm:$0xff] }
 0x169   :  { %v1411_v55 = vmul.f32 %v4553_v17, %v5952_v37  ;;  %v4558_v14 = vadd.f32 %v1669_v42, %v4259_v19  ;;  %v1678_v60 = vadd.f32 %v4301_v6, %v4295_v51  ;;  %v1673_v31 = vadd.f32 %v4327_v7, %v4321_v9  ;;  %5953 = vst [vmem:[#allocation19_spill] sm:$0xff] %v4564_v63  ;;  %v5955_v51 = vld [vmem:[#allocation58_spill] sm:$0xff]  ;;  %v2889_v20 = vld [vmem:[#allocation2 + $0x668] sm:$0xff] }
 0x16a   :  { %1636 = vadd.xlane.f32.xlu0 %v1635_v12  ;;  %v1412_v2 = vmul.f32 %v4566_v8, %v5954_v56  ;;  %v1664_v34 = vadd.f32 %v1663_v53, %v4281_v50  ;;  %v1688_v54 = vadd.f32 %v4353_v36, %v4347_v10  ;;  %v1683_v19 = vadd.f32 %v4379_v46, %v4373_v47  ;;  %v5958_v50 = vld [vmem:[#allocation60_spill] sm:$0xff]  ;;  %v5959_v10 = vld [vmem:[#allocation123_spill] sm:$0xff]  ;;  %v5961_v61 = vld [vmem:[#allocation61_spill] sm:$0xff] }
 0x16b   :  { %v1421_v6 = vmul.f32 %v2888_v48, %v5955_v51  ;;  %v1679_v9 = vadd.f32 %v1678_v60, %v5956_v29  ;;  %v1674_v7 = vadd.f32 %v1673_v31, %v4333_v62  ;;  %v4578_v39 = vpop.xlane.xlu0 %877  ;;  %v1698_v11 = vadd.f32 %v4399_v25, %v4396_v40  ;;  %1651 = vadd.xlane.f32.xlu1 %v1650_v58  ;;  %v5960_v46 = vld [vmem:[#allocation27_spill] sm:$0xff]  ;;  %v5962_v62 = vld [vmem:[#allocation130_spill] sm:$0xff]  ;;  %v5963_v12 = vld [vmem:[#allocation136_spill] sm:$0xff] }
 0x16c   :  { %5957 = vst [vmem:[#allocation52_spill] sm:$0xff] %v4578_v39  ;;  %v1422_v15 = vmul.f32 %v2889_v20, %v5958_v50  ;;  %v1665_v36 = vadd.f32 %v1664_v34, %v5959_v10  ;;  %v1689_v47 = vadd.f32 %v1688_v54, %v4359_v16  ;;  %v1684_v24 = vadd.f32 %v1683_v19, %v5960_v46  ;;  %v4590_v25 = vpop.xlane.xlu1 %892  ;;  %v5965_v58 = vld [vmem:[#allocation63_spill] sm:$0xff]  ;;  %v5966_v37 = vld [vmem:[#allocation141_spill] sm:$0xff]  ;;  %v5967_v16 = vld [vmem:[#allocation148_spill] sm:$0xff] }
 0x16d   :  { %v1423_v38 = vmul.f32 %v2890_v22, %v5961_v61  ;;  %v1680_v49 = vadd.f32 %v1679_v9, %v5962_v62  ;;  %v1675_v42 = vadd.f32 %v1674_v7, %v5963_v12  ;;  %v1699_v40 = vadd.f32 %v1698_v11, %v4402_v57  ;;  %5964 = vst [vmem:[#allocation53_spill] sm:$0xff] %v4590_v25  ;;  %v5968_v56 = vld [vmem:[#allocation33_spill] sm:$0xff]  ;;  %v5969_v34 = vld [vmem:[#allocation35_spill] sm:$0xff]  ;;  %v5971_v51 = vld [vmem:[#allocation30_spill] sm:$0xff] }
 0x16e   :  { %1646 = vadd.xlane.f32.xlu0 %v1645_v59  ;;  %v1424_v53 = vmul.f32 %v2891_v32, %v5965_v58  ;;  %v1690_v60 = vadd.f32 %v1689_v47, %v5966_v37  ;;  %v1685_v31 = vadd.f32 %v1684_v24, %v5967_v16  ;;  %v1693_v54 = vadd.f32 %v5969_v34, %v5968_v56  ;;  %v4597_v19 = vld [vmem:[#allocation2 + $0x640] sm:$0xff]  ;;  %v5973_v9 = vld [vmem:[#allocation38_spill] sm:$0xff]  ;;  %v4608_v20 = vld [vmem:[#allocation2 + $0x648] sm:$0xff] }
 0x16f   :  { %v5970_v59 = vld [vmem:[#allocation64_spill] sm:$0xff]  ;;  %v1700_v29 = vadd.f32 %v1699_v40, %v5971_v51  ;;  %v4602_v57 = vpop.xlane.xlu0 %887  ;;  %v1708_v7 = vadd.f32 %v4439_v30, %v5973_v9  ;;  %v1703_v11 = vadd.f32 %v4459_v1, %v4453_v4  ;;  %v5974_v50 = vld [vmem:[#allocation65_spill] sm:$0xff]  ;;  %1661 = vadd.xlane.f32.xlu1 %v1660_v3  ;;  %v1718_v24 = vadd.f32 %v4480_v52, %v4471_v13  ;;  %v5976_v62 = vld [vmem:[#allocation66_spill] sm:$0xff] }
 0x170   :  { %v1417_v48 = vmul.f32 %v4597_v19, %v5970_v59  ;;  %5972 = vst [vmem:[#allocation55_spill] sm:$0xff] %v4602_v57  ;;  %v1418_v10 = vmul.f32 %v4608_v20, %v5974_v50  ;;  %v5975_v47 = vld [vmem:[#allocation36_spill] sm:$0xff]  ;;  %v1713_v22 = vadd.f32 %v1410_v23, %v1409_v33  ;;  %v4615_v61 = vld [vmem:[#allocation2 + $0x650] sm:$0xff]  ;;  %v4621_v40 = vpop.xlane.xlu1 %902  ;;  %v1728_v32 = vadd.f32 %v1422_v15, %v1421_v6  ;;  %v5980_v16 = vld [vmem:[#allocation151_spill] sm:$0xff] }
 0x171   :  { %v1694_v46 = vadd.f32 %v1693_v54, %v5975_v47  ;;  %v1419_v30 = vmul.f32 %v4615_v61, %v5976_v62  ;;  %v1709_v4 = vadd.f32 %v1708_v7, %v4442_v18  ;;  %v5977_v1 = vld [vmem:[#allocation45_spill] sm:$0xff]  ;;  %5978 = vst [vmem:[#allocation56_spill] sm:$0xff] %v4621_v40  ;;  %v2895_v3 = vld [vmem:[#allocation2 + $0x680] sm:$0xff]  ;;  %v5979_v58 = vld [vmem:[#allocation74_spill] sm:$0xff]  ;;  %v1719_v13 = vadd.f32 %v1718_v24, %v4491_v45 }
 0x172   :  { %1656 = vadd.xlane.f32.xlu0 %v1655_v5  ;;  %v1704_v12 = vadd.f32 %v1703_v11, %v5977_v1  ;;  %v1425_v37 = vmul.f32 %v2895_v3, %v5979_v58  ;;  %v1714_v52 = vadd.f32 %v1713_v22, %v1411_v55  ;;  %v2896_v33 = vld [vmem:[#allocation2 + $0x688] sm:$0xff]  ;;  %v5981_v23 = vld [vmem:[#allocation75_spill] sm:$0xff]  ;;  %v1729_v9 = vadd.f32 %v1728_v32, %v1423_v38  ;;  %v2898_v50 = vld [vmem:[#allocation2 + $0x690] sm:$0xff] }
 0x173   :  { %v1695_v56 = vadd.f32 %v1694_v46, %v5980_v16  ;;  %v1426_v34 = vmul.f32 %v2896_v33, %v5981_v23  ;;  %v5982_v54 = vld [vmem:[#allocation39_spill] sm:$0xff]  ;;  %v4629_v51 = vpop.xlane.xlu0 %897  ;;  %v5985_v6 = vld [vmem:[#allocation68_spill] sm:$0xff]  ;;  %1671 = vadd.xlane.f32.xlu1 %v4558_v14  ;;  %v4637_v45 = vadd.f32 %v1719_v13, %v4527_v44  ;;  %v1723_v11 = vadd.f32 %v1418_v10, %v1417_v48 }
 0x174   :  { %v1710_v5 = vadd.f32 %v1709_v4, %v5982_v54  ;;  %v5983_v59 = vld [vmem:[#allocation47_spill] sm:$0xff]  ;;  %5984 = vst [vmem:[#allocation57_spill] sm:$0xff] %v4629_v51  ;;  %v4639_v55 = vadd.f32 %v1714_v52, %v1412_v2  ;;  %v5986_v47 = vld [vmem:[#allocation76_spill] sm:$0xff]  ;;  %v4642_v24 = vpop.xlane.xlu1 %912  ;;  %v4644_v38 = vadd.f32 %v1729_v9, %v1424_v53  ;;  %v1870_v52 = vld [vmem:[#allocation5 + $0x810] sm:$0xff] }
 0x175   :  { %v1705_v18 = vadd.f32 %v1704_v12, %v5983_v59  ;;  %v4631_v7 = vld [vmem:[#allocation2 + $0x658] sm:$0xff]  ;;  %v1427_v46 = vmul.f32 %v2898_v50, %v5986_v47  ;;  %5987 = vst [vmem:[#allocation58_spill] sm:$0xff] %v4642_v24  ;;  %v1724_v22 = vadd.f32 %v1723_v11, %v1419_v30  ;;  %v5988_v4 = vld [vmem:[#allocation80_spill] sm:$0xff]  ;;  %v1733_v14 = vadd.f32 %v1426_v34, %v1425_v37  ;;  %v2917_v24 = vld [vmem:[#allocation2 + $0x50] sm:$0xff] }
 0x176   :  { %v1420_v15 = vmul.f32 %v4631_v7, %v5985_v6  ;;  %1666 = vadd.xlane.f32.xlu0 %v1665_v36  ;;  %v2899_v62 = vld [vmem:[#allocation2 + $0x698] sm:$0xff]  ;;  %v1868_v53 = vld [vmem:[#allocation5 + $0x800] sm:$0xff]  ;;  %v1869_v30 = vld [vmem:[#allocation5 + $0x808] sm:$0xff] }
 0x177   :  { %v1428_v1 = vmul.f32 %v2899_v62, %v5988_v4  ;;  %v4647_v12 = vpop.xlane.xlu0 %907  ;;  %1681 = vadd.xlane.f32.xlu1 %v1680_v49  ;;  %v1734_v48 = vadd.f32 %v1733_v14, %v1427_v46  ;;  %v1872_v58 = vld [vmem:[#allocation5 + $0x820] sm:$0xff]  ;;  %v1873_v49 = vld [vmem:[#allocation5 + $0x828] sm:$0xff]  ;;  %v2126_v14 = vmul.f32 %v4507_v27, %v1870_v52 }
 0x178   :  { %5989 = vst [vmem:[#allocation128_spill] sm:$0xff] %v4647_v12  ;;  %v4649_v44 = vadd.f32 %v1724_v22, %v1420_v15  ;;  %v4651_v2 = vpop.xlane.xlu1 %922  ;;  %v2900_v37 = vld [vmem:[#allocation2] sm:$0xff]  ;;  %v2901_v16 = vld [vmem:[#allocation2 + $0x8] sm:$0xff]  ;;  %v1874_v15 = vld [vmem:[#allocation5 + $0x830] sm:$0xff] }
 0x179   :  { %5990 = vst [vmem:[#allocation60_spill] sm:$0xff] %v4651_v2  ;;  %v4655_v36 = vadd.f32 %v1734_v48, %v1428_v1  ;;  %v1997_v13 = vmul.f32 %v2901_v16, %v1869_v30  ;;  %v5994_v33 = vld [vmem:[#allocation16_spill] sm:$0xff]  ;;  %v5995_v34 = vld [vmem:[#allocation51_spill] sm:$0xff]  ;;  %v5999_v62 = vld [vmem:[#allocation69_spill] sm:$0xff] }
 0x17a   :  { %1676 = vadd.xlane.f32.xlu0 %v1675_v42  ;;  %v1996_v42 = vmul.f32 %v2900_v37, %v1868_v53  ;;  %v2124_v23 = vmul.f32 %v5994_v33, %v1868_v53  ;;  %v2902_v54 = vld [vmem:[#allocation2 + $0x20] sm:$0xff]  ;;  %v2903_v9 = vld [vmem:[#allocation2 + $0x28] sm:$0xff]  ;;  %v1871_v1 = vld [vmem:[#allocation5 + $0x818] sm:$0xff] }
 0x17b   :  { %v4653_v10 = vpop.xlane.xlu0 %917  ;;  %1691 = vadd.xlane.f32.xlu1 %v1690_v60  ;;  %v2125_v60 = vmul.f32 %v5995_v34, %v1869_v30  ;;  %v2000_v59 = vmul.f32 %v2902_v54, %v1872_v58  ;;  %v2001_v6 = vmul.f32 %v2903_v9, %v1873_v49  ;;  %v4669_v50 = vld [vmem:[#allocation5 + $0x848] sm:$0xff]  ;;  %v4671_v22 = vld [vmem:[#allocation2 + $0x6a0] sm:$0xff]  ;;  %v2906_v30 = vld [vmem:[#allocation2 + $0x30] sm:$0xff] }
 0x17c   :  { %5991 = vst [vmem:[#allocation123_spill] sm:$0xff] %v4653_v10  ;;  %v4657_v32 = vpop.xlane.xlu1 %932  ;;  %v2252_v46 = vadd.f32 %v1997_v13, %v1996_v42  ;;  %5998 = vst [vmem:[#allocation63_spill] sm:$0xff] %v4671_v22  ;;  %v4675_v4 = vmul.f32 %v4671_v22, %v5999_v62  ;;  %v2002_v37 = vmul.f32 %v2906_v30, %v1874_v15  ;;  %v2908_v42 = vld [vmem:[#allocation2 + $0x48] sm:$0xff]  ;;  %v6002_v54 = vld [vmem:[#allocation70_spill] sm:$0xff] }
 0x17d   :  { %5992 = vst [vmem:[#allocation27_spill] sm:$0xff] %v4657_v32  ;;  %v2412_v48 = vadd.f32 %v2125_v60, %v2124_v23  ;;  %v2257_v16 = vadd.f32 %v2001_v6, %v2000_v59  ;;  %v2005_v13 = vmul.f32 %v2908_v42, %v4669_v50  ;;  %v4682_v34 = vld [vmem:[#allocation2 + $0x6a8] sm:$0xff]  ;;  %v4688_v9 = vld [vmem:[#allocation2 + $0x6b0] sm:$0xff]  ;;  %v6004_v27 = vld [vmem:[#allocation71_spill] sm:$0xff] }
 0x17e   :  { %1686 = vadd.xlane.f32.xlu0 %v1685_v31  ;;  %6001 = vst [vmem:[#allocation148_spill] sm:$0xff] %v4682_v34  ;;  %6003 = vst [vmem:[#allocation33_spill] sm:$0xff] %v4688_v9  ;;  %v1875_v23 = vld [vmem:[#allocation5 + $0x838] sm:$0xff]  ;;  %v4694_v60 = vld [vmem:[#allocation5 + $0x850] sm:$0xff] }
 0x17f   :  { %v4659_v3 = vpop.xlane.xlu0 %927  ;;  %1701 = vadd.xlane.f32.xlu1 %v1700_v29  ;;  %v4667_v29 = vld [vmem:[#allocation5 + $0x840] sm:$0xff]  ;;  %v6009_v42 = vld [vmem:[#allocation73_spill] sm:$0xff]  ;;  %v2006_v12 = vmul.f32 %v2917_v24, %v4694_v60  ;;  %v2131_v63 = vmul.f32 %v4503_v28, %v1875_v23  ;;  %v4894_v22 = vld [vmem:[#allocation5 + $0x938] sm:$0xff] }
 0x180   :  { %5993 = vst [vmem:[#allocation61_spill] sm:$0xff] %v4659_v3  ;;  %v4663_v31 = vpop.xlane.xlu1 %942  ;;  %v6005_v59 = vld [vmem:[#allocation48_spill] sm:$0xff]  ;;  %v2915_v2 = vld [vmem:[#allocation2 + $0x6f0] sm:$0xff] }
 0x181   :  { %5996 = vst [vmem:[#allocation130_spill] sm:$0xff] %v4663_v31  ;;  %v2128_v6 = vmul.f32 %v6005_v59, %v1872_v58  ;;  %v6010_v31 = vld [vmem:[#allocation81_spill] sm:$0xff]  ;;  %v4710_v58 = vld [vmem:[#allocation5 + $0x860] sm:$0xff] }
 0x182   :  { %1696 = vadd.xlane.f32.xlu0 %v1695_v56  ;;  %v2904_v56 = vld [vmem:[#allocation2 + $0x10] sm:$0xff]  ;;  %v2914_v59 = vld [vmem:[#allocation2 + $0x6e8] sm:$0xff]  ;;  %v4768_v39 = vld [vmem:[#allocation5 + $0x8a0] sm:$0xff] }
 0x183   :  { %v4665_v11 = vpop.xlane.xlu0 %937  ;;  %1711 = vadd.xlane.f32.xlu1 %v1710_v5  ;;  %v1998_v47 = vmul.f32 %v2904_v56, %v1870_v52  ;;  %v2907_v5 = vld [vmem:[#allocation2 + $0x40] sm:$0xff]  ;;  %v4692_v52 = vmul.f32 %v4688_v9, %v6004_v27  ;;  %v6006_v56 = vld [vmem:[#allocation50_spill] sm:$0xff]  ;;  %v2919_v25 = vld [vmem:[#allocation2 + $0x68] sm:$0xff] }
 0x184   :  { %5997 = vst [vmem:[#allocation136_spill] sm:$0xff] %v4665_v11  ;;  %v4678_v53 = vpop.xlane.xlu1 %952  ;;  %v2004_v33 = vmul.f32 %v2907_v5, %v4667_v29  ;;  %v2129_v62 = vmul.f32 %v6006_v56, %v1873_v49  ;;  %v4700_v5 = vld [vmem:[#allocation2 + $0x6b8] sm:$0xff]  ;;  %v4712_v49 = vld [vmem:[#allocation5 + $0x868] sm:$0xff]  ;;  %v2927_v28 = vld [vmem:[#allocation2 + $0x80] sm:$0xff] }
 0x185   :  { %6000 = vst [vmem:[#allocation141_spill] sm:$0xff] %v4678_v53  ;;  %6008 = vst [vmem:[#allocation64_spill] sm:$0xff] %v4700_v5  ;;  %v2912_v53 = vld [vmem:[#allocation2 + $0x6e0] sm:$0xff]  ;;  %v2913_v27 = vld [vmem:[#allocation2 + $0x18] sm:$0xff]  ;;  %v2253_v3 = vadd.f32 %v2252_v46, %v1998_v47 }
 0x186   :  { %1706 = vadd.xlane.f32.xlu0 %v1705_v18  ;;  %v4686_v18 = vmul.f32 %v4682_v34, %v6002_v54  ;;  %v4704_v54 = vmul.f32 %v4700_v5, %v6009_v42  ;;  %v4707_v11 = vmul.f32 %v2912_v53, %v6010_v31  ;;  %v1999_v32 = vmul.f32 %v2913_v27, %v1871_v1  ;;  %v6011_v56 = vld [vmem:[#allocation83_spill] sm:$0xff]  ;;  %v6012_v42 = vld [vmem:[#allocation84_spill] sm:$0xff]  ;;  %v2934_v9 = vld [vmem:[#allocation2 + $0x90] sm:$0xff] }
 0x187   :  { %v4698_v30 = vpop.xlane.xlu0 %947  ;;  %1721 = vadd.xlane.f32.xlu1 %v4637_v45  ;;  %v4718_v10 = vmul.f32 %v2915_v2, %v6012_v42  ;;  %v2127_v31 = vmul.f32 %v4513_v43, %v1871_v1  ;;  %v2413_v45 = vadd.f32 %v2412_v48, %v2126_v14  ;;  %v2916_v47 = vld [vmem:[#allocation2 + $0x38] sm:$0xff]  ;;  %v2258_v27 = vadd.f32 %v2257_v16, %v2002_v37  ;;  %v2918_v42 = vld [vmem:[#allocation2 + $0x60] sm:$0xff]  ;;  %v4736_v16 = vld [vmem:[#allocation5 + $0x870] sm:$0xff] }
 0x188   :  { %6007 = vst [vmem:[#allocation35_spill] sm:$0xff] %v4698_v30  ;;  %v4715_v30 = vmul.f32 %v2914_v59, %v6011_v56  ;;  %v4722_v53 = vpop.xlane.xlu1 %962  ;;  %v2003_v46 = vmul.f32 %v2916_v47, %v1875_v23  ;;  %v2262_v40 = vadd.f32 %v2005_v13, %v2004_v33  ;;  %v4725_v59 = vld [vmem:[#allocation5 + $0x858] sm:$0xff]  ;;  %v6015_v56 = vld [vmem:[#allocation13_spill] sm:$0xff]  ;;  %v2417_v2 = vadd.f32 %v2129_v62, %v2128_v6  ;;  %v6020_v13 = vld [vmem:[#allocation88_spill] sm:$0xff] }
 0x189   :  { %6013 = vst [vmem:[#allocation30_spill] sm:$0xff] %v4718_v10  ;;  %6014 = vst [vmem:[#allocation38_spill] sm:$0xff] %v4722_v53  ;;  %v2130_v51 = vmul.f32 %v6015_v56, %v1874_v15  ;;  %v2009_v43 = vmul.f32 %v2919_v25, %v4712_v49  ;;  %v2920_v14 = vld [vmem:[#allocation2 + $0x6f8] sm:$0xff]  ;;  %v2254_v24 = vadd.f32 %v2253_v3, %v1999_v32  ;;  %v4742_v62 = vld [vmem:[#allocation2 + $0x6c0] sm:$0xff] }
 0x18a   :  { %1716 = vadd.xlane.f32.xlu0 %v4639_v55  ;;  %v2008_v55 = vmul.f32 %v2918_v42, %v4710_v58  ;;  %v6017_v48 = vld [vmem:[#allocation90_spill] sm:$0xff]  ;;  %v6019_v15 = vld [vmem:[#allocation87_spill] sm:$0xff]  ;;  %v2133_v6 = vmul.f32 %v6020_v13, %v4669_v50  ;;  %6021 = vst [vmem:[#allocation66_spill] sm:$0xff] %v4742_v62  ;;  %v4748_v56 = vld [vmem:[#allocation2 + $0x6c8] sm:$0xff]  ;;  %v2414_v53 = vadd.f32 %v2413_v45, %v2127_v31 }
 0x18b   :  { %v4730_v1 = vpop.xlane.xlu0 %957  ;;  %v4733_v37 = vmul.f32 %v2920_v14, %v6017_v48  ;;  %1731 = vadd.xlane.f32.xlu1 %v4644_v38  ;;  %v2132_v33 = vmul.f32 %v6019_v15, %v4667_v29  ;;  %v6022_v25 = vld [vmem:[#allocation91_spill] sm:$0xff]  ;;  %6023 = vst [vmem:[#allocation45_spill] sm:$0xff] %v4748_v56  ;;  %v6024_v42 = vld [vmem:[#allocation93_spill] sm:$0xff]  ;;  %v6026_v3 = vld [vmem:[#allocation94_spill] sm:$0xff]  ;;  %v2263_v0 = vadd.f32 %v2262_v40, %v2006_v12 }
 0x18c   :  { %6016 = vst [vmem:[#allocation65_spill] sm:$0xff] %v4730_v1  ;;  %v4746_v47 = vmul.f32 %v4742_v62, %v6022_v25  ;;  %v4752_v38 = vmul.f32 %v4748_v56, %v6024_v42  ;;  %v4754_v32 = vld [vmem:[#allocation2 + $0x6d0] sm:$0xff]  ;;  %v2924_v14 = vld [vmem:[#allocation2 + $0x6d8] sm:$0xff]  ;;  %v6027_v50 = vld [vmem:[#allocation100_spill] sm:$0xff]  ;;  %v4764_v25 = vpop.xlane.xlu1 %972  ;;  %v2259_v1 = vadd.f32 %v2258_v27, %v2003_v46  ;;  %v2267_v21 = vadd.f32 %v2009_v43, %v2008_v55 }
 0x18d   :  { %6018 = vst [vmem:[#allocation36_spill] sm:$0xff] %v4733_v37  ;;  %6025 = vst [vmem:[#allocation74_spill] sm:$0xff] %v4754_v32  ;;  %v4758_v29 = vmul.f32 %v4754_v32, %v6026_v3  ;;  %v4761_v48 = vmul.f32 %v2924_v14, %v6027_v50  ;;  %v1884_v15 = vld [vmem:[#allocation5 + $0x880] sm:$0xff]  ;;  %v1885_v13 = vld [vmem:[#allocation5 + $0x888] sm:$0xff]  ;;  %v2418_v14 = vadd.f32 %v2417_v2, %v2130_v51 }
 0x18e   :  { %1726 = vadd.xlane.f32.xlu0 %v4649_v44  ;;  %6029 = vst [vmem:[#allocation75_spill] sm:$0xff] %v4764_v25  ;;  %v2925_v42 = vld [vmem:[#allocation2 + $0x58] sm:$0xff]  ;;  %v4770_v3 = vld [vmem:[#allocation5 + $0x8a8] sm:$0xff]  ;;  %v2926_v50 = vld [vmem:[#allocation2 + $0x70] sm:$0xff]  ;;  %v2422_v27 = vadd.f32 %v2133_v6, %v2132_v33  ;;  %v2012_v23 = vmul.f32 %v2927_v28, %v1884_v15 }
 0x18f   :  { %6028 = vst [vmem:[#allocation151_spill] sm:$0xff] %v4761_v48  ;;  %v2007_v57 = vmul.f32 %v2925_v42, %v4725_v59  ;;  %v2010_v44 = vmul.f32 %v2926_v50, %v4736_v16  ;;  %v4773_v41 = vpop.xlane.xlu0 %967  ;;  %2255 = vadd.xlane.f32.xlu1 %v2254_v24  ;;  %v4775_v31 = vld [vmem:[#allocation5 + $0x878] sm:$0xff]  ;;  %v6031_v45 = vld [vmem:[#allocation89_spill] sm:$0xff]  ;;  %v2929_v43 = vld [vmem:[#allocation2 + $0xa0] sm:$0xff] }
 0x190   :  { %6030 = vst [vmem:[#allocation39_spill] sm:$0xff] %v4773_v41  ;;  %v2134_v46 = vmul.f32 %v6031_v45, %v4694_v60  ;;  %v2928_v42 = vld [vmem:[#allocation2 + $0x88] sm:$0xff]  ;;  %v1886_v40 = vld [vmem:[#allocation5 + $0x890] sm:$0xff]  ;;  %v6033_v2 = vld [vmem:[#allocation79_spill] sm:$0xff]  ;;  %v2016_v24 = vmul.f32 %v2929_v43, %v4768_v39  ;;  %v4786_v33 = vpop.xlane.xlu1 %982 }
 0x191   :  { %v2013_v25 = vmul.f32 %v2928_v42, %v1885_v13  ;;  %v6032_v51 = vld [vmem:[#allocation78_spill] sm:$0xff]  ;;  %v2137_v55 = vmul.f32 %v6033_v2, %v4712_v49  ;;  %v2930_v50 = vld [vmem:[#allocation2 + $0xa8] sm:$0xff]  ;;  %6034 = vst [vmem:[#allocation47_spill] sm:$0xff] %v4786_v33  ;;  %v2931_v6 = vld [vmem:[#allocation2 + $0x720] sm:$0xff]  ;;  %v2264_v43 = vadd.f32 %v2263_v0, %v2007_v57  ;;  %v2268_v56 = vadd.f32 %v2267_v21, %v2010_v44 }
 0x192   :  { %1736 = vadd.xlane.f32.xlu0 %v4655_v36  ;;  %v2136_v12 = vmul.f32 %v6032_v51, %v4710_v58  ;;  %v2017_v60 = vmul.f32 %v2930_v50, %v4770_v3  ;;  %v6035_v45 = vld [vmem:[#allocation101_spill] sm:$0xff]  ;;  %v6037_v42 = vld [vmem:[#allocation104_spill] sm:$0xff]  ;;  %v6039_v51 = vld [vmem:[#allocation103_spill] sm:$0xff] }
 0x193   :  { %v4789_v28 = vmul.f32 %v2931_v6, %v6035_v45  ;;  %v2932_v36 = vld [vmem:[#allocation2 + $0x728] sm:$0xff]  ;;  %v4794_v58 = vld [vmem:[#allocation5 + $0x8b0] sm:$0xff]  ;;  %v2140_v49 = vmul.f32 %v6039_v51, %v1884_v15  ;;  %v2933_v5 = vld [vmem:[#allocation2 + $0x78] sm:$0xff]  ;;  %v4801_v6 = vpop.xlane.xlu0 %977  ;;  %2415 = vadd.xlane.f32.xlu1 %v2414_v53  ;;  %v2014_v15 = vmul.f32 %v2934_v9, %v1886_v40  ;;  %v2272_v51 = vadd.f32 %v2013_v25, %v2012_v23 }
 0x194   :  { %v4792_v41 = vmul.f32 %v2932_v36, %v6037_v42  ;;  %v6040_v2 = vld [vmem:[#allocation106_spill] sm:$0xff]  ;;  %v2011_v50 = vmul.f32 %v2933_v5, %v4775_v31  ;;  %v6041_v33 = vld [vmem:[#allocation92_spill] sm:$0xff]  ;;  %6042 = vst [vmem:[#allocation80_spill] sm:$0xff] %v4801_v6  ;;  %v2419_v36 = vadd.f32 %v2418_v14, %v2131_v63  ;;  %v2423_v42 = vadd.f32 %v2422_v27, %v2134_v46  ;;  %v4806_v44 = vpop.xlane.xlu1 %992  ;;  %v6045_v14 = vld [vmem:[#allocation107_spill] sm:$0xff] }
 0x195   :  { %6036 = vst [vmem:[#allocation68_spill] sm:$0xff] %v4789_v28  ;;  %v2141_v32 = vmul.f32 %v6040_v2, %v1885_v13  ;;  %v2135_v62 = vmul.f32 %v6041_v33, %v4725_v59  ;;  %v1892_v45 = vld [vmem:[#allocation5 + $0x8c0] sm:$0xff]  ;;  %v1893_v28 = vld [vmem:[#allocation5 + $0x8c8] sm:$0xff]  ;;  %v6043_v0 = vld [vmem:[#allocation82_spill] sm:$0xff]  ;;  %v2427_v5 = vadd.f32 %v2137_v55, %v2136_v12  ;;  %v2277_v59 = vadd.f32 %v2017_v60, %v2016_v24 }
 0x196   :  { %6038 = vst [vmem:[#allocation76_spill] sm:$0xff] %v4792_v41  ;;  %v1887_v41 = vld [vmem:[#allocation5 + $0x898] sm:$0xff]  ;;  %2260 = vadd.xlane.f32.xlu0 %v2259_v1  ;;  %v2138_v57 = vmul.f32 %v6043_v0, %v4736_v16  ;;  %v2935_v21 = vld [vmem:[#allocation2 + $0xb0] sm:$0xff]  ;;  %6044 = vst [vmem:[#allocation16_spill] sm:$0xff] %v4806_v44  ;;  %v2142_v9 = vmul.f32 %v6045_v14, %v1886_v40  ;;  %v2269_v23 = vadd.f32 %v2268_v56, %v2011_v50 }
 0x197   :  { %v2018_v13 = vmul.f32 %v2935_v21, %v4794_v58  ;;  %v4808_v33 = vld [vmem:[#allocation5 + $0x8e0] sm:$0xff]  ;;  %v4810_v53 = vld [vmem:[#allocation5 + $0x8e8] sm:$0xff]  ;;  %v4812_v63 = vld [vmem:[#allocation5 + $0x8b8] sm:$0xff]  ;;  %v2432_v25 = vadd.f32 %v2141_v32, %v2140_v49  ;;  %v4819_v44 = vpop.xlane.xlu0 %987  ;;  %2265 = vadd.xlane.f32.xlu1 %v2264_v43  ;;  %v2273_v6 = vadd.f32 %v2272_v51, %v2014_v15 }
 0x198   :  { %v2936_v1 = vld [vmem:[#allocation2 + $0xc0] sm:$0xff]  ;;  %v2937_v27 = vld [vmem:[#allocation2 + $0xc8] sm:$0xff]  ;;  %v2938_v12 = vld [vmem:[#allocation2 + $0x98] sm:$0xff]  ;;  %6048 = vst [vmem:[#allocation51_spill] sm:$0xff] %v4819_v44  ;;  %v4829_v43 = vpop.xlane.xlu1 %1002 }
 0x199   :  { %v2020_v46 = vmul.f32 %v2936_v1, %v1892_v45  ;;  %v2021_v16 = vmul.f32 %v2937_v27, %v1893_v28  ;;  %v2015_v55 = vmul.f32 %v2938_v12, %v1887_v41  ;;  %v1894_v2 = vld [vmem:[#allocation5 + $0x8d0] sm:$0xff]  ;;  %v6046_v24 = vld [vmem:[#allocation96_spill] sm:$0xff]  ;;  %v2424_v1 = vadd.f32 %v2423_v42, %v2135_v62  ;;  %6051 = vst [vmem:[#allocation69_spill] sm:$0xff] %v4829_v43  ;;  %v1895_v62 = vld [vmem:[#allocation5 + $0x8d8] sm:$0xff] }
 0x19a   :  { %v2144_v60 = vmul.f32 %v6046_v24, %v4768_v39  ;;  %v6047_v0 = vld [vmem:[#allocation97_spill] sm:$0xff]  ;;  %v6049_v32 = vld [vmem:[#allocation86_spill] sm:$0xff]  ;;  %v2939_v49 = vld [vmem:[#allocation2 + $0xe0] sm:$0xff]  ;;  %2420 = vadd.xlane.f32.xlu0 %v2419_v36  ;;  %v2428_v27 = vadd.f32 %v2427_v5, %v2138_v57  ;;  %v2278_v15 = vadd.f32 %v2277_v59, %v2018_v13 }
 0x19b   :  { %v2145_v21 = vmul.f32 %v6047_v0, %v4770_v3  ;;  %v2139_v40 = vmul.f32 %v6049_v32, %v4775_v31  ;;  %v2024_v14 = vmul.f32 %v2939_v49, %v4808_v33  ;;  %v2940_v56 = vld [vmem:[#allocation2 + $0xe8] sm:$0xff]  ;;  %v2941_v39 = vld [vmem:[#allocation2 + $0xb8] sm:$0xff]  ;;  %v4827_v0 = vld [vmem:[#allocation5 + $0x8f0] sm:$0xff]  ;;  %v2433_v31 = vadd.f32 %v2432_v25, %v2142_v9  ;;  %v4839_v34 = vpop.xlane.xlu0 %997  ;;  %2270 = vadd.xlane.f32.xlu1 %v2269_v23 }
 0x19c   :  { %v2025_v50 = vmul.f32 %v2940_v56, %v4810_v53  ;;  %v2019_v12 = vmul.f32 %v2941_v39, %v4812_v63  ;;  %v6050_v3 = vld [vmem:[#allocation108_spill] sm:$0xff]  ;;  %v2942_v51 = vld [vmem:[#allocation2 + $0xd0] sm:$0xff]  ;;  %v2282_v49 = vadd.f32 %v2021_v16, %v2020_v46  ;;  %v6054_v39 = vld [vmem:[#allocation119_spill] sm:$0xff]  ;;  %6055 = vst [vmem:[#allocation70_spill] sm:$0xff] %v4839_v34  ;;  %v2274_v25 = vadd.f32 %v2273_v6, %v2015_v55  ;;  %v4855_v23 = vpop.xlane.xlu1 %1012 }
 0x19d   :  { %v2143_v24 = vmul.f32 %v6050_v3, %v1887_v41  ;;  %v2022_v32 = vmul.f32 %v2942_v51, %v1894_v2  ;;  %v4831_v44 = vld [vmem:[#allocation5 + $0x900] sm:$0xff]  ;;  %v4833_v56 = vld [vmem:[#allocation5 + $0x908] sm:$0xff]  ;;  %v6052_v36 = vld [vmem:[#allocation98_spill] sm:$0xff]  ;;  %v2437_v57 = vadd.f32 %v2145_v21, %v2144_v60  ;;  %v2149_v3 = vmul.f32 %v6054_v39, %v1893_v28  ;;  %6061 = vst [vmem:[#allocation73_spill] sm:$0xff] %v4855_v23 }
 0x19e   :  { %v2146_v42 = vmul.f32 %v6052_v36, %v4794_v58  ;;  %v6053_v5 = vld [vmem:[#allocation118_spill] sm:$0xff]  ;;  %v6057_v59 = vld [vmem:[#allocation105_spill] sm:$0xff]  ;;  %v2287_v51 = vadd.f32 %v2025_v50, %v2024_v14  ;;  %2425 = vadd.xlane.f32.xlu0 %v2424_v1  ;;  %v2429_v28 = vadd.f32 %v2428_v27, %v2139_v40  ;;  %v2946_v36 = vld [vmem:[#allocation2 + $0x100] sm:$0xff]  ;;  %v2279_v6 = vadd.f32 %v2278_v15, %v2019_v12 }
 0x19f   :  { %v2148_v41 = vmul.f32 %v6053_v5, %v1892_v45  ;;  %v4841_v13 = vld [vmem:[#allocation2 + $0x730] sm:$0xff]  ;;  %v2945_v58 = vld [vmem:[#allocation2 + $0x738] sm:$0xff]  ;;  %v2028_v5 = vmul.f32 %v2946_v36, %v4831_v44  ;;  %v2947_v39 = vld [vmem:[#allocation2 + $0x108] sm:$0xff]  ;;  %v2283_v14 = vadd.f32 %v2282_v49, %v2022_v32  ;;  %v2434_v27 = vadd.f32 %v2433_v31, %v2143_v24  ;;  %2275 = vadd.xlane.f32.xlu1 %v2274_v25 }
 0x1a0   :  { %6056 = vst [vmem:[#allocation71_spill] sm:$0xff] %v4841_v13  ;;  %v4845_v9 = vmul.f32 %v4841_v13, %v6057_v59  ;;  %v2944_v46 = vld [vmem:[#allocation2 + $0xf0] sm:$0xff]  ;;  %v4851_v45 = vld [vmem:[#allocation5 + $0x8f8] sm:$0xff]  ;;  %v2029_v59 = vmul.f32 %v2947_v39, %v4833_v56  ;;  %v1904_v40 = vld [vmem:[#allocation5 + $0x920] sm:$0xff]  ;;  %v2438_v43 = vadd.f32 %v2437_v57, %v2146_v42 }
 0x1a1   :  { %v2026_v16 = vmul.f32 %v2944_v46, %v4827_v0  ;;  %v6059_v60 = vld [vmem:[#allocation110_spill] sm:$0xff]  ;;  %v6062_v50 = vld [vmem:[#allocation99_spill] sm:$0xff]  ;;  %v1905_v1 = vld [vmem:[#allocation5 + $0x928] sm:$0xff]  ;;  %v2442_v13 = vadd.f32 %v2149_v3, %v2148_v41  ;;  %v1482_v3 = vpop.xlane.xlu1 %1481 }
 0x1a2   :  { %6058 = vst [vmem:[#allocation48_spill] sm:$0xff] %v4845_v9  ;;  %v4849_v21 = vmul.f32 %v2945_v58, %v6059_v60  ;;  %v2948_v55 = vld [vmem:[#allocation2 + $0xd8] sm:$0xff]  ;;  %v2147_v58 = vmul.f32 %v6062_v50, %v4812_v63  ;;  %v4859_v60 = vld [vmem:[#allocation5 + $0x910] sm:$0xff]  ;;  %2430 = vadd.xlane.f32.xlu0 %v2429_v28  ;;  %v2951_v31 = vld [vmem:[#allocation2 + $0x120] sm:$0xff] }
 0x1a3   :  { %v2023_v46 = vmul.f32 %v2948_v55, %v1895_v62  ;;  %v6063_v34 = vld [vmem:[#allocation121_spill] sm:$0xff]  ;;  %v2949_v39 = vld [vmem:[#allocation2 + $0xf8] sm:$0xff]  ;;  %v2288_v15 = vadd.f32 %v2287_v51, %v2026_v16  ;;  %v2032_v42 = vmul.f32 %v2951_v31, %v1904_v40  ;;  %v4872_v25 = vld [vmem:[#allocation2 + $0x700] sm:$0xff]  ;;  %2280 = vadd.xlane.f32.xlu1 %v2279_v6 }
 0x1a4   :  { %6060 = vst [vmem:[#allocation50_spill] sm:$0xff] %v4849_v21  ;;  %v2150_v36 = vmul.f32 %v6063_v34, %v1894_v2  ;;  %v4862_v21 = vpop.xlane.xlu0 %1007  ;;  %v2027_v12 = vmul.f32 %v2949_v39, %v4851_v45  ;;  %v4865_v32 = vld [vmem:[#allocation5 + $0x918] sm:$0xff]  ;;  %v6065_v63 = vld [vmem:[#allocation109_spill] sm:$0xff]  ;;  %v2292_v2 = vadd.f32 %v2029_v59, %v2028_v5  ;;  %6067 = vst [vmem:[#allocation83_spill] sm:$0xff] %v4872_v25 }
 0x1a5   :  { %6064 = vst [vmem:[#allocation81_spill] sm:$0xff] %v4862_v21  ;;  %v2152_v49 = vmul.f32 %v6065_v63, %v4808_v33  ;;  %v6066_v55 = vld [vmem:[#allocation113_spill] sm:$0xff]  ;;  %v6068_v16 = vld [vmem:[#allocation111_spill] sm:$0xff]  ;;  %v6071_v39 = vld [vmem:[#allocation114_spill] sm:$0xff]  ;;  %v2284_v63 = vadd.f32 %v2283_v14, %v2023_v46 }
 0x1a6   :  { %v2153_v50 = vmul.f32 %v6066_v55, %v4810_v53  ;;  %v2950_v24 = vld [vmem:[#allocation2 + $0x110] sm:$0xff]  ;;  %v2952_v57 = vld [vmem:[#allocation2 + $0x128] sm:$0xff]  ;;  %v4876_v51 = vmul.f32 %v4872_v25, %v6068_v16  ;;  %v6074_v5 = vld [vmem:[#allocation115_spill] sm:$0xff]  ;;  %v2443_v23 = vadd.f32 %v2442_v13, %v2150_v36  ;;  %2435 = vadd.xlane.f32.xlu0 %v2434_v27  ;;  %v2289_v13 = vadd.f32 %v2288_v15, %v2027_v12 }
 0x1a7   :  { %v2030_v34 = vmul.f32 %v2950_v24, %v4859_v60  ;;  %v2033_v41 = vmul.f32 %v2952_v57, %v1905_v1  ;;  %v4878_v33 = vld [vmem:[#allocation2 + $0x708] sm:$0xff]  ;;  %v4884_v28 = vld [vmem:[#allocation2 + $0x710] sm:$0xff]  ;;  %v2439_v24 = vadd.f32 %v2438_v43, %v2147_v58  ;;  %v2956_v16 = vld [vmem:[#allocation2 + $0x118] sm:$0xff]  ;;  %2285 = vadd.xlane.f32.xlu1 %v2284_v63 }
 0x1a8   :  { %6069 = vst [vmem:[#allocation84_spill] sm:$0xff] %v4876_v51  ;;  %6070 = vst [vmem:[#allocation13_spill] sm:$0xff] %v4878_v33  ;;  %v4882_v53 = vmul.f32 %v4878_v33, %v6071_v39  ;;  %v4888_v59 = vmul.f32 %v4884_v28, %v6074_v5  ;;  %v1906_v55 = vld [vmem:[#allocation5 + $0x930] sm:$0xff]  ;;  %v2031_v21 = vmul.f32 %v2956_v16, %v4865_v32  ;;  %v1477_v25 = vpop.xlane.xlu0 %1476  ;;  %v1908_v9 = vld [vmem:[#allocation5 + $0x940] sm:$0xff]  ;;  %v1492_v16 = vpop.xlane.xlu1 %1491 }
 0x1a9   :  { %6073 = vst [vmem:[#allocation87_spill] sm:$0xff] %v4884_v28  ;;  %v6076_v31 = vld [vmem:[#allocation122_spill] sm:$0xff]  ;;  %v1909_v51 = vld [vmem:[#allocation5 + $0x948] sm:$0xff]  ;;  %v6078_v46 = vld [vmem:[#allocation131_spill] sm:$0xff]  ;;  %v2293_v58 = vadd.f32 %v2292_v2, %v2030_v34 }
 0x1aa   :  { %6072 = vst [vmem:[#allocation90_spill] sm:$0xff] %v4882_v53  ;;  %6075 = vst [vmem:[#allocation88_spill] sm:$0xff] %v4888_v59  ;;  %v2151_v57 = vmul.f32 %v6076_v31, %v1895_v62  ;;  %v6077_v39 = vld [vmem:[#allocation116_spill] sm:$0xff]  ;;  %v2447_v53 = vadd.f32 %v2153_v50, %v2152_v49  ;;  %v2156_v14 = vmul.f32 %v6078_v46, %v4831_v44  ;;  %v2957_v36 = vld [vmem:[#allocation2 + $0x130] sm:$0xff]  ;;  %2440 = vadd.xlane.f32.xlu0 %v2439_v24 }
 0x1ab   :  { %v2154_v33 = vmul.f32 %v6077_v39, %v4827_v0  ;;  %v6079_v43 = vld [vmem:[#allocation132_spill] sm:$0xff]  ;;  %v2034_v5 = vmul.f32 %v2957_v36, %v1906_v55  ;;  %v2297_v31 = vadd.f32 %v2033_v41, %v2032_v42  ;;  %v6080_v6 = vld [vmem:[#allocation117_spill] sm:$0xff]  ;;  %v1793_v0 = vadd.f32 %v1482_v3, %v1477_v25  ;;  %v2960_v37 = vld [vmem:[#allocation2 + $0x138] sm:$0xff]  ;;  %2290 = vadd.xlane.f32.xlu1 %v2289_v13 }
 0x1ac   :  { %v2157_v62 = vmul.f32 %v6079_v43, %v4833_v56  ;;  %v2155_v28 = vmul.f32 %v6080_v6, %v4851_v45  ;;  %v4902_v49 = vld [vmem:[#allocation5 + $0x950] sm:$0xff]  ;;  %v2958_v50 = vld [vmem:[#allocation2 + $0x140] sm:$0xff]  ;;  %v2959_v59 = vld [vmem:[#allocation2 + $0x148] sm:$0xff]  ;;  %v2444_v46 = vadd.f32 %v2443_v23, %v2151_v57  ;;  %v2035_v56 = vmul.f32 %v2960_v37, %v4894_v22  ;;  %v1487_v2 = vpop.xlane.xlu0 %1486 }
 0x1ad   :  { %v2036_v39 = vmul.f32 %v2958_v50, %v1908_v9  ;;  %v2037_v44 = vmul.f32 %v2959_v59, %v1909_v51  ;;  %v6081_v27 = vld [vmem:[#allocation124_spill] sm:$0xff]  ;;  %v6082_v15 = vld [vmem:[#allocation125_spill] sm:$0xff]  ;;  %v2448_v41 = vadd.f32 %v2447_v53, %v2154_v33  ;;  %v1794_v43 = vadd.f32 %v1793_v0, %v1487_v2  ;;  %v6084_v57 = vld [vmem:[#allocation135_spill] sm:$0xff]  ;;  %v1502_v50 = vpop.xlane.xlu1 %1501 }
 0x1ae   :  { %v2160_v12 = vmul.f32 %v6081_v27, %v1904_v40  ;;  %v2161_v34 = vmul.f32 %v6082_v15, %v1905_v1  ;;  %v1912_v42 = vld [vmem:[#allocation5 + $0x960] sm:$0xff]  ;;  %v6083_v45 = vld [vmem:[#allocation133_spill] sm:$0xff]  ;;  %v2452_v25 = vadd.f32 %v2157_v62, %v2156_v14  ;;  %v2294_v59 = vadd.f32 %v2293_v58, %v2031_v21  ;;  %v4911_v6 = vld [vmem:[#allocation5 + $0x958] sm:$0xff]  ;;  %2445 = vadd.xlane.f32.xlu0 %v2444_v46 }
 0x1af   :  { %v2158_v3 = vmul.f32 %v6083_v45, %v4859_v60  ;;  %v1913_v36 = vld [vmem:[#allocation5 + $0x968] sm:$0xff]  ;;  %v2298_v23 = vadd.f32 %v2297_v31, %v2034_v5  ;;  %v2159_v37 = vmul.f32 %v6084_v57, %v4865_v32  ;;  %v2961_v40 = vld [vmem:[#allocation2 + $0x150] sm:$0xff]  ;;  %v2302_v63 = vadd.f32 %v2037_v44, %v2036_v39  ;;  %v6085_v33 = vld [vmem:[#allocation127_spill] sm:$0xff] }
 0x1b0   :  { %v2038_v1 = vmul.f32 %v2961_v40, %v4902_v49  ;;  %v2162_v53 = vmul.f32 %v6085_v33, %v1906_v55  ;;  %v2962_v27 = vld [vmem:[#allocation2 + $0x160] sm:$0xff]  ;;  %v1795_v14 = vadd.f32 %v1794_v43, %v1492_v16  ;;  %v4917_v24 = vld [vmem:[#allocation5 + $0x988] sm:$0xff]  ;;  %v2457_v21 = vadd.f32 %v2161_v34, %v2160_v12  ;;  %v1914_v58 = vld [vmem:[#allocation5 + $0x970] sm:$0xff]  ;;  %v1497_v45 = vpop.xlane.xlu0 %1496  ;;  %2295 = vadd.xlane.f32.xlu1 %v2294_v59 }
 0x1b1   :  { %v2040_v60 = vmul.f32 %v2962_v27, %v1912_v42  ;;  %v4915_v62 = vld [vmem:[#allocation5 + $0x980] sm:$0xff]  ;;  %v2963_v5 = vld [vmem:[#allocation2 + $0x168] sm:$0xff]  ;;  %v2449_v39 = vadd.f32 %v2448_v41, %v2155_v28  ;;  %v2453_v44 = vadd.f32 %v2452_v25, %v2158_v3  ;;  %v2964_v55 = vld [vmem:[#allocation2 + $0x158] sm:$0xff] }
 0x1b2   :  { %v2041_v32 = vmul.f32 %v2963_v5, %v1913_v36  ;;  %v6086_v31 = vld [vmem:[#allocation143_spill] sm:$0xff]  ;;  %v6087_v15 = vld [vmem:[#allocation144_spill] sm:$0xff]  ;;  %v2039_v57 = vmul.f32 %v2964_v55, %v4911_v6  ;;  %v1796_v16 = vadd.f32 %v1795_v14, %v1497_v45  ;;  %v6088_v27 = vld [vmem:[#allocation137_spill] sm:$0xff]  ;;  %v2303_v13 = vadd.f32 %v2302_v63, %v2038_v1 }
 0x1b3   :  { %v2164_v0 = vmul.f32 %v6086_v31, %v1908_v9  ;;  %v2165_v2 = vmul.f32 %v6087_v15, %v1909_v51  ;;  %v1915_v43 = vld [vmem:[#allocation5 + $0x978] sm:$0xff]  ;;  %v2965_v40 = vld [vmem:[#allocation2 + $0x180] sm:$0xff]  ;;  %v2966_v34 = vld [vmem:[#allocation2 + $0x188] sm:$0xff]  ;;  %v2168_v9 = vmul.f32 %v6088_v27, %v1912_v42  ;;  %v1512_v31 = vpop.xlane.xlu1 %1511  ;;  %v2458_v15 = vadd.f32 %v2457_v21, %v2162_v53  ;;  %2450 = vadd.xlane.f32.xlu0 %v2449_v39 }
 0x1b4   :  { %v2044_v12 = vmul.f32 %v2965_v40, %v4915_v62  ;;  %v2045_v33 = vmul.f32 %v2966_v34, %v4917_v24  ;;  %v6089_v5 = vld [vmem:[#allocation138_spill] sm:$0xff]  ;;  %v6090_v28 = vld [vmem:[#allocation129_spill] sm:$0xff]  ;;  %v1797_v46 = vadd.f32 %v1796_v16, %v1502_v50  ;;  %v2307_v45 = vadd.f32 %v2041_v32, %v2040_v60  ;;  %v1507_v48 = vpop.xlane.xlu0 %1506  ;;  %v4932_v42 = vld [vmem:[#allocation5 + $0x9a0] sm:$0xff] }
 0x1b5   :  { %v2169_v51 = vmul.f32 %v6089_v5, %v1913_v36  ;;  %v2163_v41 = vmul.f32 %v6090_v28, %v4894_v22  ;;  %v2967_v3 = vld [vmem:[#allocation2 + $0x170] sm:$0xff]  ;;  %v2462_v34 = vadd.f32 %v2165_v2, %v2164_v0  ;;  %v4934_v36 = vld [vmem:[#allocation5 + $0x9a8] sm:$0xff]  ;;  %v2299_v1 = vadd.f32 %v2298_v23, %v2035_v56  ;;  %v2968_v22 = vld [vmem:[#allocation2 + $0x178] sm:$0xff] }
 0x1b6   :  { %v2042_v25 = vmul.f32 %v2967_v3, %v1914_v58  ;;  %v4928_v14 = vld [vmem:[#allocation5 + $0x990] sm:$0xff]  ;;  %v2454_v63 = vadd.f32 %v2453_v44, %v2159_v37  ;;  %v2043_v27 = vmul.f32 %v2968_v22, %v1915_v43  ;;  %v1798_v5 = vadd.f32 %v1797_v46, %v1507_v48  ;;  %v4936_v28 = vld [vmem:[#allocation5 + $0x998] sm:$0xff]  ;;  %v2970_v59 = vld [vmem:[#allocation2 + $0x1a0] sm:$0xff] }
 0x1b7   :  { %v6091_v55 = vld [vmem:[#allocation146_spill] sm:$0xff]  ;;  %v2312_v60 = vadd.f32 %v2045_v33, %v2044_v12  ;;  %v2467_v32 = vadd.f32 %v2169_v51, %v2168_v9  ;;  %v1522_v0 = vpop.xlane.xlu1 %1521  ;;  %v2304_v2 = vadd.f32 %v2303_v13, %v2039_v57  ;;  %v2048_v56 = vmul.f32 %v2970_v59, %v4932_v42  ;;  %v2971_v23 = vld [vmem:[#allocation2 + $0x1a8] sm:$0xff]  ;;  %v6093_v3 = vld [vmem:[#allocation147_spill] sm:$0xff]  ;;  %2300 = vadd.xlane.f32.xlu1 %v2299_v1 }
 0x1b8   :  { %v2166_v40 = vmul.f32 %v6091_v55, %v4902_v49  ;;  %v2969_v50 = vld [vmem:[#allocation2 + $0x190] sm:$0xff]  ;;  %v6092_v49 = vld [vmem:[#allocation139_spill] sm:$0xff]  ;;  %v2049_v48 = vmul.f32 %v2971_v23, %v4934_v36  ;;  %v1799_v37 = vadd.f32 %v1798_v5, %v1512_v31  ;;  %v2459_v39 = vadd.f32 %v2458_v15, %v2163_v41  ;;  %v1517_v33 = vpop.xlane.xlu0 %1516  ;;  %v1925_v9 = vld [vmem:[#allocation5 + $0x9c8] sm:$0xff]  ;;  %2455 = vadd.xlane.f32.xlu0 %v2454_v63 }
 0x1b9   :  { %v2046_v53 = vmul.f32 %v2969_v50, %v4928_v14  ;;  %v2170_v21 = vmul.f32 %v6092_v49, %v1914_v58  ;;  %v4940_v16 = vld [vmem:[#allocation5 + $0x9b0] sm:$0xff]  ;;  %v2308_v44 = vadd.f32 %v2307_v45, %v2042_v25  ;;  %v2167_v46 = vmul.f32 %v6093_v3, %v4911_v6  ;;  %v1924_v58 = vld [vmem:[#allocation5 + $0x9c0] sm:$0xff]  ;;  %v2972_v57 = vld [vmem:[#allocation2 + $0x198] sm:$0xff] }
 0x1ba   :  { %v2463_v12 = vadd.f32 %v2462_v34, %v2166_v40  ;;  %v2047_v51 = vmul.f32 %v2972_v57, %v4936_v28  ;;  %v6094_v13 = vld [vmem:[#allocation31_spill] sm:$0xff]  ;;  %v6095_v22 = vld [vmem:[#allocation34_spill] sm:$0xff]  ;;  %v1800_v31 = vadd.f32 %v1799_v37, %v1517_v33  ;;  %v6096_v25 = vld [vmem:[#allocation140_spill] sm:$0xff]  ;;  %v2317_v5 = vadd.f32 %v2049_v48, %v2048_v56 }
 0x1bb   :  { %v2172_v55 = vmul.f32 %v6094_v13, %v4915_v62  ;;  %v2173_v50 = vmul.f32 %v6095_v22, %v4917_v24  ;;  %v2313_v41 = vadd.f32 %v2312_v60, %v2046_v53  ;;  %v2171_v15 = vmul.f32 %v6096_v25, %v1915_v43  ;;  %v4952_v45 = vld [vmem:[#allocation5 + $0x9b8] sm:$0xff]  ;;  %v2973_v40 = vld [vmem:[#allocation2 + $0x1b0] sm:$0xff]  ;;  %v1532_v1 = vpop.xlane.xlu1 %1531  ;;  %v2974_v49 = vld [vmem:[#allocation2 + $0x1c0] sm:$0xff]  ;;  %2305 = vadd.xlane.f32.xlu1 %v2304_v2 }
 0x1bc   :  { %v2468_v6 = vadd.f32 %v2467_v32, %v2170_v21  ;;  %v2050_v34 = vmul.f32 %v2973_v40, %v4940_v16  ;;  %v2052_v59 = vmul.f32 %v2974_v49, %v1924_v58  ;;  %v2975_v23 = vld [vmem:[#allocation2 + $0x1c8] sm:$0xff]  ;;  %v1801_v3 = vadd.f32 %v1800_v31, %v1522_v0  ;;  %v4955_v57 = vld [vmem:[#allocation2 + $0x718] sm:$0xff]  ;;  %v4960_v43 = vld [vmem:[#allocation2 + $0x760] sm:$0xff]  ;;  %v1527_v48 = vpop.xlane.xlu0 %1526  ;;  %2460 = vadd.xlane.f32.xlu0 %v2459_v39 }
 0x1bd   :  { %v2053_v62 = vmul.f32 %v2975_v23, %v1925_v9  ;;  %6097 = vst [vmem:[#allocation91_spill] sm:$0xff] %v4955_v57  ;;  %v2977_v24 = vld [vmem:[#allocation5 + $0x718] sm:$0xff]  ;;  %6099 = vst [vmem:[#allocation94_spill] sm:$0xff] %v4960_v43  ;;  %v2979_v53 = vld [vmem:[#allocation5 + $0x760] sm:$0xff]  ;;  %v2309_v21 = vadd.f32 %v2308_v44, %v2043_v27  ;;  %v2464_v32 = vadd.f32 %v2463_v12, %v2167_v46 }
 0x1be   :  { %v4958_v63 = vmul.f32 %v2977_v24, %v4955_v57  ;;  %v4963_v60 = vmul.f32 %v2979_v53, %v4960_v43  ;;  %v1926_v56 = vld [vmem:[#allocation5 + $0x9d0] sm:$0xff]  ;;  %v2980_v37 = vld [vmem:[#allocation2 + $0x1b8] sm:$0xff]  ;;  %v2472_v22 = vadd.f32 %v2173_v50, %v2172_v55  ;;  %v1802_v31 = vadd.f32 %v1801_v3, %v1527_v48  ;;  %v1928_v25 = vld [vmem:[#allocation5 + $0x9e0] sm:$0xff] }
 0x1bf   :  { %v2051_v0 = vmul.f32 %v2980_v37, %v4952_v45  ;;  %v6101_v33 = vld [vmem:[#allocation149_spill] sm:$0xff]  ;;  %v2314_v49 = vadd.f32 %v2313_v41, %v2047_v51  ;;  %v2469_v23 = vadd.f32 %v2468_v6, %v2171_v15  ;;  %v4968_v24 = vld [vmem:[#allocation5 + $0x9d8] sm:$0xff]  ;;  %v2981_v27 = vld [vmem:[#allocation2 + $0x5a0] sm:$0xff]  ;;  %v1542_v12 = vpop.xlane.xlu1 %1541  ;;  %v2318_v53 = vadd.f32 %v2317_v5, %v2050_v34  ;;  %2310 = vadd.xlane.f32.xlu1 %v2309_v21 }
 0x1c0   :  { %6098 = vst [vmem:[#allocation93_spill] sm:$0xff] %v4958_v63  ;;  %6100 = vst [vmem:[#allocation100_spill] sm:$0xff] %v4963_v60  ;;  %v2174_v13 = vmul.f32 %v6101_v33, %v4928_v14  ;;  %v1929_v40 = vld [vmem:[#allocation5 + $0x9e8] sm:$0xff]  ;;  %v2176_v44 = vmul.f32 %v2981_v27, %v4932_v42  ;;  %v2983_v37 = vld [vmem:[#allocation2 + $0x1d0] sm:$0xff]  ;;  %v2322_v14 = vadd.f32 %v2053_v62, %v2052_v59  ;;  %2465 = vadd.xlane.f32.xlu0 %v2464_v32 }
 0x1c1   :  { %v2982_v46 = vld [vmem:[#allocation2 + $0x5a8] sm:$0xff]  ;;  %v2054_v43 = vmul.f32 %v2983_v37, %v1926_v56  ;;  %v1803_v55 = vadd.f32 %v1802_v31, %v1532_v1  ;;  %v4972_v50 = vld [vmem:[#allocation5 + $0xa00] sm:$0xff]  ;;  %v1930_v39 = vld [vmem:[#allocation5 + $0x9f0] sm:$0xff]  ;;  %v2319_v60 = vadd.f32 %v2318_v53, %v2051_v0 }
 0x1c2   :  { %v2177_v2 = vmul.f32 %v2982_v46, %v4934_v36  ;;  %v4974_v3 = vld [vmem:[#allocation5 + $0xa08] sm:$0xff]  ;;  %v2984_v51 = vld [vmem:[#allocation2 + $0x1e0] sm:$0xff]  ;;  %v6102_v48 = vld [vmem:[#allocation42_spill] sm:$0xff]  ;;  %v2473_v5 = vadd.f32 %v2472_v22, %v2174_v13  ;;  %v1537_v46 = vpop.xlane.xlu0 %1536 }
 0x1c3   :  { %v2056_v41 = vmul.f32 %v2984_v51, %v1928_v25  ;;  %v2985_v15 = vld [vmem:[#allocation2 + $0x1e8] sm:$0xff]  ;;  %v2180_v42 = vmul.f32 %v6102_v48, %v1924_v58  ;;  %v6103_v33 = vld [vmem:[#allocation43_spill] sm:$0xff]  ;;  %v6104_v36 = vld [vmem:[#allocation150_spill] sm:$0xff]  ;;  %v1804_v51 = vadd.f32 %v1803_v55, %v1537_v46  ;;  %v2323_v13 = vadd.f32 %v2322_v14, %v2054_v43  ;;  %v1552_v57 = vpop.xlane.xlu1 %1551  ;;  %2315 = vadd.xlane.f32.xlu1 %v2314_v49 }
 0x1c4   :  { %v2057_v6 = vmul.f32 %v2985_v15, %v1929_v40  ;;  %v2181_v27 = vmul.f32 %v6103_v33, %v1925_v9  ;;  %v2175_v34 = vmul.f32 %v6104_v36, %v4936_v28  ;;  %v2986_v59 = vld [vmem:[#allocation2 + $0x1d8] sm:$0xff]  ;;  %v2987_v62 = vld [vmem:[#allocation2 + $0x5b0] sm:$0xff]  ;;  %v2477_v37 = vadd.f32 %v2177_v2, %v2176_v44  ;;  %v2988_v15 = vld [vmem:[#allocation2 + $0x200] sm:$0xff]  ;;  %2470 = vadd.xlane.f32.xlu0 %v2469_v23 }
 0x1c5   :  { %v2055_v1 = vmul.f32 %v2986_v59, %v4968_v24  ;;  %v2178_v31 = vmul.f32 %v2987_v62, %v4940_v16  ;;  %v2060_v58 = vmul.f32 %v2988_v15, %v4972_v50  ;;  %v2989_v48 = vld [vmem:[#allocation2 + $0x208] sm:$0xff]  ;;  %v4984_v21 = vld [vmem:[#allocation5 + $0xa20] sm:$0xff]  ;;  %v2990_v22 = vld [vmem:[#allocation2 + $0x1f0] sm:$0xff] }
 0x1c6   :  { %v2061_v9 = vmul.f32 %v2989_v48, %v4974_v3  ;;  %v4986_v28 = vld [vmem:[#allocation5 + $0xa28] sm:$0xff]  ;;  %v2058_v33 = vmul.f32 %v2990_v22, %v1930_v39  ;;  %v4988_v36 = vld [vmem:[#allocation5 + $0xa10] sm:$0xff]  ;;  %v2991_v16 = vld [vmem:[#allocation2 + $0x5e0] sm:$0xff]  ;;  %v2327_v55 = vadd.f32 %v2057_v6, %v2056_v41  ;;  %v2482_v15 = vadd.f32 %v2181_v27, %v2180_v42 }
 0x1c7   :  { %v2184_v59 = vmul.f32 %v2991_v16, %v1928_v25  ;;  %v2992_v32 = vld [vmem:[#allocation2 + $0x5e8] sm:$0xff]  ;;  %v1931_v2 = vld [vmem:[#allocation5 + $0x9f8] sm:$0xff]  ;;  %v1805_v48 = vadd.f32 %v1804_v51, %v1542_v12  ;;  %v2994_v14 = vld [vmem:[#allocation2 + $0x220] sm:$0xff]  ;;  %v2478_v16 = vadd.f32 %v2477_v37, %v2178_v31  ;;  %v2324_v49 = vadd.f32 %v2323_v13, %v2055_v1  ;;  %v1547_v51 = vpop.xlane.xlu0 %1546  ;;  %2320 = vadd.xlane.f32.xlu1 %v2319_v60 }
 0x1c8   :  { %v2185_v44 = vmul.f32 %v2992_v32, %v1929_v40  ;;  %v6105_v62 = vld [vmem:[#allocation44_spill] sm:$0xff]  ;;  %v2993_v63 = vld [vmem:[#allocation2 + $0x5b8] sm:$0xff]  ;;  %v2064_v22 = vmul.f32 %v2994_v14, %v4984_v21  ;;  %v2474_v40 = vadd.f32 %v2473_v5, %v2175_v34  ;;  %v2996_v41 = vld [vmem:[#allocation2 + $0x210] sm:$0xff]  ;;  %v2332_v6 = vadd.f32 %v2061_v9, %v2060_v58 }
 0x1c9   :  { %v2182_v46 = vmul.f32 %v6105_v62, %v1926_v56  ;;  %v2179_v43 = vmul.f32 %v2993_v63, %v4952_v45  ;;  %v2995_v10 = vld [vmem:[#allocation2 + $0x228] sm:$0xff]  ;;  %v2062_v56 = vmul.f32 %v2996_v41, %v4988_v36  ;;  %v4995_v42 = vld [vmem:[#allocation5 + $0xa30] sm:$0xff]  ;;  %v2997_v0 = vld [vmem:[#allocation2 + $0x1f8] sm:$0xff]  ;;  %v2328_v32 = vadd.f32 %v2327_v55, %v2058_v33  ;;  %v1562_v55 = vpop.xlane.xlu1 %1561 }
 0x1ca   :  { %v2065_v25 = vmul.f32 %v2995_v10, %v4986_v28  ;;  %v2059_v12 = vmul.f32 %v2997_v0, %v1931_v2  ;;  %v1935_v53 = vld [vmem:[#allocation5 + $0xa18] sm:$0xff]  ;;  %v2998_v45 = vld [vmem:[#allocation2 + $0x5f0] sm:$0xff]  ;;  %v2487_v27 = vadd.f32 %v2185_v44, %v2184_v59  ;;  %v1806_v34 = vadd.f32 %v1805_v48, %v1547_v51  ;;  %v4998_v5 = vld [vmem:[#allocation5 + $0xa40] sm:$0xff]  ;;  %2475 = vadd.xlane.f32.xlu0 %v2474_v40 }
 0x1cb   :  { %v2186_v63 = vmul.f32 %v2998_v45, %v1930_v39  ;;  %v2999_v62 = vld [vmem:[#allocation2 + $0x5d8] sm:$0xff]  ;;  %v2483_v23 = vadd.f32 %v2482_v15, %v2182_v46  ;;  %v5000_v31 = vld [vmem:[#allocation5 + $0xa48] sm:$0xff]  ;;  %v3000_v1 = vld [vmem:[#allocation2 + $0x230] sm:$0xff]  ;;  %v2188_v39 = vmul.f32 %v4537_v26, %v4972_v50  ;;  %v2189_v13 = vmul.f32 %v4545_v35, %v4974_v3  ;;  %2325 = vadd.xlane.f32.xlu1 %v2324_v49 }
 0x1cc   :  { %v2183_v10 = vmul.f32 %v2999_v62, %v4968_v24  ;;  %v5002_v37 = vld [vmem:[#allocation5 + $0xa38] sm:$0xff]  ;;  %v2066_v58 = vmul.f32 %v3000_v1, %v4995_v42  ;;  %v2337_v9 = vadd.f32 %v2065_v25, %v2064_v22  ;;  %v2479_v24 = vadd.f32 %v2478_v16, %v2179_v43  ;;  %v3003_v14 = vld [vmem:[#allocation2 + $0x240] sm:$0xff]  ;;  %v3004_v22 = vld [vmem:[#allocation2 + $0x248] sm:$0xff]  ;;  %v1557_v16 = vpop.xlane.xlu0 %1556 }
 0x1cd   :  { %v3001_v33 = vld [vmem:[#allocation2 + $0x218] sm:$0xff]  ;;  %v2333_v44 = vadd.f32 %v2332_v6, %v2062_v56  ;;  %v1807_v46 = vadd.f32 %v1806_v34, %v1552_v57  ;;  %v2488_v48 = vadd.f32 %v2487_v27, %v2186_v63  ;;  %v2068_v41 = vmul.f32 %v3003_v14, %v4998_v5  ;;  %v5014_v43 = vld [vmem:[#allocation5 + $0xa50] sm:$0xff]  ;;  %v3006_v56 = vld [vmem:[#allocation2 + $0x620] sm:$0xff]  ;;  %v1572_v1 = vpop.xlane.xlu1 %1571 }
 0x1ce   :  { %v2063_v59 = vmul.f32 %v3001_v33, %v1935_v53  ;;  %v3002_v60 = vld [vmem:[#allocation2 + $0x5f8] sm:$0xff]  ;;  %v2069_v25 = vmul.f32 %v3004_v22, %v5000_v31  ;;  %v2329_v26 = vadd.f32 %v2328_v32, %v2059_v12  ;;  %v2484_v50 = vadd.f32 %v2483_v23, %v2183_v10  ;;  %v3007_v45 = vld [vmem:[#allocation2 + $0x628] sm:$0xff]  ;;  %v1944_v63 = vld [vmem:[#allocation5 + $0xa60] sm:$0xff]  ;;  %2480 = vadd.xlane.f32.xlu0 %v2479_v24 }
 0x1cf   :  { %v2187_v15 = vmul.f32 %v3002_v60, %v1931_v2  ;;  %v3005_v0 = vld [vmem:[#allocation2 + $0x238] sm:$0xff]  ;;  %v2190_v3 = vmul.f32 %v4553_v17, %v4988_v36  ;;  %v2338_v2 = vadd.f32 %v2337_v9, %v2066_v58  ;;  %v2492_v40 = vadd.f32 %v2189_v13, %v2188_v39  ;;  %v1945_v27 = vld [vmem:[#allocation5 + $0xa68] sm:$0xff]  ;;  %v3008_v62 = vld [vmem:[#allocation2 + $0x250] sm:$0xff] }
 0x1d0   :  { %v2067_v35 = vmul.f32 %v3005_v0, %v5002_v37  ;;  %v5016_v57 = vld [vmem:[#allocation5 + $0xa58] sm:$0xff]  ;;  %v2192_v6 = vmul.f32 %v3006_v56, %v4984_v21  ;;  %v2193_v12 = vmul.f32 %v3007_v45, %v4986_v28  ;;  %v2334_v51 = vadd.f32 %v2333_v44, %v2063_v59  ;;  %v3010_v58 = vld [vmem:[#allocation2 + $0x260] sm:$0xff]  ;;  %v3011_v39 = vld [vmem:[#allocation2 + $0x268] sm:$0xff]  ;;  %2330 = vadd.xlane.f32.xlu1 %v2329_v26 }
 0x1d1   :  { %v2191_v17 = vmul.f32 %v4566_v8, %v1935_v53  ;;  %v1808_v36 = vadd.f32 %v1807_v46, %v1557_v16  ;;  %v1738_v32 = vadd.f32 %v4686_v18, %v4675_v4  ;;  %v2489_v49 = vadd.f32 %v2488_v48, %v2187_v15  ;;  %v3009_v23 = vld [vmem:[#allocation2 + $0x258] sm:$0xff]  ;;  %v1948_v24 = vld [vmem:[#allocation5 + $0xa80] sm:$0xff]  ;;  %v1949_v8 = vld [vmem:[#allocation5 + $0xa88] sm:$0xff] }
 0x1d2   :  { %v2070_v10 = vmul.f32 %v3008_v62, %v5014_v43  ;;  %v2071_v21 = vmul.f32 %v3009_v23, %v5016_v57  ;;  %v2342_v34 = vadd.f32 %v2069_v25, %v2068_v41  ;;  %v2072_v9 = vmul.f32 %v3010_v58, %v1944_v63  ;;  %v3012_v33 = vld [vmem:[#allocation2 + $0x630] sm:$0xff]  ;;  %2485 = vadd.xlane.f32.xlu0 %v2484_v50  ;;  %v3013_v60 = vld [vmem:[#allocation2 + $0x638] sm:$0xff]  ;;  %v1567_v41 = vpop.xlane.xlu0 %1566  ;;  %v3015_v26 = vld [vmem:[#allocation2 + $0x288] sm:$0xff] }
 0x1d3   :  { %v1809_v28 = vadd.f32 %v1808_v36, %v1562_v55  ;;  %v2073_v13 = vmul.f32 %v3011_v39, %v1945_v27  ;;  %v1739_v53 = vadd.f32 %v1738_v32, %v4692_v52  ;;  %v2339_v4 = vadd.f32 %v2338_v2, %v2067_v35  ;;  %v1946_v46 = vld [vmem:[#allocation5 + $0xa70] sm:$0xff]  ;;  %v1947_v15 = vld [vmem:[#allocation5 + $0xa78] sm:$0xff]  ;;  %v3016_v0 = vld [vmem:[#allocation2 + $0x660] sm:$0xff] }
 0x1d4   :  { %v2493_v18 = vadd.f32 %v2492_v40, %v2190_v3  ;;  %v2194_v59 = vmul.f32 %v3012_v33, %v4995_v42  ;;  %v2497_v44 = vadd.f32 %v2193_v12, %v2192_v6  ;;  %v2195_v55 = vmul.f32 %v3013_v60, %v5002_v37  ;;  %v5035_v22 = vld [vmem:[#allocation5 + $0xa90] sm:$0xff]  ;;  %v3014_v42 = vld [vmem:[#allocation2 + $0x280] sm:$0xff]  ;;  %v3017_v37 = vld [vmem:[#allocation2 + $0x668] sm:$0xff]  ;;  %2335 = vadd.xlane.f32.xlu1 %v2334_v51  ;;  %v1582_v12 = vpop.xlane.xlu1 %1581 }
 0x1d5   :  { %v2196_v48 = vmul.f32 %v4597_v19, %v4998_v5  ;;  %v2197_v14 = vmul.f32 %v4608_v20, %v5000_v31  ;;  %v5033_v52 = vadd.f32 %v1739_v53, %v4704_v54  ;;  %v2076_v25 = vmul.f32 %v3014_v42, %v1948_v24  ;;  %v3018_v19 = vld [vmem:[#allocation2 + $0x270] sm:$0xff]  ;;  %v3019_v31 = vld [vmem:[#allocation2 + $0x278] sm:$0xff]  ;;  %v1953_v53 = vld [vmem:[#allocation5 + $0xaa8] sm:$0xff] }
 0x1d6   :  { %v2077_v50 = vmul.f32 %v3015_v26, %v1949_v8  ;;  %v2200_v35 = vmul.f32 %v3016_v0, %v1944_v63  ;;  %v2201_v3 = vmul.f32 %v3017_v37, %v1945_v27  ;;  %v2343_v2 = vadd.f32 %v2342_v34, %v2070_v10  ;;  %2490 = vadd.xlane.f32.xlu0 %v2489_v49  ;;  %v3020_v63 = vld [vmem:[#allocation2 + $0x290] sm:$0xff]  ;;  %v1951_v62 = vld [vmem:[#allocation5 + $0xa98] sm:$0xff]  ;;  %v1577_v58 = vpop.xlane.xlu0 %1576  ;;  %v1956_v60 = vld [vmem:[#allocation5 + $0xac0] sm:$0xff] }
 0x1d7   :  { %v1810_v40 = vadd.f32 %v1809_v28, %v1567_v41  ;;  %v2074_v5 = vmul.f32 %v3018_v19, %v1946_v46  ;;  %v2347_v16 = vadd.f32 %v2073_v13, %v2072_v9  ;;  %v2494_v20 = vadd.f32 %v2493_v18, %v2191_v17  ;;  %v3021_v51 = vld [vmem:[#allocation2 + $0x670] sm:$0xff]  ;;  %v3022_v9 = vld [vmem:[#allocation2 + $0x680] sm:$0xff] }
 0x1d8   :  { %v2498_v54 = vadd.f32 %v2497_v44, %v2194_v59  ;;  %v2075_v56 = vmul.f32 %v3019_v31, %v1947_v15  ;;  %v2198_v6 = vmul.f32 %v4615_v61, %v5014_v43  ;;  %v2502_v45 = vadd.f32 %v2197_v14, %v2196_v48  ;;  %2340 = vadd.xlane.f32.xlu1 %v2339_v4  ;;  %v1952_v13 = vld [vmem:[#allocation5 + $0xaa0] sm:$0xff]  ;;  %v6106_v18 = vld [vmem:[#allocation30_spill] sm:$0xff]  ;;  %v1592_v14 = vpop.xlane.xlu1 %1591 }
 0x1d9   :  { %v1811_v36 = vadd.f32 %v1810_v40, %v1572_v1  ;;  %v2078_v27 = vmul.f32 %v3020_v63, %v5035_v22  ;;  %v1743_v32 = vadd.f32 %v4752_v38, %v4746_v47  ;;  %v2352_v10 = vadd.f32 %v2077_v50, %v2076_v25  ;;  %v3023_v38 = vld [vmem:[#allocation2 + $0x688] sm:$0xff]  ;;  %v6107_v44 = vld [vmem:[#allocation151_spill] sm:$0xff]  ;;  %v1954_v42 = vld [vmem:[#allocation5 + $0xab0] sm:$0xff] }
 0x1da   :  { %v2202_v17 = vmul.f32 %v3021_v51, %v1946_v46  ;;  %v2507_v23 = vadd.f32 %v2201_v3, %v2200_v35  ;;  %v1748_v34 = vadd.f32 %v4715_v30, %v4707_v11  ;;  %v2344_v28 = vadd.f32 %v2343_v2, %v2071_v21  ;;  %2495 = vadd.xlane.f32.xlu0 %v2494_v20  ;;  %v3024_v21 = vld [vmem:[#allocation2 + $0x298] sm:$0xff]  ;;  %v6110_v50 = vld [vmem:[#allocation148_spill] sm:$0xff]  ;;  %v3026_v35 = vld [vmem:[#allocation2 + $0x690] sm:$0xff]  ;;  %v1587_v63 = vpop.xlane.xlu0 %1586 }
 0x1db   :  { %v2348_v61 = vadd.f32 %v2347_v16, %v2074_v5  ;;  %v2199_v43 = vmul.f32 %v4631_v7, %v5016_v57  ;;  %v1744_v49 = vadd.f32 %v1743_v32, %v4758_v29  ;;  %v2499_v1 = vadd.f32 %v2498_v54, %v2195_v55  ;;  %v3025_v57 = vld [vmem:[#allocation2 + $0x678] sm:$0xff]  ;;  %v6108_v55 = vld [vmem:[#allocation36_spill] sm:$0xff]  ;;  %v5062_v31 = vld [vmem:[#allocation5 + $0xad0] sm:$0xff] }
 0x1dc   :  { %v2204_v47 = vmul.f32 %v3022_v9, %v1948_v24  ;;  %v2205_v39 = vmul.f32 %v3023_v38, %v1949_v8  ;;  %v1749_v33 = vadd.f32 %v1748_v34, %v6106_v18  ;;  %v2503_v11 = vadd.f32 %v2502_v45, %v2198_v6  ;;  %v1957_v24 = vld [vmem:[#allocation5 + $0xac8] sm:$0xff]  ;;  %v6109_v25 = vld [vmem:[#allocation63_spill] sm:$0xff]  ;;  %2345 = vadd.xlane.f32.xlu1 %v2344_v28  ;;  %v6113_v28 = vld [vmem:[#allocation90_spill] sm:$0xff] }
 0x1dd   :  { %v1812_v30 = vadd.f32 %v1811_v36, %v1577_v58  ;;  %v2079_v59 = vmul.f32 %v3024_v21, %v1951_v62  ;;  %v5049_v7 = vadd.f32 %v1744_v49, %v6107_v44  ;;  %v2353_v29 = vadd.f32 %v2352_v10, %v2078_v27  ;;  %v3028_v40 = vld [vmem:[#allocation2 + $0x2a8] sm:$0xff]  ;;  %v3033_v27 = vld [vmem:[#allocation2 + $0x698] sm:$0xff]  ;;  %v5072_v44 = vld [vmem:[#allocation2 + $0x770] sm:$0xff] }
 0x1de   :  { %v2203_v4 = vmul.f32 %v3025_v57, %v1947_v15  ;;  %v2508_v46 = vadd.f32 %v2507_v23, %v2202_v17  ;;  %v5052_v8 = vadd.f32 %v1749_v33, %v6108_v55  ;;  %v2349_v48 = vadd.f32 %v2348_v61, %v2075_v56  ;;  %v3027_v15 = vld [vmem:[#allocation2 + $0x2a0] sm:$0xff]  ;;  %v5057_v5 = vld [vmem:[#allocation2 + $0x768] sm:$0xff]  ;;  %2500 = vadd.xlane.f32.xlu0 %v2499_v1  ;;  %v1955_v9 = vld [vmem:[#allocation5 + $0xab8] sm:$0xff] }
 0x1df   :  { %v1813_v41 = vadd.f32 %v1812_v30, %v1582_v12  ;;  %v2208_v26 = vmul.f32 %v6109_v25, %v1952_v13  ;;  %v2209_v0 = vmul.f32 %v6110_v50, %v1953_v53  ;;  %v2206_v37 = vmul.f32 %v3026_v35, %v5035_v22  ;;  %v3030_v16 = vld [vmem:[#allocation5 + $0x768] sm:$0xff]  ;;  %v3031_v56 = vld [vmem:[#allocation2 + $0x2c0] sm:$0xff] }
 0x1e0   :  { %v2512_v3 = vadd.f32 %v2205_v39, %v2204_v47  ;;  %v2080_v2 = vmul.f32 %v3027_v15, %v1952_v13  ;;  %v2081_v19 = vmul.f32 %v3028_v40, %v1953_v53  ;;  %v5060_v20 = vmul.f32 %v3030_v16, %v5057_v5  ;;  %v3032_v45 = vld [vmem:[#allocation2 + $0x2c8] sm:$0xff]  ;;  %2350 = vadd.xlane.f32.xlu1 %v2349_v48  ;;  %v3034_v47 = vld [vmem:[#allocation2 + $0x2b0] sm:$0xff]  ;;  %v1959_v48 = vld [vmem:[#allocation5 + $0xad8] sm:$0xff] }
 0x1e1   :  { %v2504_v54 = vadd.f32 %v2503_v11, %v2199_v43  ;;  %v2084_v6 = vmul.f32 %v3031_v56, %v1956_v60  ;;  %v2085_v12 = vmul.f32 %v3032_v45, %v1957_v24  ;;  %v2354_v22 = vadd.f32 %v2353_v29, %v2079_v59  ;;  %v6111_v10 = vld [vmem:[#allocation33_spill] sm:$0xff]  ;;  %v6112_v34 = vld [vmem:[#allocation84_spill] sm:$0xff]  ;;  %v1597_v56 = vpop.xlane.xlu0 %1596 }
 0x1e2   :  { %v2509_v36 = vadd.f32 %v2508_v46, %v2203_v4  ;;  %v2207_v32 = vmul.f32 %v3033_v27, %v1951_v62  ;;  %v2210_v51 = vmul.f32 %v6111_v10, %v1954_v42  ;;  %v1814_v17 = vadd.f32 %v1813_v41, %v1587_v63  ;;  %v6114_v49 = vld [vmem:[#allocation68_spill] sm:$0xff]  ;;  %v3035_v13 = vld [vmem:[#allocation2 + $0x2d0] sm:$0xff]  ;;  %v1602_v62 = vpop.xlane.xlu1 %1601  ;;  %v5077_v4 = vld [vmem:[#allocation2 + $0x778] sm:$0xff] }
 0x1e3   :  { %v2517_v23 = vadd.f32 %v2209_v0, %v2208_v26  ;;  %v1753_v61 = vadd.f32 %v6113_v28, %v6112_v34  ;;  %v6115_v43 = vld [vmem:[#allocation76_spill] sm:$0xff]  ;;  %v2513_v58 = vadd.f32 %v2512_v3, %v2206_v37  ;;  %v2082_v38 = vmul.f32 %v3034_v47, %v1954_v42  ;;  %2505 = vadd.xlane.f32.xlu0 %v2504_v54  ;;  %v3037_v29 = vld [vmem:[#allocation5 + $0x770] sm:$0xff]  ;;  %v3039_v46 = vld [vmem:[#allocation5 + $0x778] sm:$0xff] }
 0x1e4   :  { %v1758_v1 = vadd.f32 %v6115_v43, %v6114_v49  ;;  %v2357_v39 = vadd.f32 %v2081_v19, %v2080_v2  ;;  %v2086_v53 = vmul.f32 %v3035_v13, %v5062_v31  ;;  %v1815_v18 = vadd.f32 %v1814_v17, %v1592_v14  ;;  %v6116_v11 = vld [vmem:[#allocation88_spill] sm:$0xff]  ;;  %v6118_v41 = vld [vmem:[#allocation66_spill] sm:$0xff]  ;;  %v6119_v42 = vld [vmem:[#allocation45_spill] sm:$0xff]  ;;  %2355 = vadd.xlane.f32.xlu1 %v2354_v22 }
 0x1e5   :  { %v2362_v33 = vadd.f32 %v2085_v12, %v2084_v6  ;;  %v1754_v30 = vadd.f32 %v1753_v61, %v6116_v11  ;;  %v6117_v21 = vld [vmem:[#allocation48_spill] sm:$0xff]  ;;  %v5075_v57 = vmul.f32 %v3037_v29, %v5072_v44  ;;  %v5080_v55 = vmul.f32 %v3039_v46, %v5077_v4  ;;  %v6121_v35 = vld [vmem:[#allocation93_spill] sm:$0xff]  ;;  %v6122_v3 = vld [vmem:[#allocation50_spill] sm:$0xff] }
 0x1e6   :  { %v1759_v59 = vadd.f32 %v1758_v1, %v6117_v21  ;;  %v2212_v14 = vmul.f32 %v6118_v41, %v1956_v60  ;;  %v2213_v25 = vmul.f32 %v6119_v42, %v1957_v24  ;;  %v6120_v26 = vld [vmem:[#allocation64_spill] sm:$0xff]  ;;  %v2518_v0 = vadd.f32 %v2517_v23, %v2210_v51  ;;  %v3044_v6 = vld [vmem:[#allocation2 + $0x2b8] sm:$0xff]  ;;  %v5097_v34 = vld [vmem:[#allocation2 + $0x750] sm:$0xff] }
 0x1e7   :  { %v2211_v50 = vmul.f32 %v6120_v26, %v1955_v9  ;;  %v5086_v37 = vadd.f32 %v1754_v30, %v6121_v35  ;;  %v5091_v2 = vld [vmem:[#allocation2 + $0x740] sm:$0xff]  ;;  %v5094_v16 = vld [vmem:[#allocation2 + $0x748] sm:$0xff]  ;;  %v2514_v24 = vadd.f32 %v2513_v58, %v2207_v32  ;;  %v2083_v45 = vmul.f32 %v3044_v6, %v1955_v9  ;;  %2510 = vadd.xlane.f32.xlu0 %v2509_v36  ;;  %v3045_v51 = vld [vmem:[#allocation2 + $0x2d8] sm:$0xff]  ;;  %v1612_v9 = vpop.xlane.xlu1 %1611  ;;  %v1607_v26 = vpop.xlane.xlu0 %1606 }
 0x1e8   :  { %v5089_v15 = vadd.f32 %v1759_v59, %v6122_v3  ;;  %v3041_v40 = vld [vmem:[#allocation5 + $0x740] sm:$0xff]  ;;  %v3043_v54 = vld [vmem:[#allocation5 + $0x748] sm:$0xff]  ;;  %v1816_v27 = vadd.f32 %v1815_v18, %v1597_v56  ;;  %v2358_v10 = vadd.f32 %v2357_v39, %v2082_v38  ;;  %v2087_v17 = vmul.f32 %v3045_v51, %v1959_v48  ;;  %v3047_v28 = vld [vmem:[#allocation5 + $0x750] sm:$0xff]  ;;  %1741 = vadd.xlane.f32.xlu1 %v5033_v52 }
 0x1e9   :  { %v1449_v19 = vmul.f32 %v3041_v40, %v5091_v2  ;;  %v1450_v60 = vmul.f32 %v3043_v54, %v5094_v16  ;;  %v1960_v12 = vld [vmem:[#allocation5 + $0xae0] sm:$0xff]  ;;  %v1961_v63 = vld [vmem:[#allocation5 + $0xae8] sm:$0xff]  ;;  %v2363_v23 = vadd.f32 %v2362_v33, %v2086_v53  ;;  %v1451_v61 = vmul.f32 %v3047_v28, %v5097_v34  ;;  %v5100_v49 = vld [vmem:[#allocation2 + $0x758] sm:$0xff] }
 0x1ea   :  { %v3049_v22 = vld [vmem:[#allocation5 + $0x758] sm:$0xff]  ;;  %v2522_v58 = vadd.f32 %v2213_v25, %v2212_v14  ;;  %v2519_v36 = vadd.f32 %v2518_v0, %v2211_v50  ;;  %v1817_v47 = vadd.f32 %v1816_v27, %v1602_v62  ;;  %v1962_v38 = vld [vmem:[#allocation5 + $0xaf0] sm:$0xff]  ;;  %v3050_v39 = vld [vmem:[#allocation2 + $0x6e0] sm:$0xff]  ;;  %v2359_v41 = vadd.f32 %v2358_v10, %v2083_v45 }
 0x1eb   :  { %v1452_v32 = vmul.f32 %v3049_v22, %v5100_v49  ;;  %v6123_v43 = vld [vmem:[#allocation74_spill] sm:$0xff]  ;;  %v2216_v13 = vmul.f32 %v3050_v39, %v1960_v12  ;;  %v3051_v53 = vld [vmem:[#allocation2 + $0x6e8] sm:$0xff]  ;;  %v3052_v33 = vld [vmem:[#allocation2 + $0x2e0] sm:$0xff]  ;;  %v1763_v29 = vadd.f32 %v1450_v60, %v1449_v19  ;;  %2515 = vadd.xlane.f32.xlu0 %v2514_v24  ;;  %v2364_v62 = vadd.f32 %v2363_v23, %v2087_v17 }
 0x1ec   :  { %v2214_v1 = vmul.f32 %v6123_v43, %v5062_v31  ;;  %v2217_v18 = vmul.f32 %v3051_v53, %v1961_v63  ;;  %v2088_v11 = vmul.f32 %v3052_v33, %v1960_v12  ;;  %v3053_v30 = vld [vmem:[#allocation2 + $0x2e8] sm:$0xff]  ;;  %v5106_v59 = vld [vmem:[#allocation5 + $0xb00] sm:$0xff]  ;;  %v3054_v14 = vld [vmem:[#allocation2 + $0x6d8] sm:$0xff]  ;;  %v1818_v40 = vadd.f32 %v1817_v47, %v1607_v26  ;;  %2520 = vadd.xlane.f32.xlu1 %v2519_v36 }
 0x1ed   :  { %v2089_v21 = vmul.f32 %v3053_v30, %v1961_v63  ;;  %v6124_v46 = vld [vmem:[#allocation100_spill] sm:$0xff]  ;;  %v2215_v42 = vmul.f32 %v3054_v14, %v1959_v48  ;;  %v3055_v52 = vld [vmem:[#allocation2 + $0x6f0] sm:$0xff]  ;;  %v1764_v35 = vadd.f32 %v1763_v29, %v1451_v61  ;;  %v1963_v24 = vld [vmem:[#allocation5 + $0xaf8] sm:$0xff] }
 0x1ee   :  { %v1768_v31 = vadd.f32 %v5060_v20, %v6124_v46  ;;  %v5110_v25 = vld [vmem:[#allocation5 + $0xb08] sm:$0xff]  ;;  %v2523_v50 = vadd.f32 %v2522_v58, %v2214_v1  ;;  %v2218_v0 = vmul.f32 %v3055_v52, %v1962_v38  ;;  %v2527_v54 = vadd.f32 %v2217_v18, %v2216_v13  ;;  %v3056_v19 = vld [vmem:[#allocation2 + $0x2f0] sm:$0xff]  ;;  %v3057_v56 = vld [vmem:[#allocation2 + $0x300] sm:$0xff] }
 0x1ef   :  { %v2090_v60 = vmul.f32 %v3056_v19, %v1962_v38  ;;  %v2092_v20 = vmul.f32 %v3057_v56, %v5106_v59  ;;  %v2367_v6 = vadd.f32 %v2089_v21, %v2088_v11  ;;  %v3058_v48 = vld [vmem:[#allocation2 + $0x308] sm:$0xff]  ;;  %v5115_v12 = vadd.f32 %v1764_v35, %v1452_v32  ;;  %v5120_v27 = vld [vmem:[#allocation2 + $0x7a0] sm:$0xff]  ;;  %2360 = vadd.xlane.f32.xlu0 %v2359_v41  ;;  %v1622_v32 = vpop.xlane.xlu1 %1621  ;;  %v5132_v47 = vld [vmem:[#allocation2 + $0x7b0] sm:$0xff]  ;;  %v1617_v35 = vpop.xlane.xlu0 %1616 }
 0x1f0   :  { %v1769_v3 = vadd.f32 %v1768_v31, %v5075_v57  ;;  %v2093_v45 = vmul.f32 %v3058_v48, %v5110_v25  ;;  %v3060_v57 = vld [vmem:[#allocation5 + $0x7a0] sm:$0xff]  ;;  %v5126_v28 = vld [vmem:[#allocation2 + $0x788] sm:$0xff]  ;;  %v1819_v43 = vadd.f32 %v1818_v40, %v1612_v9  ;;  %v3068_v38 = vld [vmem:[#allocation5 + $0x7b0] sm:$0xff]  ;;  %v2524_v46 = vadd.f32 %v2523_v50, %v2215_v42  ;;  %2365 = vadd.xlane.f32.xlu1 %v2364_v62 }
 0x1f1   :  { %v1461_v10 = vmul.f32 %v3060_v57, %v5120_v27  ;;  %v5123_v51 = vld [vmem:[#allocation2 + $0x780] sm:$0xff]  ;;  %v3064_v61 = vld [vmem:[#allocation5 + $0x788] sm:$0xff]  ;;  %v1463_v39 = vmul.f32 %v3068_v38, %v5132_v47  ;;  %v5135_v13 = vld [vmem:[#allocation2 + $0x7b8] sm:$0xff]  ;;  %v2528_v14 = vadd.f32 %v2527_v54, %v2218_v0  ;;  %v2368_v19 = vadd.f32 %v2367_v6, %v2090_v60 }
 0x1f2   :  { %v5118_v63 = vadd.f32 %v1769_v3, %v5080_v55  ;;  %v3062_v17 = vld [vmem:[#allocation5 + $0x780] sm:$0xff]  ;;  %v1458_v22 = vmul.f32 %v3064_v61, %v5126_v28  ;;  %v1966_v55 = vld [vmem:[#allocation5 + $0xb10] sm:$0xff]  ;;  %v5129_v1 = vld [vmem:[#allocation2 + $0x7a8] sm:$0xff]  ;;  %v1820_v61 = vadd.f32 %v1819_v43, %v1617_v35 }
 0x1f3   :  { %v1457_v23 = vmul.f32 %v3062_v17, %v5123_v51  ;;  %v3066_v58 = vld [vmem:[#allocation5 + $0x7a8] sm:$0xff]  ;;  %v3070_v53 = vld [vmem:[#allocation5 + $0x7b8] sm:$0xff]  ;;  %v5138_v33 = vld [vmem:[#allocation2 + $0x790] sm:$0xff]  ;;  %v2372_v17 = vadd.f32 %v2093_v45, %v2092_v20  ;;  %1746 = vadd.xlane.f32.xlu0 %v5049_v7  ;;  %v1632_v7 = vpop.xlane.xlu1 %1631 }
 0x1f4   :  { %v1462_v36 = vmul.f32 %v3066_v58, %v5129_v1  ;;  %v1464_v18 = vmul.f32 %v3070_v53, %v5135_v13  ;;  %v3072_v11 = vld [vmem:[#allocation5 + $0x790] sm:$0xff]  ;;  %v5141_v30 = vld [vmem:[#allocation2 + $0x798] sm:$0xff]  ;;  %v1968_v26 = vld [vmem:[#allocation5 + $0xb20] sm:$0xff]  ;;  %v1821_v43 = vadd.f32 %v1820_v61, %v1622_v32  ;;  %1751 = vadd.xlane.f32.xlu1 %v5052_v8 }
 0x1f5   :  { %v1459_v9 = vmul.f32 %v3072_v11, %v5138_v33  ;;  %v3074_v21 = vld [vmem:[#allocation5 + $0x798] sm:$0xff]  ;;  %v1969_v52 = vld [vmem:[#allocation5 + $0xb28] sm:$0xff]  ;;  %v3077_v48 = vld [vmem:[#allocation2 + $0x310] sm:$0xff]  ;;  %v1773_v54 = vadd.f32 %v1458_v22, %v1457_v23 }
 0x1f6   :  { %v1460_v29 = vmul.f32 %v3074_v21, %v5141_v30  ;;  %v3075_v31 = vld [vmem:[#allocation2 + $0x6f8] sm:$0xff]  ;;  %v2094_v57 = vmul.f32 %v3077_v48, %v1966_v55  ;;  %v6126_v50 = vld [vmem:[#allocation13_spill] sm:$0xff]  ;;  %v5149_v38 = vld [vmem:[#allocation2 + $0x7e0] sm:$0xff]  ;;  %v1778_v45 = vadd.f32 %v1462_v36, %v1461_v10 }
 0x1f7   :  { %v2219_v41 = vmul.f32 %v3075_v31, %v1963_v24  ;;  %v3076_v3 = vld [vmem:[#allocation2 + $0x2f8] sm:$0xff]  ;;  %v2221_v0 = vmul.f32 %v6126_v50, %v5110_v25  ;;  %v3079_v62 = vld [vmem:[#allocation5 + $0x7e0] sm:$0xff]  ;;  %v3081_v53 = vld [vmem:[#allocation2 + $0x728] sm:$0xff]  ;;  %v1774_v35 = vadd.f32 %v1773_v54, %v1459_v9  ;;  %2525 = vadd.xlane.f32.xlu0 %v2524_v46 }
 0x1f8   :  { %v2091_v40 = vmul.f32 %v3076_v3, %v1963_v24  ;;  %v1967_v56 = vld [vmem:[#allocation5 + $0xb18] sm:$0xff]  ;;  %v5152_v24 = vmul.f32 %v3079_v62, %v5149_v38  ;;  %v3080_v60 = vld [vmem:[#allocation2 + $0x720] sm:$0xff]  ;;  %v2225_v20 = vmul.f32 %v3081_v53, %v1969_v52  ;;  %v1970_v31 = vld [vmem:[#allocation5 + $0xb30] sm:$0xff]  ;;  %v2373_v23 = vadd.f32 %v2372_v17, %v2094_v57 }
 0x1f9   :  { %v6125_v58 = vld [vmem:[#allocation83_spill] sm:$0xff]  ;;  %v2224_v6 = vmul.f32 %v3080_v60, %v1968_v26  ;;  %v2529_v11 = vadd.f32 %v2528_v14, %v2219_v41  ;;  %v1779_v50 = vadd.f32 %v1778_v45, %v1463_v39  ;;  %v3084_v41 = vld [vmem:[#allocation2 + $0x328] sm:$0xff]  ;;  %v5160_v61 = vadd.f32 %v1774_v35, %v1460_v29 }
 0x1fa   :  { %v2220_v42 = vmul.f32 %v6125_v58, %v5106_v59  ;;  %v3082_v21 = vld [vmem:[#allocation2 + $0x318] sm:$0xff]  ;;  %v2369_v25 = vadd.f32 %v2368_v19, %v2091_v40  ;;  %v5156_v48 = vld [vmem:[#allocation5 + $0xb40] sm:$0xff]  ;;  %v5158_v58 = vld [vmem:[#allocation5 + $0xb48] sm:$0xff]  ;;  %v2097_v14 = vmul.f32 %v3084_v41, %v1969_v52  ;;  %v1627_v19 = vpop.xlane.xlu0 %1626  ;;  %v1642_v41 = vpop.xlane.xlu1 %1641 }
 0x1fb   :  { %v2095_v59 = vmul.f32 %v3082_v21, %v1967_v56  ;;  %v6127_v22 = vld [vmem:[#allocation87_spill] sm:$0xff]  ;;  %v2537_v17 = vadd.f32 %v2225_v20, %v2224_v6  ;;  %v5166_v54 = vadd.f32 %v1779_v50, %v1464_v18  ;;  %v5168_v39 = vld [vmem:[#allocation2 + $0x7c8] sm:$0xff]  ;;  %v5176_v18 = vld [vmem:[#allocation2 + $0x7d0] sm:$0xff]  ;;  %2530 = vadd.xlane.f32.xlu1 %v2529_v11 }
 0x1fc   :  { %v2222_v3 = vmul.f32 %v6127_v22, %v1966_v55  ;;  %v2532_v10 = vadd.f32 %v2221_v0, %v2220_v42  ;;  %v3083_v36 = vld [vmem:[#allocation2 + $0x320] sm:$0xff]  ;;  %v3088_v46 = vld [vmem:[#allocation5 + $0x7c8] sm:$0xff]  ;;  %v1822_v42 = vadd.f32 %v1821_v43, %v1627_v19  ;;  %v1971_v52 = vld [vmem:[#allocation5 + $0xb38] sm:$0xff]  ;;  %2370 = vadd.xlane.f32.xlu0 %v2369_v25 }
 0x1fd   :  { %v2096_v32 = vmul.f32 %v3083_v36, %v1968_v26  ;;  %v5162_v9 = vld [vmem:[#allocation2 + $0x7c0] sm:$0xff]  ;;  %v1466_v26 = vmul.f32 %v3088_v46, %v5168_v39  ;;  %v3090_v62 = vld [vmem:[#allocation2 + $0x348] sm:$0xff]  ;;  %v3094_v20 = vld [vmem:[#allocation5 + $0x7d0] sm:$0xff]  ;;  %v2374_v35 = vadd.f32 %v2373_v23, %v2095_v59 }
 0x1fe   :  { %v3086_v8 = vld [vmem:[#allocation5 + $0x7c0] sm:$0xff]  ;;  %v2101_v60 = vmul.f32 %v3090_v62, %v5158_v58  ;;  %v5173_v53 = vld [vmem:[#allocation2 + $0x7e8] sm:$0xff]  ;;  %v1467_v21 = vmul.f32 %v3094_v20, %v5176_v18  ;;  %v1974_v50 = vld [vmem:[#allocation5 + $0xb50] sm:$0xff]  ;;  %v5180_v36 = vadd.f32 %v1822_v42, %v1632_v7 }
 0x1ff   :  { %v1465_v40 = vmul.f32 %v3086_v8, %v5162_v9  ;;  %v6128_v55 = vld [vmem:[#allocation71_spill] sm:$0xff]  ;;  %6129 = vst [vmem:[#allocation89_spill] sm:$0xff] %v5173_v53  ;;  %v3092_v45 = vld [vmem:[#allocation5 + $0x7e8] sm:$0xff]  ;;  %v2533_v8 = vadd.f32 %v2532_v10, %v2222_v3  ;;  %v3095_v19 = vld [vmem:[#allocation2 + $0x330] sm:$0xff]  ;;  %v2377_v46 = vadd.f32 %v2097_v14, %v2096_v32  ;;  %2375 = vadd.xlane.f32.xlu1 %v2374_v35 }
 0x200   :  { %v2226_v57 = vmul.f32 %v6128_v55, %v1970_v31  ;;  %v3089_v29 = vld [vmem:[#allocation2 + $0x340] sm:$0xff]  ;;  %v1470_v6 = vmul.f32 %v3092_v45, %v5173_v53  ;;  %6131 = vst [vmem:[#allocation78_spill] sm:$0xff] %v5180_v36  ;;  %v2098_v55 = vmul.f32 %v3095_v19, %v1970_v31  ;;  %v3097_v62 = vld [vmem:[#allocation5 + $0x7f0] sm:$0xff]  ;;  %v5185_v53 = vld [vmem:[#allocation2 + $0x7d8] sm:$0xff]  ;;  %1756 = vadd.xlane.f32.xlu0 %v5086_v37 }
 0x201   :  { %v2100_v0 = vmul.f32 %v3089_v29, %v5156_v48  ;;  %v6130_v43 = vld [vmem:[#allocation91_spill] sm:$0xff]  ;;  %v5182_v29 = vld [vmem:[#allocation2 + $0x7f0] sm:$0xff]  ;;  %v1783_v32 = vadd.f32 %v1466_v26, %v1465_v40 }
 0x202   :  { %v2223_v22 = vmul.f32 %v6130_v43, %v1967_v56  ;;  %v1471_v45 = vmul.f32 %v3097_v62, %v5182_v29  ;;  %v3099_v11 = vld [vmem:[#allocation5 + $0x7d8] sm:$0xff]  ;;  %v1637_v56 = vpop.xlane.xlu0 %1636  ;;  %v2538_v42 = vadd.f32 %v2537_v17, %v2226_v57  ;;  %v3101_v3 = vld [vmem:[#allocation2 + $0x350] sm:$0xff]  ;;  %v2228_v62 = vmul.f32 %v5091_v2, %v5156_v48  ;;  %v1652_v17 = vpop.xlane.xlu1 %1651 }
 0x203   :  { %v1468_v59 = vmul.f32 %v3099_v11, %v5185_v53  ;;  %v3100_v23 = vld [vmem:[#allocation2 + $0x738] sm:$0xff]  ;;  %v1830_v25 = vadd.f32 %v1642_v41, %v1637_v56  ;;  %v2102_v10 = vmul.f32 %v3101_v3, %v1974_v50  ;;  %v2382_v31 = vadd.f32 %v2101_v60, %v2100_v0  ;;  %v1976_v60 = vld [vmem:[#allocation5 + $0xb60] sm:$0xff]  ;;  %v1977_v56 = vld [vmem:[#allocation5 + $0xb68] sm:$0xff]  ;;  %1761 = vadd.xlane.f32.xlu1 %v5089_v15 }
 0x204   :  { %v2227_v7 = vmul.f32 %v3100_v23, %v1971_v52  ;;  %v1975_v20 = vld [vmem:[#allocation5 + $0xb58] sm:$0xff]  ;;  %v2229_v11 = vmul.f32 %v5094_v16, %v5158_v58  ;;  %v1788_v57 = vadd.f32 %v1470_v6, %v5152_v24  ;;  %v2534_v41 = vadd.f32 %v2533_v8, %v2223_v22  ;;  %v1978_v58 = vld [vmem:[#allocation5 + $0xb70] sm:$0xff] }
 0x205   :  { %v5188_v14 = vld [vmem:[#allocation2 + $0x7f8] sm:$0xff]  ;;  %v2378_v26 = vadd.f32 %v2377_v46, %v2098_v55  ;;  %v1784_v23 = vadd.f32 %v1783_v32, %v1467_v21  ;;  %v2230_v16 = vmul.f32 %v5097_v34, %v1974_v50  ;;  %v2233_v22 = vmul.f32 %v5057_v5, %v1977_v56  ;;  %v1980_v50 = vld [vmem:[#allocation5 + $0xb80] sm:$0xff] }
 0x206   :  { %6132 = vst [vmem:[#allocation79_spill] sm:$0xff] %v5188_v14  ;;  %v3103_v43 = vld [vmem:[#allocation5 + $0x7f8] sm:$0xff]  ;;  %v1647_v3 = vpop.xlane.xlu0 %1646  ;;  %v2539_v35 = vadd.f32 %v2538_v42, %v2227_v7  ;;  %v1789_v2 = vadd.f32 %v1788_v57, %v1471_v45  ;;  %v2542_v37 = vadd.f32 %v2229_v11, %v2228_v62  ;;  %2535 = vadd.xlane.f32.xlu0 %v2534_v41  ;;  %v1662_v8 = vpop.xlane.xlu1 %1661  ;;  %v3106_v45 = vld [vmem:[#allocation2 + $0x360] sm:$0xff]  ;;  %v3107_v42 = vld [vmem:[#allocation2 + $0x368] sm:$0xff] }
 0x207   :  { %v1472_v19 = vmul.f32 %v3103_v43, %v5188_v14  ;;  %v3104_v0 = vld [vmem:[#allocation2 + $0x338] sm:$0xff]  ;;  %v1831_v48 = vadd.f32 %v1830_v25, %v1647_v3  ;;  %v2383_v14 = vadd.f32 %v2382_v31, %v2102_v10  ;;  %v5198_v24 = vadd.f32 %v1784_v23, %v1468_v59  ;;  %v1981_v59 = vld [vmem:[#allocation5 + $0xb88] sm:$0xff]  ;;  %v3108_v11 = vld [vmem:[#allocation2 + $0x380] sm:$0xff] }
 0x208   :  { %v2099_v40 = vmul.f32 %v3104_v0, %v1971_v52  ;;  %v3105_v43 = vld [vmem:[#allocation2 + $0x358] sm:$0xff]  ;;  %v2104_v7 = vmul.f32 %v3106_v45, %v1976_v60  ;;  %v2105_v34 = vmul.f32 %v3107_v42, %v1977_v56  ;;  %v2231_v31 = vmul.f32 %v5100_v49, %v1975_v20  ;;  %2540 = vadd.xlane.f32.xlu1 %v2539_v35  ;;  %v1982_v23 = vld [vmem:[#allocation5 + $0xb90] sm:$0xff] }
 0x209   :  { %v2103_v36 = vmul.f32 %v3105_v43, %v1975_v20  ;;  %v6133_v52 = vld [vmem:[#allocation94_spill] sm:$0xff]  ;;  %v5203_v21 = vadd.f32 %v1789_v2, %v1472_v19  ;;  %v1832_v55 = vadd.f32 %v1831_v48, %v1652_v17  ;;  %v2234_v32 = vmul.f32 %v5072_v44, %v1978_v58  ;;  %v3109_v17 = vld [vmem:[#allocation2 + $0x388] sm:$0xff] }
 0x20a   :  { %v2232_v6 = vmul.f32 %v6133_v52, %v1976_v60  ;;  %v2379_v46 = vadd.f32 %v2378_v26, %v2099_v40  ;;  %v1657_v25 = vpop.xlane.xlu0 %1656  ;;  %v2543_v5 = vadd.f32 %v2542_v37, %v2230_v16  ;;  %v1979_v19 = vld [vmem:[#allocation5 + $0xb78] sm:$0xff]  ;;  %v2108_v57 = vmul.f32 %v3108_v11, %v1980_v50  ;;  %v1672_v0 = vpop.xlane.xlu1 %1671  ;;  %v3110_v26 = vld [vmem:[#allocation2 + $0x370] sm:$0xff]  ;;  %v1984_v37 = vld [vmem:[#allocation5 + $0xba0] sm:$0xff] }
 0x20b   :  { %v1833_v15 = vadd.f32 %v1832_v55, %v1657_v25  ;;  %v2384_v10 = vadd.f32 %v2383_v14, %v2103_v36  ;;  %v2109_v41 = vmul.f32 %v3109_v17, %v1981_v59  ;;  %v2106_v60 = vmul.f32 %v3110_v26, %v1978_v58  ;;  %v3111_v44 = vld [vmem:[#allocation2 + $0x378] sm:$0xff]  ;;  %v3112_v2 = vld [vmem:[#allocation2 + $0x390] sm:$0xff]  ;;  %v1985_v52 = vld [vmem:[#allocation5 + $0xba8] sm:$0xff] }
 0x20c   :  { %v2547_v62 = vadd.f32 %v2233_v22, %v2232_v6  ;;  %2380 = vadd.xlane.f32.xlu0 %v2379_v46  ;;  %v2387_v56 = vadd.f32 %v2105_v34, %v2104_v7  ;;  %v2235_v49 = vmul.f32 %v5077_v4, %v1979_v19  ;;  %v2107_v20 = vmul.f32 %v3111_v44, %v1979_v19  ;;  %v1983_v43 = vld [vmem:[#allocation5 + $0xb98] sm:$0xff]  ;;  %v1986_v42 = vld [vmem:[#allocation5 + $0xbb0] sm:$0xff] }
 0x20d   :  { %v1834_v40 = vadd.f32 %v1833_v15, %v1662_v8  ;;  %2385 = vadd.xlane.f32.xlu1 %v2384_v10  ;;  %v2544_v3 = vadd.f32 %v2543_v5, %v2231_v31  ;;  %v2110_v48 = vmul.f32 %v3112_v2, %v1982_v23  ;;  %v2392_v16 = vadd.f32 %v2109_v41, %v2108_v57  ;;  %v3113_v45 = vld [vmem:[#allocation2 + $0x398] sm:$0xff]  ;;  %v3114_v10 = vld [vmem:[#allocation2 + $0x3a0] sm:$0xff] }
 0x20e   :  { %v1667_v36 = vpop.xlane.xlu0 %1666  ;;  %v2548_v35 = vadd.f32 %v2547_v62, %v2234_v32  ;;  %v1682_v58 = vpop.xlane.xlu1 %1681  ;;  %v2388_v22 = vadd.f32 %v2387_v56, %v2106_v60  ;;  %v2236_v8 = vmul.f32 %v5123_v51, %v1980_v50  ;;  %v2237_v4 = vmul.f32 %v5126_v28, %v1981_v59  ;;  %v3115_v32 = vld [vmem:[#allocation2 + $0x3a8] sm:$0xff]  ;;  %v1988_v51 = vld [vmem:[#allocation5 + $0xbc0] sm:$0xff]  ;;  %v3118_v56 = vld [vmem:[#allocation2 + $0x3b0] sm:$0xff] }
 0x20f   :  { %v1835_v14 = vadd.f32 %v1834_v40, %v1667_v36  ;;  %v2111_v7 = vmul.f32 %v3113_v45, %v1983_v43  ;;  %v2240_v34 = vmul.f32 %v5120_v27, %v1984_v37  ;;  %v2241_v25 = vmul.f32 %v5129_v1, %v1985_v52  ;;  %v1989_v50 = vld [vmem:[#allocation5 + $0xbc8] sm:$0xff]  ;;  %v3116_v41 = vld [vmem:[#allocation2 + $0x3c0] sm:$0xff] }
 0x210   :  { %1766 = vadd.xlane.f32.xlu0 %v5115_v12  ;;  %v2549_v15 = vadd.f32 %v2548_v35, %v2235_v49  ;;  %v2393_v12 = vadd.f32 %v2392_v16, %v2110_v48  ;;  %v2112_v31 = vmul.f32 %v3114_v10, %v1984_v37  ;;  %v2113_v5 = vmul.f32 %v3115_v32, %v1985_v52  ;;  %v3117_v40 = vld [vmem:[#allocation2 + $0x3c8] sm:$0xff]  ;;  %v1990_v49 = vld [vmem:[#allocation5 + $0xbd0] sm:$0xff]  ;;  %v3120_v52 = vld [vmem:[#allocation2 + $0x3b8] sm:$0xff] }
 0x211   :  { %v1836_v6 = vadd.f32 %v1835_v14, %v1672_v0  ;;  %1771 = vadd.xlane.f32.xlu1 %v5118_v63  ;;  %v2389_v19 = vadd.f32 %v2388_v22, %v2107_v20  ;;  %v2238_v62 = vmul.f32 %v5138_v33, %v1982_v23  ;;  %v2552_v11 = vadd.f32 %v2237_v4, %v2236_v8  ;;  %v1987_v63 = vld [vmem:[#allocation5 + $0xbb8] sm:$0xff]  ;;  %v3119_v48 = vld [vmem:[#allocation2 + $0x3d0] sm:$0xff] }
 0x212   :  { %v1677_v55 = vpop.xlane.xlu0 %1676  ;;  %v1692_v28 = vpop.xlane.xlu1 %1691  ;;  %v2242_v1 = vmul.f32 %v5132_v47, %v1986_v42  ;;  %v2557_v17 = vadd.f32 %v2241_v25, %v2240_v34  ;;  %v2116_v0 = vmul.f32 %v3116_v41, %v1988_v51  ;;  %v2117_v26 = vmul.f32 %v3117_v40, %v1989_v50  ;;  %v1991_v22 = vld [vmem:[#allocation5 + $0xbd8] sm:$0xff]  ;;  %v3124_v41 = vld [vmem:[#allocation2 + $0x3f0] sm:$0xff] }
 0x213   :  { %v1837_v46 = vadd.f32 %v1836_v6, %v1677_v55  ;;  %v2394_v60 = vadd.f32 %v2393_v12, %v2111_v7  ;;  %v2114_v36 = vmul.f32 %v3118_v56, %v1986_v42  ;;  %v2397_v14 = vadd.f32 %v2113_v5, %v2112_v31  ;;  %v3121_v34 = vld [vmem:[#allocation2 + $0x3d8] sm:$0xff]  ;;  %v6134_v31 = vld [vmem:[#allocation89_spill] sm:$0xff] }
 0x214   :  { %2545 = vadd.xlane.f32.xlu0 %v2544_v3  ;;  %v2239_v23 = vmul.f32 %v5141_v30, %v1983_v43  ;;  %v2553_v20 = vadd.f32 %v2552_v11, %v2238_v62  ;;  %v2243_v3 = vmul.f32 %v5135_v13, %v1987_v63  ;;  %v2558_v2 = vadd.f32 %v2557_v17, %v2242_v1  ;;  %v1992_v13 = vld [vmem:[#allocation5 + $0xbe0] sm:$0xff]  ;;  %v1995_v17 = vld [vmem:[#allocation5 + $0xbf8] sm:$0xff] }
 0x215   :  { %v1838_v59 = vadd.f32 %v1837_v46, %v1682_v58  ;;  %2550 = vadd.xlane.f32.xlu1 %v2549_v15  ;;  %v2118_v16 = vmul.f32 %v3119_v48, %v1990_v49  ;;  %v2402_v37 = vadd.f32 %v2117_v26, %v2116_v0  ;;  %v2115_v58 = vmul.f32 %v3120_v52, %v1987_v63  ;;  %v1993_v46 = vld [vmem:[#allocation5 + $0xbe8] sm:$0xff]  ;;  %v6135_v56 = vld [vmem:[#allocation79_spill] sm:$0xff] }
 0x216   :  { %v1687_v27 = vpop.xlane.xlu0 %1686  ;;  %v1702_v44 = vpop.xlane.xlu1 %1701  ;;  %v2398_v6 = vadd.f32 %v2397_v14, %v2114_v36  ;;  %v2554_v55 = vadd.f32 %v2553_v20, %v2239_v23  ;;  %v2244_v30 = vmul.f32 %v5162_v9, %v1988_v51  ;;  %v2245_v43 = vmul.f32 %v5168_v39, %v1989_v50  ;;  %v1994_v51 = vld [vmem:[#allocation5 + $0xbf0] sm:$0xff]  ;;  %v3122_v50 = vld [vmem:[#allocation2 + $0x3e0] sm:$0xff] }
 0x217   :  { %v1839_v57 = vadd.f32 %v1838_v59, %v1687_v27  ;;  %v2559_v42 = vadd.f32 %v2558_v2, %v2243_v3  ;;  %v2119_v25 = vmul.f32 %v3121_v34, %v1991_v22  ;;  %v2403_v15 = vadd.f32 %v2402_v37, %v2118_v16  ;;  %v3123_v59 = vld [vmem:[#allocation2 + $0x3e8] sm:$0xff] }
 0x218   :  { %2390 = vadd.xlane.f32.xlu0 %v2389_v19  ;;  %v2399_v12 = vadd.f32 %v2398_v6, %v2115_v58  ;;  %v2248_v10 = vmul.f32 %v5149_v38, %v1992_v13  ;;  %v2249_v32 = vmul.f32 %v6134_v31, %v1993_v46  ;;  %v2562_v5 = vadd.f32 %v2245_v43, %v2244_v30  ;;  %v6136_v30 = vld [vmem:[#allocation21_spill] sm:$0xff]  ;;  %v6137_v43 = vld [vmem:[#allocation23_spill] sm:$0xff] }
 0x219   :  { %v1840_v33 = vadd.f32 %v1839_v57, %v1692_v28  ;;  %2395 = vadd.xlane.f32.xlu1 %v2394_v60  ;;  %v2120_v28 = vmul.f32 %v3122_v50, %v1992_v13  ;;  %v2121_v19 = vmul.f32 %v3123_v59, %v1993_v46  ;;  %v2247_v27 = vmul.f32 %v5185_v53, %v1991_v22  ;;  %v6143_v50 = vld [vmem:[#allocation22_spill] sm:$0xff] }
 0x21a   :  { %v1697_v47 = vpop.xlane.xlu0 %1696  ;;  %v1712_v8 = vpop.xlane.xlu1 %1711  ;;  %v2567_v38 = vadd.f32 %v2249_v32, %v2248_v10  ;;  %v2122_v0 = vmul.f32 %v3124_v41, %v1994_v51  ;;  %v2251_v36 = vmul.f32 %v6135_v56, %v1995_v17 }
 0x21b   :  { %v1841_v35 = vadd.f32 %v1840_v33, %v1697_v47  ;;  %v2407_v40 = vadd.f32 %v2121_v19, %v2120_v28 }
 0x21c   :  { %1776 = vadd.xlane.f32.xlu0 %v5160_v61  ;;  %v2246_v61 = vmul.f32 %v5176_v18, %v1990_v49  ;;  %v2250_v18 = vmul.f32 %v5182_v29, %v1994_v51 }
 0x21d   :  { %v1842_v4 = vadd.f32 %v1841_v35, %v1702_v44  ;;  %1781 = vadd.xlane.f32.xlu1 %v5166_v54  ;;  %v2404_v54 = vadd.f32 %v2403_v15, %v2119_v25  ;;  %v3125_v44 = vld [vmem:[#allocation2 + $0x3f8] sm:$0xff]  ;;  %v2408_v23 = vadd.f32 %v2407_v40, %v2122_v0  ;;  %v6140_v25 = vld [vmem:[#allocation17_spill] sm:$0xff]  ;;  %v6147_v40 = vld [vmem:[#allocation24_spill] sm:$0xff] }
 0x21e   :  { %v1707_v45 = vpop.xlane.xlu0 %1706  ;;  %v1722_v9 = vpop.xlane.xlu1 %1721  ;;  %v2563_v63 = vadd.f32 %v2562_v5, %v2246_v61  ;;  %v2568_v14 = vadd.f32 %v2567_v38, %v2250_v18  ;;  %v2123_v33 = vmul.f32 %v3125_v44, %v1995_v17  ;;  %v6141_v61 = vld [vmem:[#allocation20_spill] sm:$0xff]  ;;  %v6145_v18 = vld [vmem:[#allocation25_spill] sm:$0xff]  ;;  %v6146_v17 = vld [vmem:[#allocation19_spill] sm:$0xff] }
 0x21f   :  { %v1843_v7 = vadd.f32 %v1842_v4, %v1707_v45  ;;  %v6138_v45 = vld [vmem:[#allocation15_spill] sm:$0xff] }
 0x220   :  { %2555 = vadd.xlane.f32.xlu0 %v2554_v55  ;;  %v2564_v29 = vadd.f32 %v2563_v63, %v2247_v27  ;;  %v2569_v3 = vadd.f32 %v2568_v14, %v2251_v36  ;;  %v2409_v2 = vadd.f32 %v2408_v23, %v2123_v33  ;;  %v6148_v14 = vld [vmem:[#allocation55_spill] sm:$0xff] }
 0x221   :  { %v1844_v39 = vadd.f32 %v1843_v7, %v1712_v8  ;;  %2560 = vadd.xlane.f32.xlu1 %v2559_v42  ;;  %v6139_v7 = vld [vmem:[#allocation14_spill] sm:$0xff] }
 0x222   :  { %v1717_v62 = vpop.xlane.xlu0 %1716  ;;  %v1732_v1 = vpop.xlane.xlu1 %1731  ;;  %v1051_v42 = vadd.f32 %v6139_v7, %v6138_v45  ;;  %v6156_v7 = vld [vmem:[#allocation128_spill] sm:$0xff] }
 0x223   :  { %v1845_v11 = vadd.f32 %v1844_v39, %v1717_v62  ;;  %v6142_v39 = vld [vmem:[#allocation18_spill] sm:$0xff] }
 0x224   :  { %2400 = vadd.xlane.f32.xlu0 %v2399_v12  ;;  %v1052_v15 = vadd.f32 %v1051_v42, %v6140_v25  ;;  %v6157_v25 = vld [vmem:[#allocation46_spill] sm:$0xff] }
 0x225   :  { %v1846_v57 = vadd.f32 %v1845_v11, %v1722_v9  ;;  %2405 = vadd.xlane.f32.xlu1 %v2404_v54  ;;  %v6144_v11 = vld [vmem:[#allocation52_spill] sm:$0xff] }
 0x226   :  { %v1727_v26 = vpop.xlane.xlu0 %1726  ;;  %v2256_v53 = vpop.xlane.xlu1 %2255  ;;  %v1053_v5 = vadd.f32 %v1052_v15, %v6142_v39 }
 0x227   :  { %v1847_v60 = vadd.f32 %v1846_v57, %v1727_v26 }
 0x228   :  { %1786 = vadd.xlane.f32.xlu0 %v5198_v24  ;;  %v1054_v54 = vadd.f32 %v1053_v5, %v6144_v11  ;;  %v6160_v5 = vld [vmem:[#allocation123_spill] sm:$0xff] }
 0x229   :  { %v1848_v49 = vadd.f32 %v1847_v60, %v1732_v1  ;;  %1791 = vadd.xlane.f32.xlu1 %v5203_v21  ;;  %v1014_v21 = vadd.f32 %v6137_v43, %v6136_v30  ;;  %v6154_v30 = vld [vmem:[#allocation56_spill] sm:$0xff] }
 0x22a   :  { %v1737_v20 = vpop.xlane.xlu0 %1736  ;;  %v2416_v35 = vpop.xlane.xlu1 %2415  ;;  %v1055_v41 = vadd.f32 %v1054_v54, %v6146_v17  ;;  %v6165_v17 = vld [vmem:[#allocation62_spill] sm:$0xff] }
 0x22b   :  { %v5229_v47 = vadd.f32 %v1848_v49, %v1737_v20  ;;  %v1015_v10 = vadd.f32 %v1014_v21, %v6141_v61  ;;  %v6158_v61 = vld [vmem:[#allocation58_spill] sm:$0xff] }
 0x22c   :  { %2565 = vadd.xlane.f32.xlu0 %v2564_v29  ;;  %v6149_v29 = vld [vmem:[#allocation28_spill] sm:$0xff] }
 0x22d   :  { %2570 = vadd.xlane.f32.xlu1 %v2569_v3  ;;  %v1016_v28 = vadd.f32 %v1015_v10, %v6143_v50  ;;  %v6150_v3 = vld [vmem:[#allocation53_spill] sm:$0xff] }
 0x22e   :  { %v2261_v48 = vpop.xlane.xlu0 %2260  ;;  %v2266_v24 = vpop.xlane.xlu1 %2265 }
 0x22f   :  { %v2572_v16 = vadd.f32 %v2261_v48, %v2256_v53  ;;  %v1017_v38 = vadd.f32 %v1016_v28, %v6145_v18  ;;  %v1056_v53 = vadd.f32 %v1055_v41, %v6148_v14  ;;  %v6151_v48 = vld [vmem:[#allocation26_spill] sm:$0xff] }
 0x230   :  { %2410 = vadd.xlane.f32.xlu0 %v2409_v2  ;;  %v6161_v28 = vld [vmem:[#allocation54_spill] sm:$0xff] }
 0x231   :  { %v2573_v37 = vadd.f32 %v2572_v16, %v2266_v24  ;;  %v1018_v26 = vadd.f32 %v1017_v38, %v6147_v40  ;;  %v6166_v40 = vld [vmem:[#allocation27_spill] sm:$0xff] }
 0x232   :  { %v2421_v52 = vpop.xlane.xlu0 %2420  ;;  %v2271_v6 = vpop.xlane.xlu1 %2270 }
 0x233   :  { %v2609_v58 = vadd.f32 %v2421_v52, %v2416_v35  ;;  %v2574_v22 = vadd.f32 %v2573_v37, %v2271_v6  ;;  %v1019_v44 = vadd.f32 %v1018_v26, %v6149_v29  ;;  %v1057_v35 = vadd.f32 %v1056_v53, %v6150_v3  ;;  %v6152_v52 = vld [vmem:[#allocation57_spill] sm:$0xff]  ;;  %v6168_v53 = vld [vmem:[#allocation136_spill] sm:$0xff]  ;;  %v6170_v3 = vld [vmem:[#allocation130_spill] sm:$0xff] }
 0x235   :  { %v1020_v16 = vadd.f32 %v1019_v44, %v6151_v48  ;;  %v6169_v44 = vld [vmem:[#allocation72_spill] sm:$0xff]  ;;  %v6171_v48 = vld [vmem:[#allocation67_spill] sm:$0xff] }
 0x236   :  { %v2426_v8 = vpop.xlane.xlu0 %2425  ;;  %v2276_v55 = vpop.xlane.xlu1 %2275 }
 0x237   :  { %v2610_v4 = vadd.f32 %v2609_v58, %v2426_v8  ;;  %v2575_v13 = vadd.f32 %v2574_v22, %v2276_v55  ;;  %v1058_v58 = vadd.f32 %v1057_v35, %v6152_v52  ;;  %v6153_v22 = vld [vmem:[#allocation37_spill] sm:$0xff]  ;;  %v6172_v52 = vld [vmem:[#allocation35_spill] sm:$0xff] }
 0x238   :  { %v1021_v8 = vadd.f32 %v1020_v16, %v6153_v22  ;;  %v6173_v22 = vld [vmem:[#allocation85_spill] sm:$0xff] }
 0x239   :  { %v1059_v43 = vadd.f32 %v1058_v58, %v6154_v30 }
 0x23a   :  { %v2431_v46 = vpop.xlane.xlu0 %2430  ;;  %v2281_v12 = vpop.xlane.xlu1 %2280 }
 0x23b   :  { %v2611_v34 = vadd.f32 %v2610_v4, %v2431_v46  ;;  %v2576_v31 = vadd.f32 %v2575_v13, %v2281_v12  ;;  %v6155_v13 = vld [vmem:[#allocation32_spill] sm:$0xff]  ;;  %v1060_v42 = vadd.f32 %v1059_v43, %v6156_v7  ;;  %v6174_v43 = vld [vmem:[#allocation141_spill] sm:$0xff] }
 0x23c   :  { %v1022_v46 = vadd.f32 %v1021_v8, %v6155_v13  ;;  %v6175_v7 = vld [vmem:[#allocation77_spill] sm:$0xff] }
 0x23d   :  { %v1061_v10 = vadd.f32 %v1060_v42, %v6158_v61 }
 0x23e   :  { %v2436_v32 = vpop.xlane.xlu0 %2435  ;;  %v2286_v51 = vpop.xlane.xlu1 %2285  ;;  %v1023_v15 = vadd.f32 %v1022_v46, %v6157_v25 }
 0x23f   :  { %v2612_v9 = vadd.f32 %v2611_v34, %v2436_v32  ;;  %v2577_v59 = vadd.f32 %v2576_v31, %v2286_v51  ;;  %v6159_v32 = vld [vmem:[#allocation41_spill] sm:$0xff]  ;;  %v1062_v51 = vadd.f32 %v1061_v10, %v6160_v5 }
 0x242   :  { %v2441_v19 = vpop.xlane.xlu0 %2440  ;;  %v2291_v27 = vpop.xlane.xlu1 %2290 }
 0x243   :  { %v2613_v62 = vadd.f32 %v2612_v9, %v2441_v19  ;;  %v2578_v1 = vadd.f32 %v2577_v59, %v2291_v27  ;;  %v1024_v9 = vadd.f32 %v1023_v15, %v6159_v32  ;;  %v6163_v27 = vld [vmem:[#allocation49_spill] sm:$0xff]  ;;  %v6177_v32 = vld [vmem:[#allocation102_spill] sm:$0xff] }
 0x244   :  { %v6176_v15 = vld [vmem:[#allocation65_spill] sm:$0xff] }
 0x245   :  { %v1025_v59 = vadd.f32 %v1024_v9, %v6161_v28 }
 0x246   :  { %v2446_v57 = vpop.xlane.xlu0 %2445  ;;  %v2296_v0 = vpop.xlane.xlu1 %2295 }
 0x247   :  { %v2614_v63 = vadd.f32 %v2613_v62, %v2446_v57  ;;  %v2579_v60 = vadd.f32 %v2578_v1, %v2296_v0  ;;  %v6162_v62 = vld [vmem:[#allocation60_spill] sm:$0xff]  ;;  %v1026_v18 = vadd.f32 %v1025_v59, %v6163_v27  ;;  %v6164_v1 = vld [vmem:[#allocation61_spill] sm:$0xff] }
 0x248   :  { %v1063_v11 = vadd.f32 %v1062_v51, %v6162_v62  ;;  %v6178_v51 = vld [vmem:[#allocation38_spill] sm:$0xff]  ;;  %v6179_v62 = vld [vmem:[#allocation95_spill] sm:$0xff] }
 0x249   :  { %v1027_v41 = vadd.f32 %v1026_v18, %v6165_v17  ;;  %v6180_v18 = vld [vmem:[#allocation39_spill] sm:$0xff]  ;;  %v6181_v17 = vld [vmem:[#allocation120_spill] sm:$0xff] }
 0x24a   :  { %v2451_v56 = vpop.xlane.xlu0 %2450  ;;  %v2301_v49 = vpop.xlane.xlu1 %2300  ;;  %v1064_v57 = vadd.f32 %v1063_v11, %v6164_v1 }
 0x24b   :  { %v2615_v36 = vadd.f32 %v2614_v63, %v2451_v56  ;;  %v2580_v33 = vadd.f32 %v2579_v60, %v2301_v49  ;;  %v6167_v56 = vld [vmem:[#allocation59_spill] sm:$0xff] }
 0x24c   :  { %v1065_v26 = vadd.f32 %v1064_v57, %v6166_v40 }
 0x24e   :  { %v2456_v23 = vpop.xlane.xlu0 %2455  ;;  %v2306_v2 = vpop.xlane.xlu1 %2305  ;;  %v1066_v49 = vadd.f32 %v1065_v26, %v6168_v53  ;;  %v6182_v26 = vld [vmem:[#allocation75_spill] sm:$0xff]  ;;  %v6183_v53 = vld [vmem:[#allocation112_spill] sm:$0xff] }
 0x24f   :  { %v5246_v20 = vadd.f32 %v2615_v36, %v2456_v23  ;;  %v2581_v24 = vadd.f32 %v2580_v33, %v2306_v2  ;;  %v1028_v36 = vadd.f32 %v1027_v41, %v6167_v56 }
 0x250   :  { %v1067_v35 = vadd.f32 %v1066_v49, %v6170_v3 }
 0x251   :  { %v1029_v33 = vadd.f32 %v1028_v36, %v6169_v44 }
 0x252   :  { %v5250_v37 = vpop.xlane.xlu0 %2460  ;;  %v2311_v6 = vpop.xlane.xlu1 %2310  ;;  %v1068_v58 = vadd.f32 %v1067_v35, %v6172_v52  ;;  %v6184_v35 = vld [vmem:[#allocation80_spill] sm:$0xff]  ;;  %v6185_v52 = vld [vmem:[#allocation134_spill] sm:$0xff] }
 0x253   :  { %v5254_v4 = vadd.f32 %v2581_v24, %v2311_v6  ;;  %v1030_v16 = vadd.f32 %v1029_v33, %v6171_v48  ;;  %v2617_v44 = vadd.f32 %v5246_v20, %v5250_v37 }
 0x254   :  { %v1069_v13 = vadd.f32 %v1068_v58, %v6174_v43 }
 0x255   :  { %v1031_v8 = vadd.f32 %v1030_v16, %v6173_v22 }
 0x256   :  { %v2466_v55 = vpop.xlane.xlu0 %2465  ;;  %v5257_v21 = vpop.xlane.xlu1 %2315  ;;  %v1070_v61 = vadd.f32 %v1069_v13, %v6176_v15  ;;  %v6186_v13 = vld [vmem:[#allocation47_spill] sm:$0xff] }
 0x257   :  { %v1032_v42 = vadd.f32 %v1031_v8, %v6175_v7  ;;  %v2618_v3 = vadd.f32 %v2617_v44, %v2466_v55  ;;  %v6192_v44 = vld [vmem:[#allocation70_spill] sm:$0xff] }
 0x258   :  { %v1071_v28 = vadd.f32 %v1070_v61, %v6178_v51  ;;  %v6187_v61 = vld [vmem:[#allocation126_spill] sm:$0xff]  ;;  %v6188_v51 = vld [vmem:[#allocation51_spill] sm:$0xff] }
 0x259   :  { %v1033_v9 = vadd.f32 %v1032_v42, %v6177_v32  ;;  %v2583_v42 = vadd.f32 %v5254_v4, %v5257_v21  ;;  %v6190_v21 = vld [vmem:[#allocation16_spill] sm:$0xff] }
 0x25a   :  { %v2471_v45 = vpop.xlane.xlu0 %2470  ;;  %v5261_v34 = vpop.xlane.xlu1 %2320  ;;  %v1072_v1 = vadd.f32 %v1071_v28, %v6180_v18 }
 0x25b   :  { %v1034_v11 = vadd.f32 %v1033_v9, %v6179_v62  ;;  %v2619_v22 = vadd.f32 %v2618_v3, %v2471_v45  ;;  %v2584_v37 = vadd.f32 %v2583_v42, %v5261_v34 }
 0x25c   :  { %v1073_v56 = vadd.f32 %v1072_v1, %v6182_v26 }
 0x25d   :  { %v1035_v41 = vadd.f32 %v1034_v11, %v6181_v17  ;;  %v6189_v11 = vld [vmem:[#allocation145_spill] sm:$0xff] }
 0x25e   :  { %v2476_v12 = vpop.xlane.xlu0 %2475  ;;  %v5265_v31 = vpop.xlane.xlu1 %2325  ;;  %v1074_v48 = vadd.f32 %v1073_v56, %v6184_v35  ;;  %v6191_v56 = vld [vmem:[#allocation142_spill] sm:$0xff] }
 0x25f   :  { %v1036_v49 = vadd.f32 %v1035_v41, %v6183_v53  ;;  %v2620_v43 = vadd.f32 %v2619_v22, %v2476_v12  ;;  %v2585_v62 = vadd.f32 %v2584_v37, %v5265_v31 }
 0x260   :  { %v1075_v7 = vadd.f32 %v1074_v48, %v6186_v13  ;;  %v6193_v48 = vld [vmem:[#allocation152_spill] sm:$0xff] }
 0x261   :  { %v1037_v58 = vadd.f32 %v1036_v49, %v6185_v52 }
 0x262   :  { %v2481_v39 = vpop.xlane.xlu0 %2480  ;;  %v5269_v50 = vpop.xlane.xlu1 %2330  ;;  %v1076_v28 = vadd.f32 %v1075_v7, %v6188_v51  ;;  %v6195_v7 = vld [vmem:[#allocation29_spill] sm:$0xff] }
 0x263   :  { %v1038_v32 = vadd.f32 %v1037_v58, %v6187_v61  ;;  %v2621_v9 = vadd.f32 %v2620_v43, %v2481_v39  ;;  %v2586_v17 = vadd.f32 %v2585_v62, %v5269_v50 }
 0x264   :  { %v1077_v41 = vadd.f32 %v1076_v28, %v6190_v21 }
 0x265   :  { %v1039_v12 = vadd.f32 %v1038_v32, %v6189_v11  ;;  %v6198_v11 = vld [vmem:[#allocation73_spill] sm:$0xff] }
 0x266   :  { %v2486_v19 = vpop.xlane.xlu0 %2485  ;;  %v5273_v54 = vpop.xlane.xlu1 %2335  ;;  %v1078_v3 = vadd.f32 %v1077_v41, %v6192_v44  ;;  %v6200_v41 = vld [vmem:[#allocation78_spill] sm:$0xff] }
 0x267   :  { %v2622_v55 = vadd.f32 %v2621_v9, %v2486_v19  ;;  %v2587_v39 = vadd.f32 %v2586_v17, %v5273_v54  ;;  %v1040_v34 = vadd.f32 %v1039_v12, %v6191_v56 }
 0x269   :  { %v1041_v50 = vadd.f32 %v1040_v34, %v6193_v48 }
 0x26a   :  { %v2491_v38 = vpop.xlane.xlu0 %2490  ;;  %v5277_v63 = vpop.xlane.xlu1 %2340 }
 0x26b   :  { %v2623_v18 = vadd.f32 %v2622_v55, %v2491_v38  ;;  %v2588_v49 = vadd.f32 %v2587_v39, %v5277_v63  ;;  %v1042_v42 = vadd.f32 %v1041_v50, %v6195_v7  ;;  %v1824_v39 = vrot.slane %v6200_v41, 4 }
 0x26e   :  { %v2496_v0 = vpop.xlane.xlu0 %2495  ;;  %v5281_v60 = vpop.xlane.xlu1 %2345 }
 0x26f   :  { %v2624_v4 = vadd.f32 %v2623_v18, %v2496_v0  ;;  %v2589_v38 = vadd.f32 %v2588_v49, %v5281_v60 }
 0x272   :  { %v2501_v14 = vpop.xlane.xlu0 %2500  ;;  %v5285_v29 = vpop.xlane.xlu1 %2350 }
 0x273   :  { %v2625_v19 = vadd.f32 %v2624_v4, %v2501_v14  ;;  %v2590_v54 = vadd.f32 %v2589_v38, %v5285_v29  ;;  %v6194_v14 = vld [vmem:[#allocation69_spill] sm:$0xff] }
 0x274   :  { %v1079_v13 = vadd.f32 %v1078_v3, %v6194_v14 }
 0x276   :  { %v2506_v23 = vpop.xlane.xlu0 %2505  ;;  %v5289_v2 = vpop.xlane.xlu1 %2355 }
 0x277   :  { %v2626_v31 = vadd.f32 %v2625_v19, %v2506_v23  ;;  %v2591_v63 = vadd.f32 %v2590_v54, %v5289_v2 }
 0x27a   :  { %v2511_v24 = vpop.xlane.xlu0 %2510  ;;  %v1742_v6 = vpop.xlane.xlu1 %1741 }
 0x27b   :  { %v2627_v0 = vadd.f32 %v2626_v31, %v2511_v24  ;;  %v1850_v52 = vadd.f32 %v5229_v47, %v1742_v6  ;;  %v6196_v6 = vld [vmem:[#allocation81_spill] sm:$0xff] }
 0x27c   :  { %v1080_v37 = vadd.f32 %v1079_v13, %v6196_v6 }
 0x27e   :  { %v2516_v30 = vpop.xlane.xlu0 %2515  ;;  %v5295_v46 = vpop.xlane.xlu1 %2520  ;;  %v1081_v12 = vadd.f32 %v1080_v37, %v6198_v11 }
 0x27f   :  { %v2628_v22 = vadd.f32 %v2627_v0, %v2516_v30 }
 0x280   :  { %v1082_v56 = vrot.slane %v1081_v12, 4 }
 0x281   :  { %v2629_v60 = vadd.f32 %v2628_v22, %v5295_v46 }
 0x282   :  { %v5298_v25 = vpop.xlane.xlu0 %2360  ;;  %v5301_v10 = vpop.xlane.xlu1 %2365 }
 0x283   :  { %v2592_v24 = vadd.f32 %v2591_v63, %v5298_v25 }
 0x285   :  { %v2593_v29 = vadd.f32 %v2592_v24, %v5301_v10 }
 0x286   :  { %v1747_v5 = vpop.xlane.xlu0 %1746  ;;  %v1752_v59 = vpop.xlane.xlu1 %1751 }
 0x287   :  { %v1851_v43 = vadd.f32 %v1850_v52, %v1747_v5  ;;  %v6197_v5 = vld [vmem:[#allocation12_spill] sm:$0xff] }
 0x288   :  { %v1043_v55 = vadd.f32 %v1042_v42, %v6197_v5 }
 0x289   :  { %v1852_v61 = vadd.f32 %v1851_v43, %v1752_v59 }
 0x28a   :  { %v2526_v27 = vpop.xlane.xlu0 %2525  ;;  %v5307_v57 = vpop.xlane.xlu1 %2530 }
 0x28b   :  { %v2630_v9 = vadd.f32 %v2629_v60, %v2526_v27 }
 0x28d   :  { %v2631_v2 = vadd.f32 %v2630_v9, %v5307_v57 }
 0x28e   :  { %v5310_v40 = vpop.xlane.xlu0 %2370  ;;  %v5313_v36 = vpop.xlane.xlu1 %2375 }
 0x28f   :  { %v2594_v62 = vadd.f32 %v2593_v29, %v5310_v40 }
 0x291   :  { %v2595_v25 = vadd.f32 %v2594_v62, %v5313_v36  ;;  %v1825_v36 = vadd.f32 %v1824_v39, %v6200_v41 }
 0x292   :  { %v1757_v33 = vpop.xlane.xlu0 %1756  ;;  %v1762_v16 = vpop.xlane.xlu1 %1761 }
 0x293   :  { %v1853_v47 = vadd.f32 %v1852_v61, %v1757_v33  ;;  %v6199_v33 = vld [vmem:[#allocation40_spill] sm:$0xff]  ;;  %v1826_v52 = vrot.slane %v1825_v36, 2 }
 0x294   :  { %v1044_v18 = vadd.f32 %v1043_v55, %v6199_v33 }
 0x295   :  { %v1854_v51 = vadd.f32 %v1853_v47, %v1762_v16  ;;  %v1827_v42 = vadd.f32 %v1826_v52, %v1825_v36 }
 0x296   :  { %v2536_v8 = vpop.xlane.xlu0 %2535  ;;  %v2541_v15 = vpop.xlane.xlu1 %2540 }
 0x297   :  { %v2632_v46 = vadd.f32 %v2631_v2, %v2536_v8  ;;  %v1045_v8 = vrot.slane %v1044_v18, 4  ;;  %v1828_v37 = vrot.slane %v1827_v42, 1 }
 0x299   :  { %v2633_v17 = vadd.f32 %v2632_v46, %v2541_v15  ;;  %v1083_v15 = vadd.f32 %v1082_v56, %v1081_v12  ;;  %v1829_v46 = vadd.f32 %v1828_v37, %v1827_v42 }
 0x29a   :  { %v2381_v20 = vpop.xlane.xlu0 %2380  ;;  %v2386_v45 = vpop.xlane.xlu1 %2385 }
 0x29b   :  { %v2596_v21 = vadd.f32 %v2595_v25, %v2381_v20  ;;  %v1046_v20 = vadd.f32 %v1045_v8, %v1044_v18  ;;  %v1084_v22 = vrot.slane %v1083_v15, 2 }
 0x29d   :  { %v2597_v34 = vadd.f32 %v2596_v21, %v2386_v45  ;;  %v1047_v14 = vrot.slane %v1046_v20, 2  ;;  %v1085_v61 = vadd.f32 %v1084_v22, %v1083_v15 }
 0x29e   :  { %v1767_v1 = vpop.xlane.xlu0 %1766  ;;  %v1772_v26 = vpop.xlane.xlu1 %1771 }
 0x29f   :  { %v1855_v59 = vadd.f32 %v1854_v51, %v1767_v1  ;;  %v1048_v24 = vadd.f32 %v1047_v14, %v1046_v20  ;;  %v1086_v5 = vrot.slane %v1085_v61, 1 }
 0x2a1   :  { %v1856_v10 = vadd.f32 %v1855_v59, %v1772_v26  ;;  %v1049_v2 = vrot.slane %v1048_v24, 1  ;;  %v1087_v11 = vadd.f32 %v1086_v5, %v1085_v61 }
 0x2a2   :  { %v2546_v53 = vpop.xlane.xlu0 %2545  ;;  %v2551_v35 = vpop.xlane.xlu1 %2550 }
 0x2a3   :  { %v2634_v57 = vadd.f32 %v2633_v17, %v2546_v53  ;;  %v1050_v25 = vadd.f32 %v1049_v2, %v1048_v24 }
 0x2a5   :  { %v2635_v1 = vadd.f32 %v2634_v57, %v2551_v35 }
 0x2a6   :  { %v2391_v58 = vpop.xlane.xlu0 %2390  ;;  %v2396_v23 = vpop.xlane.xlu1 %2395 }
 0x2a7   :  { %v2598_v31 = vadd.f32 %v2597_v34, %v2391_v58 }
 0x2a9   :  { %v2599_v26 = vadd.f32 %v2598_v31, %v2396_v23 }
 0x2aa   :  { %v1777_v32 = vpop.xlane.xlu0 %1776  ;;  %v1782_v30 = vpop.xlane.xlu1 %1781 }
 0x2ab   :  { %v1857_v16 = vadd.f32 %v1856_v10, %v1777_v32  ;;  %v2647_v10 = vsel %vm2646_vm0, %v1050_v25, %v1829_v46 }
 0x2ad   :  { %v1858_v19 = vadd.f32 %v1857_v16, %v1782_v30 }
 0x2ae   :  { %v2556_v28 = vpop.xlane.xlu0 %2555  ;;  %v2561_v27 = vpop.xlane.xlu1 %2560 }
 0x2af   :  { %v2636_v44 = vadd.f32 %v2635_v1, %v2556_v28 }
 0x2b1   :  { %v2637_v48 = vadd.f32 %v2636_v44, %v2561_v27  ;;  %v2652_v27 = vld [vmem:[#allocation7] sm:$0x1] }
 0x2b2   :  { %v2401_v4 = vpop.xlane.xlu0 %2400  ;;  %v2406_v40 = vpop.xlane.xlu1 %2405 }
 0x2b3   :  { %v2600_v0 = vadd.f32 %v2599_v26, %v2401_v4 }
 0x2b5   :  { %v2601_v35 = vadd.f32 %v2600_v0, %v2406_v40 }
 0x2b6   :  { %v1787_v49 = vpop.xlane.xlu0 %1786  ;;  %v1792_v38 = vpop.xlane.xlu1 %1791 }
 0x2b7   :  { %v1859_v3 = vadd.f32 %v1858_v19, %v1787_v49 }
 0x2b9   :  { %v1860_v50 = vadd.f32 %v1859_v3, %v1792_v38 }
 0x2ba   :  { %v2566_v53 = vpop.xlane.xlu0 %2565  ;;  %v2571_v43 = vpop.xlane.xlu1 %2570 }
 0x2bb   :  { %v1861_v45 = vrot.slane %v1860_v50, 4  ;;  %v2638_v54 = vadd.f32 %v2637_v48, %v2566_v53 }
 0x2bd   :  { %v1862_v58 = vadd.f32 %v1861_v45, %v1860_v50  ;;  %v2639_v13 = vadd.f32 %v2638_v54, %v2571_v43 }
 0x2be   :  { %v2411_v63 = vpop.xlane.xlu0 %2410 }
 0x2bf   :  { %v2602_v7 = vadd.f32 %v2601_v35, %v2411_v63  ;;  %v1863_v60 = vrot.slane %v1862_v58, 2  ;;  %v2640_v23 = vrot.slane %v2639_v13, 4 }
 0x2c1   :  { %v2603_v32 = vrot.slane %v2602_v7, 4  ;;  %v1864_v9 = vadd.f32 %v1863_v60, %v1862_v58  ;;  %v2641_v47 = vadd.f32 %v2640_v23, %v2639_v13 }
 0x2c3   :  { %v2604_v6 = vadd.f32 %v2603_v32, %v2602_v7  ;;  %v1865_v29 = vrot.slane %v1864_v9, 1  ;;  %v2642_v30 = vrot.slane %v2641_v47, 2 }
 0x2c5   :  { %v2605_v55 = vrot.slane %v2604_v6, 2  ;;  %v2643_v51 = vadd.f32 %v2642_v30, %v2641_v47  ;;  %v1866_v28 = vadd.f32 %v1865_v29, %v1864_v9 }
 0x2c7   :  { %v2606_v62 = vadd.f32 %v2605_v55, %v2604_v6  ;;  %v2644_v59 = vrot.slane %v2643_v51, 1  ;;  %v2648_v18 = vsel %vm2646_vm0, %v1087_v11, %v1866_v28 }
 0x2c9   :  { %v2607_v12 = vrot.slane %v2606_v62, 1  ;;  %v2645_v33 = vadd.f32 %v2644_v59, %v2643_v51 }
 0x2cb   :  { %v2608_v17 = vadd.f32 %v2607_v12, %v2606_v62  ;;  %v2651_v4 = vsel %vm2649_vm1, %v2648_v18, %v2645_v33 }
 0x2cc   :  { %v2654_v21 = vadd.f32 %v2652_v27, %v2651_v4 }
 0x2cd   :  { %v2650_v41 = vsel %vm2649_vm1, %v2647_v10, %v2608_v17 }
 0x2ce   :  { %v2653_v39 = vadd.f32 %v2652_v27, %v2650_v41  ;;  %2657 = vst.msk [vmem:[#allocation8 + $0x1] sm:$0x1] %vm2655_vm2, %v2654_v21 }
 0x2d0   :  { %2656 = vst.msk [vmem:[#allocation8] sm:$0x1] %vm2655_vm2, %v2653_v39 }
 0x2d1   :  { %3203 = shalt.err (!%p3200_p0)
}
 0x2d2   :  { %s3204_s26 = scalar_lea.hbm %s5368_s3, 32 }
 0x2d3   :  { %p3205_p1 = scmp.ne.s32.totalorder %s5368_s3, %s3204_s26  ;;  %p3208_p2 = scmp.lt.u32.totalorder %s3204_s26, %s5368_s3 }
 0x2d5   :  { %p3210_p3 = pnand %p3208_p2, %p3205_p1 }
 0x2d7   :  { %3213 = shalt.err (!%p3210_p3)
}
 0x2d8   :  { %s3226_s4 = smov 16   ;;  %s3227_s5 = smov 1  }
 0x2d9   :  { %2669 = dma.vmem_to_hbm [thread:$0]  %s2664_s22, 32, %s5368_s3, [#allocation4], %s3226_s4, %s3226_s4, %s3227_s5  }
 0x2da   :  { %3218 = dma.done.wait [#allocation4], 32  }
 0x2db   :  { %3219 = vsyncadd [#allocation4], 4294967264 }
 0x2dc   :  { %2673 = vsyncpa [#allocation3], 1 }
 0x2dd   :  { %2674 = vsyncpa [#allocation6], 1 }
 0x2de   :  { %2675 = vsyncpa [#allocation4], 1 }

</bundles_post_ra>
